<compile_context>
chip_gen: v7x
topology: tpu7x:2x2x1
jax: 0.10.0
libtpu: 0.0.40
codegen_flags: <defaults>
</compile_context>

<pallas_src>
import functools

import jax
import jax.numpy as jnp
from jax.experimental import pallas as pl
from jax.experimental.pallas import tpu as pltpu


def _round_up(n, m):
    return ((n + m - 1) // m) * m


# ------------------------- Fused GRU stack + FC kernel -----------------------
def _fused_gru_fc_kernel(num_layers, hp, x_ref, *refs):
    """refs = [w_i, w_h, b_i, b_h] * num_layers + [fc_w, fc_b] + [out] + scratch."""
    nl = num_layers
    fc_w_ref = refs[4 * nl]
    fc_b_ref = refs[4 * nl + 1]
    out_ref = refs[4 * nl + 2]
    gi_ref = refs[4 * nl + 3]     # (T, B, 3*Hp) f32
    h_ref = refs[4 * nl + 4]      # (B, Hp)      f32
    seq_ref = refs[4 * nl + 5]    # (T, B, Hp)   f32  inter-layer sequence

    T = gi_ref.shape[0]
    B = gi_ref.shape[1]

    for l in range(nl):
        w_i = refs[4 * l + 0][...]
        w_h = refs[4 * l + 1][...]
        b_i = refs[4 * l + 2][...]
        b_h = refs[4 * l + 3][...]

        layer_in = x_ref[...] if l == 0 else seq_ref[...]
        din = layer_in.shape[-1]

        # Parallel half: input projection for ALL timesteps as one big matmul.
        gi = jnp.dot(layer_in.reshape(T * B, din), w_i,
                     preferred_element_type=jnp.float32) + b_i
        gi_ref[...] = gi.reshape(T, B, 3 * hp)

        # Sequential half: one (B,Hp)x(Hp,3Hp) matmul + gate elementwise per step.
        h_ref[...] = jnp.zeros_like(h_ref)
        write_seq = l < nl - 1

        def step(t, carry, w_h=w_h, b_h=b_h, write_seq=write_seq):
            h = h_ref[...]
            gh = jnp.dot(h, w_h, preferred_element_type=jnp.float32) + b_h
            gi_t = gi_ref[t]                                   # (B, 3*Hp)
            r = jax.nn.sigmoid(gi_t[:, 0:hp] + gh[:, 0:hp])
            z = jax.nn.sigmoid(gi_t[:, hp:2 * hp] + gh[:, hp:2 * hp])
            n = jnp.tanh(gi_t[:, 2 * hp:3 * hp] + r * gh[:, 2 * hp:3 * hp])
            h_new = (1.0 - z) * n + z * h
            h_ref[...] = h_new
            if write_seq:
                seq_ref[t] = h_new
            return carry

        jax.lax.fori_loop(0, T, step, 0, unroll=True)

    # Final FC on the last timestep's hidden state (== out[:, -1, :] @ W.T + b).
    out_ref[...] = (jnp.dot(h_ref[...], fc_w_ref[...],
                            preferred_element_type=jnp.float32)
                    + fc_b_ref[...]).astype(out_ref.dtype)


def gru_model_forward(x_btd, layer_params, fc_w, fc_b, *, output_size):
    """x_btd: (B, T, input_size) batch_first, like the PyTorch module."""
    x_tbd = jnp.transpose(x_btd, (1, 0, 2)).astype(jnp.float32)   # time-major
    T, B, _ = x_tbd.shape
    nl = len(layer_params)
    hp = fc_w.shape[0]          # padded hidden size (multiple of 128)
    op = fc_w.shape[1]          # padded output size (multiple of 128)

    flat = []
    for p in layer_params:
        flat += [p["w_i"], p["w_h"], p["b_i"], p["b_h"]]
    flat += [fc_w, fc_b]

    vmem = lambda: pl.BlockSpec(memory_space=pltpu.MemorySpace.VMEM)
    kernel = functools.partial(_fused_gru_fc_kernel, nl, hp)

    out_padded = pl.pallas_call(
        kernel,
        out_shape=jax.ShapeDtypeStruct((B, op), jnp.float32),
        in_specs=[vmem() for _ in range(1 + len(flat))],
        out_specs=vmem(),
        scratch_shapes=[
            pltpu.VMEM((T, B, 3 * hp), jnp.float32),   # GI for all timesteps
            pltpu.VMEM((B, hp), jnp.float32),          # hidden state
            pltpu.VMEM((T, B, hp), jnp.float32),       # inter-layer sequence
        ],
        compiler_params=pltpu.CompilerParams(vmem_limit_bytes=32 * 1024 * 1024),
    )(x_tbd, *flat)

    return out_padded[:, :output_size]


# --------------------------- Parameter construction --------------------------
def init_raw_params(key, input_size, hidden_size, num_layers, output_size):
    """PyTorch-layout parameters: per layer (w_ih (3H,D), w_hh (3H,H), b_ih, b_hh)."""
    H = hidden_size
    std = 1.0 / (H ** 0.5)
    raw_layers = []
    for l in range(num_layers):
        D = input_size if l == 0 else H
        key, k1, k2, k3, k4 = jax.random.split(key, 5)
        raw_layers.append((
            jax.random.uniform(k1, (3 * H, D), jnp.float32, -std, std),
            jax.random.uniform(k2, (3 * H, H), jnp.float32, -std, std),
            jax.random.uniform(k3, (3 * H,), jnp.float32, -std, std),
            jax.random.uniform(k4, (3 * H,), jnp.float32, -std, std),
        ))
    key, kw, kb = jax.random.split(key, 3)
    fc_w = jax.random.uniform(kw, (output_size, H), jnp.float32, -std, std)
    fc_b = jax.random.uniform(kb, (output_size,), jnp.float32, -std, std)
    return raw_layers, fc_w, fc_b


def pack_params(raw_layers, fc_w, fc_b, hidden_size, lane=128):
    """Concatenate gate weights to (Din, 3*Hp)/(Hp, 3*Hp), zero-pad H/O to 128."""
    H = hidden_size
    hp = _round_up(H, lane)
    layers = []
    for l, (w_ih, w_hh, b_ih, b_hh) in enumerate(raw_layers):
        D = w_ih.shape[1]
        din = D if l == 0 else hp           # layer input width in kernel layout
        wi = jnp.zeros((din, 3 * hp), jnp.float32)
        wh = jnp.zeros((hp, 3 * hp), jnp.float32)
        bi = jnp.zeros((1, 3 * hp), jnp.float32)
        bh = jnp.zeros((1, 3 * hp), jnp.float32)
        for g in range(3):                  # gate order: r, z, n
            wi = wi.at[:D, g * hp:g * hp + H].set(w_ih[g * H:(g + 1) * H, :].T)
            wh = wh.at[:H, g * hp:g * hp + H].set(w_hh[g * H:(g + 1) * H, :].T)
            bi = bi.at[0, g * hp:g * hp + H].set(b_ih[g * H:(g + 1) * H])
            bh = bh.at[0, g * hp:g * hp + H].set(b_hh[g * H:(g + 1) * H])
        layers.append(dict(w_i=wi, w_h=wh, b_i=bi, b_h=bh))
    O = fc_w.shape[0]
    op = _round_up(O, lane)
    fcw = jnp.zeros((hp, op), jnp.float32).at[:H, :O].set(fc_w.T)
    fcb = jnp.zeros((1, op), jnp.float32).at[0, :O].set(fc_b)
    return layers, fcw, fcb


# ----------------------------- Pure-JAX reference -----------------------------
def gru_ref(x_btd, raw_layers, fc_w, fc_b):
    B = x_btd.shape[0]
    seq = jnp.transpose(x_btd, (1, 0, 2)).astype(jnp.float32)
    for (w_ih, w_hh, b_ih, b_hh) in raw_layers:
        H = w_hh.shape[1]
        wir, wiz, win = jnp.split(w_ih, 3, axis=0)
        whr, whz, whn = jnp.split(w_hh, 3, axis=0)
        bir, biz, bin_ = jnp.split(b_ih, 3)
        bhr, bhz, bhn = jnp.split(b_hh, 3)

        def step(h, x_t, wir=wir, wiz=wiz, win=win, whr=whr, whz=whz, whn=whn,
                 bir=bir, biz=biz, bin_=bin_, bhr=bhr, bhz=bhz, bhn=bhn):
            r = jax.nn.sigmoid(x_t @ wir.T + bir + h @ whr.T + bhr)
            z = jax.nn.sigmoid(x_t @ wiz.T + biz + h @ whz.T + bhz)
            n = jnp.tanh(x_t @ win.T + bin_ + r * (h @ whn.T + bhn))
            h_new = (1.0 - z) * n + z * h
            return h_new, h_new

        _, seq = jax.lax.scan(step, jnp.zeros((B, H), jnp.float32), seq)
    return seq[-1] @ fc_w.T + fc_b


if __name__ == "__main__":
    B, T = 2, 8
    input_size, hidden_size, num_layers, output_size = 16, 32, 2, 4
    # TODO(synk): nn.GRU inter-layer dropout (p=0.2) is training-only; omitted (eval semantics).

    key = jax.random.PRNGKey(0)
    key, kx = jax.random.split(key)
    raw_layers, fc_w, fc_b = init_raw_params(
        key, input_size, hidden_size, num_layers, output_size)
    layers_p, fcw_p, fcb_p = pack_params(raw_layers, fc_w, fc_b, hidden_size)
    x = jax.random.normal(kx, (B, T, input_size), jnp.float32)

    fwd = jax.jit(functools.partial(gru_model_forward, output_size=output_size))
    out = jax.block_until_ready(fwd(x, layers_p, fcw_p, fcb_p))

    ref = gru_ref(x, raw_layers, fc_w, fc_b)
    assert out.shape == (B, output_size), out.shape
    assert jnp.allclose(out, ref, atol=1e-4, rtol=1e-4), (out, ref)
    print("KERNEL_OK")
</pallas_src>

<mosaic_0001>
module attributes {stable_mosaic.version = 11 : i64} {
  func.func @_fused_gru_fc_kernel(%arg0: memref<8x2x16xf32, #tpu.memory_space<vmem>>, %arg1: memref<16x384xf32, #tpu.memory_space<vmem>>, %arg2: memref<128x384xf32, #tpu.memory_space<vmem>>, %arg3: memref<1x384xf32, #tpu.memory_space<vmem>>, %arg4: memref<1x384xf32, #tpu.memory_space<vmem>>, %arg5: memref<128x384xf32, #tpu.memory_space<vmem>>, %arg6: memref<128x384xf32, #tpu.memory_space<vmem>>, %arg7: memref<1x384xf32, #tpu.memory_space<vmem>>, %arg8: memref<1x384xf32, #tpu.memory_space<vmem>>, %arg9: memref<128x128xf32, #tpu.memory_space<vmem>>, %arg10: memref<1x128xf32, #tpu.memory_space<vmem>>, %arg11: memref<2x128xf32, #tpu.memory_space<vmem>>, %arg12: memref<8x2x384xf32, #tpu.memory_space<vmem>>, %arg13: memref<2x128xf32, #tpu.memory_space<vmem>>, %arg14: memref<8x2x128xf32, #tpu.memory_space<vmem>>) attributes {dimension_semantics = [], scalar_prefetch = 0 : i64, scratch_operands = 3 : i64, tpu.core_type = #tpu.core_type<tc>} {
    %c0 = arith.constant 0 : index
    %c0_0 = arith.constant 0 : index
    %0 = vector.load %arg1[%c0, %c0_0] : memref<16x384xf32, #tpu.memory_space<vmem>>, vector<16x384xf32>
    %c0_1 = arith.constant 0 : index
    %c0_2 = arith.constant 0 : index
    %1 = vector.load %arg2[%c0_1, %c0_2] : memref<128x384xf32, #tpu.memory_space<vmem>>, vector<128x384xf32>
    %c0_3 = arith.constant 0 : index
    %c0_4 = arith.constant 0 : index
    %2 = vector.load %arg3[%c0_3, %c0_4] : memref<1x384xf32, #tpu.memory_space<vmem>>, vector<1x384xf32>
    %c0_5 = arith.constant 0 : index
    %c0_6 = arith.constant 0 : index
    %3 = vector.load %arg4[%c0_5, %c0_6] : memref<1x384xf32, #tpu.memory_space<vmem>>, vector<1x384xf32>
    %c0_7 = arith.constant 0 : index
    %c0_8 = arith.constant 0 : index
    %c0_9 = arith.constant 0 : index
    %4 = vector.load %arg0[%c0_7, %c0_8, %c0_9] : memref<8x2x16xf32, #tpu.memory_space<vmem>>, vector<8x2x16xf32>
    %5 = vector.shape_cast %4 : vector<8x2x16xf32> to vector<16x16xf32>
    %cst = arith.constant dense<0.000000e+00> : vector<16x384xf32>
    %6 = tpu.matmul %5, %0, %cst {dimension_numbers = #tpu.dot_dimension_numbers<[1], [0], [0], [1], [0, 0, 1, 1], [], []>} : vector<16x16xf32>, vector<16x384xf32>, vector<16x384xf32> -> vector<16x384xf32>
    %7 = vector.broadcast %2 : vector<1x384xf32> to vector<16x384xf32>
    %8 = arith.addf %6, %7 : vector<16x384xf32>
    %9 = vector.shape_cast %8 : vector<16x384xf32> to vector<8x2x384xf32>
    %c0_10 = arith.constant 0 : index
    %c0_11 = arith.constant 0 : index
    %c0_12 = arith.constant 0 : index
    %10 = vector.load %arg12[%c0_10, %c0_11, %c0_12] : memref<8x2x384xf32, #tpu.memory_space<vmem>>, vector<8x2x384xf32>
    tpu.vector_store %arg12[%c0_10, %c0_11, %c0_12], %9 {strides = array<i32>} : memref<8x2x384xf32, #tpu.memory_space<vmem>>, vector<8x2x384xf32>,
    %cst_13 = arith.constant 0.000000e+00 : f32
    %11 = vector.broadcast %cst_13 : f32 to vector<2x128xf32>
    %c0_14 = arith.constant 0 : index
    %c0_15 = arith.constant 0 : index
    %12 = vector.load %arg13[%c0_14, %c0_15] : memref<2x128xf32, #tpu.memory_space<vmem>>, vector<2x128xf32>
    tpu.vector_store %arg13[%c0_14, %c0_15], %11 {strides = array<i32>} : memref<2x128xf32, #tpu.memory_space<vmem>>, vector<2x128xf32>,
    %c0_i32 = arith.constant 0 : i32
    %c0_16 = arith.constant 0 : index
    %c0_17 = arith.constant 0 : index
    %13 = vector.load %arg13[%c0_16, %c0_17] : memref<2x128xf32, #tpu.memory_space<vmem>>, vector<2x128xf32>
    %cst_18 = arith.constant dense<0.000000e+00> : vector<2x384xf32>
    %14 = tpu.matmul %13, %1, %cst_18 {dimension_numbers = #tpu.dot_dimension_numbers<[1], [0], [0], [1], [0, 0, 1, 1], [], []>} : vector<2x128xf32>, vector<128x384xf32>, vector<2x384xf32> -> vector<2x384xf32>
    %15 = vector.broadcast %3 : vector<1x384xf32> to vector<2x384xf32>
    %16 = arith.addf %14, %15 : vector<2x384xf32>
    %17 = arith.index_cast %c0_i32 : i32 to index
    %c0_19 = arith.constant 0 : index
    %c0_20 = arith.constant 0 : index
    %18 = vector.load %arg12[%17, %c0_19, %c0_20] : memref<8x2x384xf32, #tpu.memory_space<vmem>>, vector<1x2x384xf32>
    %19 = vector.shape_cast %18 : vector<1x2x384xf32> to vector<2x384xf32>
    %20 = vector.extract_strided_slice %19 {offsets = [0, 0], sizes = [2, 128], strides = [1, 1]} : vector<2x384xf32> to vector<2x128xf32>
    %21 = vector.extract_strided_slice %16 {offsets = [0, 0], sizes = [2, 128], strides = [1, 1]} : vector<2x384xf32> to vector<2x128xf32>
    %22 = arith.addf %20, %21 : vector<2x128xf32>
    %23 = arith.negf %22 : vector<2x128xf32>
    %24 = math.exp %23 : vector<2x128xf32>
    %cst_21 = arith.constant 1.000000e+00 : f32
    %25 = vector.broadcast %cst_21 : f32 to vector<2x128xf32>
    %26 = arith.addf %25, %24 : vector<2x128xf32>
    %27 = arith.divf %25, %26 : vector<2x128xf32>
    %28 = vector.extract_strided_slice %19 {offsets = [0, 128], sizes = [2, 128], strides = [1, 1]} : vector<2x384xf32> to vector<2x128xf32>
    %29 = vector.extract_strided_slice %16 {offsets = [0, 128], sizes = [2, 128], strides = [1, 1]} : vector<2x384xf32> to vector<2x128xf32>
    %30 = arith.addf %28, %29 : vector<2x128xf32>
    %31 = arith.negf %30 : vector<2x128xf32>
    %32 = math.exp %31 : vector<2x128xf32>
    %cst_22 = arith.constant 1.000000e+00 : f32
    %33 = vector.broadcast %cst_22 : f32 to vector<2x128xf32>
    %34 = arith.addf %33, %32 : vector<2x128xf32>
    %35 = arith.divf %33, %34 : vector<2x128xf32>
    %36 = vector.extract_strided_slice %19 {offsets = [0, 256], sizes = [2, 128], strides = [1, 1]} : vector<2x384xf32> to vector<2x128xf32>
    %37 = vector.extract_strided_slice %16 {offsets = [0, 256], sizes = [2, 128], strides = [1, 1]} : vector<2x384xf32> to vector<2x128xf32>
    %38 = arith.mulf %27, %37 : vector<2x128xf32>
    %39 = arith.addf %36, %38 : vector<2x128xf32>
    %40 = math.tanh %39 : vector<2x128xf32>
    %cst_23 = arith.constant 1.000000e+00 : f32
    %41 = vector.broadcast %cst_23 : f32 to vector<2x128xf32>
    %42 = arith.subf %41, %35 : vector<2x128xf32>
    %43 = arith.mulf %42, %40 : vector<2x128xf32>
    %44 = arith.mulf %35, %13 : vector<2x128xf32>
    %45 = arith.addf %43, %44 : vector<2x128xf32>
    %c0_24 = arith.constant 0 : index
    %c0_25 = arith.constant 0 : index
    %46 = vector.load %arg13[%c0_24, %c0_25] : memref<2x128xf32, #tpu.memory_space<vmem>>, vector<2x128xf32>
    tpu.vector_store %arg13[%c0_24, %c0_25], %45 {strides = array<i32>} : memref<2x128xf32, #tpu.memory_space<vmem>>, vector<2x128xf32>,
    %47 = arith.index_cast %c0_i32 : i32 to index
    %c0_26 = arith.constant 0 : index
    %c0_27 = arith.constant 0 : index
    %48 = vector.load %arg14[%47, %c0_26, %c0_27] : memref<8x2x128xf32, #tpu.memory_space<vmem>>, vector<1x2x128xf32>
    %49 = vector.shape_cast %48 : vector<1x2x128xf32> to vector<2x128xf32>
    %50 = vector.shape_cast %45 : vector<2x128xf32> to vector<1x2x128xf32>
    tpu.vector_store %arg14[%47, %c0_26, %c0_27], %50 {strides = array<i32>} : memref<8x2x128xf32, #tpu.memory_space<vmem>>, vector<1x2x128xf32>,
    %c1_i32 = arith.constant 1 : i32
    %c0_28 = arith.constant 0 : index
    %c0_29 = arith.constant 0 : index
    %51 = vector.load %arg13[%c0_28, %c0_29] : memref<2x128xf32, #tpu.memory_space<vmem>>, vector<2x128xf32>
    %cst_30 = arith.constant dense<0.000000e+00> : vector<2x384xf32>
    %52 = tpu.matmul %51, %1, %cst_30 {dimension_numbers = #tpu.dot_dimension_numbers<[1], [0], [0], [1], [0, 0, 1, 1], [], []>} : vector<2x128xf32>, vector<128x384xf32>, vector<2x384xf32> -> vector<2x384xf32>
    %53 = vector.broadcast %3 : vector<1x384xf32> to vector<2x384xf32>
    %54 = arith.addf %52, %53 : vector<2x384xf32>
    %55 = arith.index_cast %c1_i32 : i32 to index
    %c0_31 = arith.constant 0 : index
    %c0_32 = arith.constant 0 : index
    %56 = vector.load %arg12[%55, %c0_31, %c0_32] : memref<8x2x384xf32, #tpu.memory_space<vmem>>, vector<1x2x384xf32>
    %57 = vector.shape_cast %56 : vector<1x2x384xf32> to vector<2x384xf32>
    %58 = vector.extract_strided_slice %57 {offsets = [0, 0], sizes = [2, 128], strides = [1, 1]} : vector<2x384xf32> to vector<2x128xf32>
    %59 = vector.extract_strided_slice %54 {offsets = [0, 0], sizes = [2, 128], strides = [1, 1]} : vector<2x384xf32> to vector<2x128xf32>
    %60 = arith.addf %58, %59 : vector<2x128xf32>
    %61 = arith.negf %60 : vector<2x128xf32>
    %62 = math.exp %61 : vector<2x128xf32>
    %cst_33 = arith.constant 1.000000e+00 : f32
    %63 = vector.broadcast %cst_33 : f32 to vector<2x128xf32>
    %64 = arith.addf %63, %62 : vector<2x128xf32>
    %65 = arith.divf %63, %64 : vector<2x128xf32>
    %66 = vector.extract_strided_slice %57 {offsets = [0, 128], sizes = [2, 128], strides = [1, 1]} : vector<2x384xf32> to vector<2x128xf32>
    %67 = vector.extract_strided_slice %54 {offsets = [0, 128], sizes = [2, 128], strides = [1, 1]} : vector<2x384xf32> to vector<2x128xf32>
    %68 = arith.addf %66, %67 : vector<2x128xf32>
    %69 = arith.negf %68 : vector<2x128xf32>
    %70 = math.exp %69 : vector<2x128xf32>
    %cst_34 = arith.constant 1.000000e+00 : f32
    %71 = vector.broadcast %cst_34 : f32 to vector<2x128xf32>
    %72 = arith.addf %71, %70 : vector<2x128xf32>
    %73 = arith.divf %71, %72 : vector<2x128xf32>
    %74 = vector.extract_strided_slice %57 {offsets = [0, 256], sizes = [2, 128], strides = [1, 1]} : vector<2x384xf32> to vector<2x128xf32>
    %75 = vector.extract_strided_slice %54 {offsets = [0, 256], sizes = [2, 128], strides = [1, 1]} : vector<2x384xf32> to vector<2x128xf32>
    %76 = arith.mulf %65, %75 : vector<2x128xf32>
    %77 = arith.addf %74, %76 : vector<2x128xf32>
    %78 = math.tanh %77 : vector<2x128xf32>
    %cst_35 = arith.constant 1.000000e+00 : f32
    %79 = vector.broadcast %cst_35 : f32 to vector<2x128xf32>
    %80 = arith.subf %79, %73 : vector<2x128xf32>
    %81 = arith.mulf %80, %78 : vector<2x128xf32>
    %82 = arith.mulf %73, %51 : vector<2x128xf32>
    %83 = arith.addf %81, %82 : vector<2x128xf32>
    %c0_36 = arith.constant 0 : index
    %c0_37 = arith.constant 0 : index
    %84 = vector.load %arg13[%c0_36, %c0_37] : memref<2x128xf32, #tpu.memory_space<vmem>>, vector<2x128xf32>
    tpu.vector_store %arg13[%c0_36, %c0_37], %83 {strides = array<i32>} : memref<2x128xf32, #tpu.memory_space<vmem>>, vector<2x128xf32>,
    %85 = arith.index_cast %c1_i32 : i32 to index
    %c0_38 = arith.constant 0 : index
    %c0_39 = arith.constant 0 : index
    %86 = vector.load %arg14[%85, %c0_38, %c0_39] : memref<8x2x128xf32, #tpu.memory_space<vmem>>, vector<1x2x128xf32>
    %87 = vector.shape_cast %86 : vector<1x2x128xf32> to vector<2x128xf32>
    %88 = vector.shape_cast %83 : vector<2x128xf32> to vector<1x2x128xf32>
    tpu.vector_store %arg14[%85, %c0_38, %c0_39], %88 {strides = array<i32>} : memref<8x2x128xf32, #tpu.memory_space<vmem>>, vector<1x2x128xf32>,
    %c2_i32 = arith.constant 2 : i32
    %c0_40 = arith.constant 0 : index
    %c0_41 = arith.constant 0 : index
    %89 = vector.load %arg13[%c0_40, %c0_41] : memref<2x128xf32, #tpu.memory_space<vmem>>, vector<2x128xf32>
    %cst_42 = arith.constant dense<0.000000e+00> : vector<2x384xf32>
    %90 = tpu.matmul %89, %1, %cst_42 {dimension_numbers = #tpu.dot_dimension_numbers<[1], [0], [0], [1], [0, 0, 1, 1], [], []>} : vector<2x128xf32>, vector<128x384xf32>, vector<2x384xf32> -> vector<2x384xf32>
    %91 = vector.broadcast %3 : vector<1x384xf32> to vector<2x384xf32>
    %92 = arith.addf %90, %91 : vector<2x384xf32>
    %93 = arith.index_cast %c2_i32 : i32 to index
    %c0_43 = arith.constant 0 : index
    %c0_44 = arith.constant 0 : index
    %94 = vector.load %arg12[%93, %c0_43, %c0_44] : memref<8x2x384xf32, #tpu.memory_space<vmem>>, vector<1x2x384xf32>
    %95 = vector.shape_cast %94 : vector<1x2x384xf32> to vector<2x384xf32>
    %96 = vector.extract_strided_slice %95 {offsets = [0, 0], sizes = [2, 128], strides = [1, 1]} : vector<2x384xf32> to vector<2x128xf32>
    %97 = vector.extract_strided_slice %92 {offsets = [0, 0], sizes = [2, 128], strides = [1, 1]} : vector<2x384xf32> to vector<2x128xf32>
    %98 = arith.addf %96, %97 : vector<2x128xf32>
    %99 = arith.negf %98 : vector<2x128xf32>
    %100 = math.exp %99 : vector<2x128xf32>
    %cst_45 = arith.constant 1.000000e+00 : f32
    %101 = vector.broadcast %cst_45 : f32 to vector<2x128xf32>
    %102 = arith.addf %101, %100 : vector<2x128xf32>
    %103 = arith.divf %101, %102 : vector<2x128xf32>
    %104 = vector.extract_strided_slice %95 {offsets = [0, 128], sizes = [2, 128], strides = [1, 1]} : vector<2x384xf32> to vector<2x128xf32>
    %105 = vector.extract_strided_slice %92 {offsets = [0, 128], sizes = [2, 128], strides = [1, 1]} : vector<2x384xf32> to vector<2x128xf32>
    %106 = arith.addf %104, %105 : vector<2x128xf32>
    %107 = arith.negf %106 : vector<2x128xf32>
    %108 = math.exp %107 : vector<2x128xf32>
    %cst_46 = arith.constant 1.000000e+00 : f32
    %109 = vector.broadcast %cst_46 : f32 to vector<2x128xf32>
    %110 = arith.addf %109, %108 : vector<2x128xf32>
    %111 = arith.divf %109, %110 : vector<2x128xf32>
    %112 = vector.extract_strided_slice %95 {offsets = [0, 256], sizes = [2, 128], strides = [1, 1]} : vector<2x384xf32> to vector<2x128xf32>
    %113 = vector.extract_strided_slice %92 {offsets = [0, 256], sizes = [2, 128], strides = [1, 1]} : vector<2x384xf32> to vector<2x128xf32>
    %114 = arith.mulf %103, %113 : vector<2x128xf32>
    %115 = arith.addf %112, %114 : vector<2x128xf32>
    %116 = math.tanh %115 : vector<2x128xf32>
    %cst_47 = arith.constant 1.000000e+00 : f32
    %117 = vector.broadcast %cst_47 : f32 to vector<2x128xf32>
    %118 = arith.subf %117, %111 : vector<2x128xf32>
    %119 = arith.mulf %118, %116 : vector<2x128xf32>
    %120 = arith.mulf %111, %89 : vector<2x128xf32>
    %121 = arith.addf %119, %120 : vector<2x128xf32>
    %c0_48 = arith.constant 0 : index
    %c0_49 = arith.constant 0 : index
    %122 = vector.load %arg13[%c0_48, %c0_49] : memref<2x128xf32, #tpu.memory_space<vmem>>, vector<2x128xf32>
    tpu.vector_store %arg13[%c0_48, %c0_49], %121 {strides = array<i32>} : memref<2x128xf32, #tpu.memory_space<vmem>>, vector<2x128xf32>,
    %123 = arith.index_cast %c2_i32 : i32 to index
    %c0_50 = arith.constant 0 : index
    %c0_51 = arith.constant 0 : index
    %124 = vector.load %arg14[%123, %c0_50, %c0_51] : memref<8x2x128xf32, #tpu.memory_space<vmem>>, vector<1x2x128xf32>
    %125 = vector.shape_cast %124 : vector<1x2x128xf32> to vector<2x128xf32>
    %126 = vector.shape_cast %121 : vector<2x128xf32> to vector<1x2x128xf32>
    tpu.vector_store %arg14[%123, %c0_50, %c0_51], %126 {strides = array<i32>} : memref<8x2x128xf32, #tpu.memory_space<vmem>>, vector<1x2x128xf32>,
    %c3_i32 = arith.constant 3 : i32
    %c0_52 = arith.constant 0 : index
    %c0_53 = arith.constant 0 : index
    %127 = vector.load %arg13[%c0_52, %c0_53] : memref<2x128xf32, #tpu.memory_space<vmem>>, vector<2x128xf32>
    %cst_54 = arith.constant dense<0.000000e+00> : vector<2x384xf32>
    %128 = tpu.matmul %127, %1, %cst_54 {dimension_numbers = #tpu.dot_dimension_numbers<[1], [0], [0], [1], [0, 0, 1, 1], [], []>} : vector<2x128xf32>, vector<128x384xf32>, vector<2x384xf32> -> vector<2x384xf32>
    %129 = vector.broadcast %3 : vector<1x384xf32> to vector<2x384xf32>
    %130 = arith.addf %128, %129 : vector<2x384xf32>
    %131 = arith.index_cast %c3_i32 : i32 to index
    %c0_55 = arith.constant 0 : index
    %c0_56 = arith.constant 0 : index
    %132 = vector.load %arg12[%131, %c0_55, %c0_56] : memref<8x2x384xf32, #tpu.memory_space<vmem>>, vector<1x2x384xf32>
    %133 = vector.shape_cast %132 : vector<1x2x384xf32> to vector<2x384xf32>
    %134 = vector.extract_strided_slice %133 {offsets = [0, 0], sizes = [2, 128], strides = [1, 1]} : vector<2x384xf32> to vector<2x128xf32>
    %135 = vector.extract_strided_slice %130 {offsets = [0, 0], sizes = [2, 128], strides = [1, 1]} : vector<2x384xf32> to vector<2x128xf32>
    %136 = arith.addf %134, %135 : vector<2x128xf32>
    %137 = arith.negf %136 : vector<2x128xf32>
    %138 = math.exp %137 : vector<2x128xf32>
    %cst_57 = arith.constant 1.000000e+00 : f32
    %139 = vector.broadcast %cst_57 : f32 to vector<2x128xf32>
    %140 = arith.addf %139, %138 : vector<2x128xf32>
    %141 = arith.divf %139, %140 : vector<2x128xf32>
    %142 = vector.extract_strided_slice %133 {offsets = [0, 128], sizes = [2, 128], strides = [1, 1]} : vector<2x384xf32> to vector<2x128xf32>
    %143 = vector.extract_strided_slice %130 {offsets = [0, 128], sizes = [2, 128], strides = [1, 1]} : vector<2x384xf32> to vector<2x128xf32>
    %144 = arith.addf %142, %143 : vector<2x128xf32>
    %145 = arith.negf %144 : vector<2x128xf32>
    %146 = math.exp %145 : vector<2x128xf32>
    %cst_58 = arith.constant 1.000000e+00 : f32
    %147 = vector.broadcast %cst_58 : f32 to vector<2x128xf32>
    %148 = arith.addf %147, %146 : vector<2x128xf32>
    %149 = arith.divf %147, %148 : vector<2x128xf32>
    %150 = vector.extract_strided_slice %133 {offsets = [0, 256], sizes = [2, 128], strides = [1, 1]} : vector<2x384xf32> to vector<2x128xf32>
    %151 = vector.extract_strided_slice %130 {offsets = [0, 256], sizes = [2, 128], strides = [1, 1]} : vector<2x384xf32> to vector<2x128xf32>
    %152 = arith.mulf %141, %151 : vector<2x128xf32>
    %153 = arith.addf %150, %152 : vector<2x128xf32>
    %154 = math.tanh %153 : vector<2x128xf32>
    %cst_59 = arith.constant 1.000000e+00 : f32
    %155 = vector.broadcast %cst_59 : f32 to vector<2x128xf32>
    %156 = arith.subf %155, %149 : vector<2x128xf32>
    %157 = arith.mulf %156, %154 : vector<2x128xf32>
    %158 = arith.mulf %149, %127 : vector<2x128xf32>
    %159 = arith.addf %157, %158 : vector<2x128xf32>
    %c0_60 = arith.constant 0 : index
    %c0_61 = arith.constant 0 : index
    %160 = vector.load %arg13[%c0_60, %c0_61] : memref<2x128xf32, #tpu.memory_space<vmem>>, vector<2x128xf32>
    tpu.vector_store %arg13[%c0_60, %c0_61], %159 {strides = array<i32>} : memref<2x128xf32, #tpu.memory_space<vmem>>, vector<2x128xf32>,
    %161 = arith.index_cast %c3_i32 : i32 to index
    %c0_62 = arith.constant 0 : index
    %c0_63 = arith.constant 0 : index
    %162 = vector.load %arg14[%161, %c0_62, %c0_63] : memref<8x2x128xf32, #tpu.memory_space<vmem>>, vector<1x2x128xf32>
    %163 = vector.shape_cast %162 : vector<1x2x128xf32> to vector<2x128xf32>
    %164 = vector.shape_cast %159 : vector<2x128xf32> to vector<1x2x128xf32>
    tpu.vector_store %arg14[%161, %c0_62, %c0_63], %164 {strides = array<i32>} : memref<8x2x128xf32, #tpu.memory_space<vmem>>, vector<1x2x128xf32>,
    %c4_i32 = arith.constant 4 : i32
    %c0_64 = arith.constant 0 : index
    %c0_65 = arith.constant 0 : index
    %165 = vector.load %arg13[%c0_64, %c0_65] : memref<2x128xf32, #tpu.memory_space<vmem>>, vector<2x128xf32>
    %cst_66 = arith.constant dense<0.000000e+00> : vector<2x384xf32>
    %166 = tpu.matmul %165, %1, %cst_66 {dimension_numbers = #tpu.dot_dimension_numbers<[1], [0], [0], [1], [0, 0, 1, 1], [], []>} : vector<2x128xf32>, vector<128x384xf32>, vector<2x384xf32> -> vector<2x384xf32>
    %167 = vector.broadcast %3 : vector<1x384xf32> to vector<2x384xf32>
    %168 = arith.addf %166, %167 : vector<2x384xf32>
    %169 = arith.index_cast %c4_i32 : i32 to index
    %c0_67 = arith.constant 0 : index
    %c0_68 = arith.constant 0 : index
    %170 = vector.load %arg12[%169, %c0_67, %c0_68] : memref<8x2x384xf32, #tpu.memory_space<vmem>>, vector<1x2x384xf32>
    %171 = vector.shape_cast %170 : vector<1x2x384xf32> to vector<2x384xf32>
    %172 = vector.extract_strided_slice %171 {offsets = [0, 0], sizes = [2, 128], strides = [1, 1]} : vector<2x384xf32> to vector<2x128xf32>
    %173 = vector.extract_strided_slice %168 {offsets = [0, 0], sizes = [2, 128], strides = [1, 1]} : vector<2x384xf32> to vector<2x128xf32>
    %174 = arith.addf %172, %173 : vector<2x128xf32>
    %175 = arith.negf %174 : vector<2x128xf32>
    %176 = math.exp %175 : vector<2x128xf32>
    %cst_69 = arith.constant 1.000000e+00 : f32
    %177 = vector.broadcast %cst_69 : f32 to vector<2x128xf32>
    %178 = arith.addf %177, %176 : vector<2x128xf32>
    %179 = arith.divf %177, %178 : vector<2x128xf32>
    %180 = vector.extract_strided_slice %171 {offsets = [0, 128], sizes = [2, 128], strides = [1, 1]} : vector<2x384xf32> to vector<2x128xf32>
    %181 = vector.extract_strided_slice %168 {offsets = [0, 128], sizes = [2, 128], strides = [1, 1]} : vector<2x384xf32> to vector<2x128xf32>
    %182 = arith.addf %180, %181 : vector<2x128xf32>
    %183 = arith.negf %182 : vector<2x128xf32>
    %184 = math.exp %183 : vector<2x128xf32>
    %cst_70 = arith.constant 1.000000e+00 : f32
    %185 = vector.broadcast %cst_70 : f32 to vector<2x128xf32>
    %186 = arith.addf %185, %184 : vector<2x128xf32>
    %187 = arith.divf %185, %186 : vector<2x128xf32>
    %188 = vector.extract_strided_slice %171 {offsets = [0, 256], sizes = [2, 128], strides = [1, 1]} : vector<2x384xf32> to vector<2x128xf32>
    %189 = vector.extract_strided_slice %168 {offsets = [0, 256], sizes = [2, 128], strides = [1, 1]} : vector<2x384xf32> to vector<2x128xf32>
    %190 = arith.mulf %179, %189 : vector<2x128xf32>
    %191 = arith.addf %188, %190 : vector<2x128xf32>
    %192 = math.tanh %191 : vector<2x128xf32>
    %cst_71 = arith.constant 1.000000e+00 : f32
    %193 = vector.broadcast %cst_71 : f32 to vector<2x128xf32>
    %194 = arith.subf %193, %187 : vector<2x128xf32>
    %195 = arith.mulf %194, %192 : vector<2x128xf32>
    %196 = arith.mulf %187, %165 : vector<2x128xf32>
    %197 = arith.addf %195, %196 : vector<2x128xf32>
    %c0_72 = arith.constant 0 : index
    %c0_73 = arith.constant 0 : index
    %198 = vector.load %arg13[%c0_72, %c0_73] : memref<2x128xf32, #tpu.memory_space<vmem>>, vector<2x128xf32>
    tpu.vector_store %arg13[%c0_72, %c0_73], %197 {strides = array<i32>} : memref<2x128xf32, #tpu.memory_space<vmem>>, vector<2x128xf32>,
    %199 = arith.index_cast %c4_i32 : i32 to index
    %c0_74 = arith.constant 0 : index
    %c0_75 = arith.constant 0 : index
    %200 = vector.load %arg14[%199, %c0_74, %c0_75] : memref<8x2x128xf32, #tpu.memory_space<vmem>>, vector<1x2x128xf32>
    %201 = vector.shape_cast %200 : vector<1x2x128xf32> to vector<2x128xf32>
    %202 = vector.shape_cast %197 : vector<2x128xf32> to vector<1x2x128xf32>
    tpu.vector_store %arg14[%199, %c0_74, %c0_75], %202 {strides = array<i32>} : memref<8x2x128xf32, #tpu.memory_space<vmem>>, vector<1x2x128xf32>,
    %c5_i32 = arith.constant 5 : i32
    %c0_76 = arith.constant 0 : index
    %c0_77 = arith.constant 0 : index
    %203 = vector.load %arg13[%c0_76, %c0_77] : memref<2x128xf32, #tpu.memory_space<vmem>>, vector<2x128xf32>
    %cst_78 = arith.constant dense<0.000000e+00> : vector<2x384xf32>
    %204 = tpu.matmul %203, %1, %cst_78 {dimension_numbers = #tpu.dot_dimension_numbers<[1], [0], [0], [1], [0, 0, 1, 1], [], []>} : vector<2x128xf32>, vector<128x384xf32>, vector<2x384xf32> -> vector<2x384xf32>
    %205 = vector.broadcast %3 : vector<1x384xf32> to vector<2x384xf32>
    %206 = arith.addf %204, %205 : vector<2x384xf32>
    %207 = arith.index_cast %c5_i32 : i32 to index
    %c0_79 = arith.constant 0 : index
    %c0_80 = arith.constant 0 : index
    %208 = vector.load %arg12[%207, %c0_79, %c0_80] : memref<8x2x384xf32, #tpu.memory_space<vmem>>, vector<1x2x384xf32>
    %209 = vector.shape_cast %208 : vector<1x2x384xf32> to vector<2x384xf32>
    %210 = vector.extract_strided_slice %209 {offsets = [0, 0], sizes = [2, 128], strides = [1, 1]} : vector<2x384xf32> to vector<2x128xf32>
    %211 = vector.extract_strided_slice %206 {offsets = [0, 0], sizes = [2, 128], strides = [1, 1]} : vector<2x384xf32> to vector<2x128xf32>
    %212 = arith.addf %210, %211 : vector<2x128xf32>
    %213 = arith.negf %212 : vector<2x128xf32>
    %214 = math.exp %213 : vector<2x128xf32>
    %cst_81 = arith.constant 1.000000e+00 : f32
    %215 = vector.broadcast %cst_81 : f32 to vector<2x128xf32>
    %216 = arith.addf %215, %214 : vector<2x128xf32>
    %217 = arith.divf %215, %216 : vector<2x128xf32>
    %218 = vector.extract_strided_slice %209 {offsets = [0, 128], sizes = [2, 128], strides = [1, 1]} : vector<2x384xf32> to vector<2x128xf32>
    %219 = vector.extract_strided_slice %206 {offsets = [0, 128], sizes = [2, 128], strides = [1, 1]} : vector<2x384xf32> to vector<2x128xf32>
    %220 = arith.addf %218, %219 : vector<2x128xf32>
    %221 = arith.negf %220 : vector<2x128xf32>
    %222 = math.exp %221 : vector<2x128xf32>
    %cst_82 = arith.constant 1.000000e+00 : f32
    %223 = vector.broadcast %cst_82 : f32 to vector<2x128xf32>
    %224 = arith.addf %223, %222 : vector<2x128xf32>
    %225 = arith.divf %223, %224 : vector<2x128xf32>
    %226 = vector.extract_strided_slice %209 {offsets = [0, 256], sizes = [2, 128], strides = [1, 1]} : vector<2x384xf32> to vector<2x128xf32>
    %227 = vector.extract_strided_slice %206 {offsets = [0, 256], sizes = [2, 128], strides = [1, 1]} : vector<2x384xf32> to vector<2x128xf32>
    %228 = arith.mulf %217, %227 : vector<2x128xf32>
    %229 = arith.addf %226, %228 : vector<2x128xf32>
    %230 = math.tanh %229 : vector<2x128xf32>
    %cst_83 = arith.constant 1.000000e+00 : f32
    %231 = vector.broadcast %cst_83 : f32 to vector<2x128xf32>
    %232 = arith.subf %231, %225 : vector<2x128xf32>
    %233 = arith.mulf %232, %230 : vector<2x128xf32>
    %234 = arith.mulf %225, %203 : vector<2x128xf32>
    %235 = arith.addf %233, %234 : vector<2x128xf32>
    %c0_84 = arith.constant 0 : index
    %c0_85 = arith.constant 0 : index
    %236 = vector.load %arg13[%c0_84, %c0_85] : memref<2x128xf32, #tpu.memory_space<vmem>>, vector<2x128xf32>
    tpu.vector_store %arg13[%c0_84, %c0_85], %235 {strides = array<i32>} : memref<2x128xf32, #tpu.memory_space<vmem>>, vector<2x128xf32>,
    %237 = arith.index_cast %c5_i32 : i32 to index
    %c0_86 = arith.constant 0 : index
    %c0_87 = arith.constant 0 : index
    %238 = vector.load %arg14[%237, %c0_86, %c0_87] : memref<8x2x128xf32, #tpu.memory_space<vmem>>, vector<1x2x128xf32>
    %239 = vector.shape_cast %238 : vector<1x2x128xf32> to vector<2x128xf32>
    %240 = vector.shape_cast %235 : vector<2x128xf32> to vector<1x2x128xf32>
    tpu.vector_store %arg14[%237, %c0_86, %c0_87], %240 {strides = array<i32>} : memref<8x2x128xf32, #tpu.memory_space<vmem>>, vector<1x2x128xf32>,
    %c6_i32 = arith.constant 6 : i32
    %c0_88 = arith.constant 0 : index
    %c0_89 = arith.constant 0 : index
    %241 = vector.load %arg13[%c0_88, %c0_89] : memref<2x128xf32, #tpu.memory_space<vmem>>, vector<2x128xf32>
    %cst_90 = arith.constant dense<0.000000e+00> : vector<2x384xf32>
    %242 = tpu.matmul %241, %1, %cst_90 {dimension_numbers = #tpu.dot_dimension_numbers<[1], [0], [0], [1], [0, 0, 1, 1], [], []>} : vector<2x128xf32>, vector<128x384xf32>, vector<2x384xf32> -> vector<2x384xf32>
    %243 = vector.broadcast %3 : vector<1x384xf32> to vector<2x384xf32>
    %244 = arith.addf %242, %243 : vector<2x384xf32>
    %245 = arith.index_cast %c6_i32 : i32 to index
    %c0_91 = arith.constant 0 : index
    %c0_92 = arith.constant 0 : index
    %246 = vector.load %arg12[%245, %c0_91, %c0_92] : memref<8x2x384xf32, #tpu.memory_space<vmem>>, vector<1x2x384xf32>
    %247 = vector.shape_cast %246 : vector<1x2x384xf32> to vector<2x384xf32>
    %248 = vector.extract_strided_slice %247 {offsets = [0, 0], sizes = [2, 128], strides = [1, 1]} : vector<2x384xf32> to vector<2x128xf32>
    %249 = vector.extract_strided_slice %244 {offsets = [0, 0], sizes = [2, 128], strides = [1, 1]} : vector<2x384xf32> to vector<2x128xf32>
    %250 = arith.addf %248, %249 : vector<2x128xf32>
    %251 = arith.negf %250 : vector<2x128xf32>
    %252 = math.exp %251 : vector<2x128xf32>
    %cst_93 = arith.constant 1.000000e+00 : f32
    %253 = vector.broadcast %cst_93 : f32 to vector<2x128xf32>
    %254 = arith.addf %253, %252 : vector<2x128xf32>
    %255 = arith.divf %253, %254 : vector<2x128xf32>
    %256 = vector.extract_strided_slice %247 {offsets = [0, 128], sizes = [2, 128], strides = [1, 1]} : vector<2x384xf32> to vector<2x128xf32>
    %257 = vector.extract_strided_slice %244 {offsets = [0, 128], sizes = [2, 128], strides = [1, 1]} : vector<2x384xf32> to vector<2x128xf32>
    %258 = arith.addf %256, %257 : vector<2x128xf32>
    %259 = arith.negf %258 : vector<2x128xf32>
    %260 = math.exp %259 : vector<2x128xf32>
    %cst_94 = arith.constant 1.000000e+00 : f32
    %261 = vector.broadcast %cst_94 : f32 to vector<2x128xf32>
    %262 = arith.addf %261, %260 : vector<2x128xf32>
    %263 = arith.divf %261, %262 : vector<2x128xf32>
    %264 = vector.extract_strided_slice %247 {offsets = [0, 256], sizes = [2, 128], strides = [1, 1]} : vector<2x384xf32> to vector<2x128xf32>
    %265 = vector.extract_strided_slice %244 {offsets = [0, 256], sizes = [2, 128], strides = [1, 1]} : vector<2x384xf32> to vector<2x128xf32>
    %266 = arith.mulf %255, %265 : vector<2x128xf32>
    %267 = arith.addf %264, %266 : vector<2x128xf32>
    %268 = math.tanh %267 : vector<2x128xf32>
    %cst_95 = arith.constant 1.000000e+00 : f32
    %269 = vector.broadcast %cst_95 : f32 to vector<2x128xf32>
    %270 = arith.subf %269, %263 : vector<2x128xf32>
    %271 = arith.mulf %270, %268 : vector<2x128xf32>
    %272 = arith.mulf %263, %241 : vector<2x128xf32>
    %273 = arith.addf %271, %272 : vector<2x128xf32>
    %c0_96 = arith.constant 0 : index
    %c0_97 = arith.constant 0 : index
    %274 = vector.load %arg13[%c0_96, %c0_97] : memref<2x128xf32, #tpu.memory_space<vmem>>, vector<2x128xf32>
    tpu.vector_store %arg13[%c0_96, %c0_97], %273 {strides = array<i32>} : memref<2x128xf32, #tpu.memory_space<vmem>>, vector<2x128xf32>,
    %275 = arith.index_cast %c6_i32 : i32 to index
    %c0_98 = arith.constant 0 : index
    %c0_99 = arith.constant 0 : index
    %276 = vector.load %arg14[%275, %c0_98, %c0_99] : memref<8x2x128xf32, #tpu.memory_space<vmem>>, vector<1x2x128xf32>
    %277 = vector.shape_cast %276 : vector<1x2x128xf32> to vector<2x128xf32>
    %278 = vector.shape_cast %273 : vector<2x128xf32> to vector<1x2x128xf32>
    tpu.vector_store %arg14[%275, %c0_98, %c0_99], %278 {strides = array<i32>} : memref<8x2x128xf32, #tpu.memory_space<vmem>>, vector<1x2x128xf32>,
    %c7_i32 = arith.constant 7 : i32
    %c0_100 = arith.constant 0 : index
    %c0_101 = arith.constant 0 : index
    %279 = vector.load %arg13[%c0_100, %c0_101] : memref<2x128xf32, #tpu.memory_space<vmem>>, vector<2x128xf32>
    %cst_102 = arith.constant dense<0.000000e+00> : vector<2x384xf32>
    %280 = tpu.matmul %279, %1, %cst_102 {dimension_numbers = #tpu.dot_dimension_numbers<[1], [0], [0], [1], [0, 0, 1, 1], [], []>} : vector<2x128xf32>, vector<128x384xf32>, vector<2x384xf32> -> vector<2x384xf32>
    %281 = vector.broadcast %3 : vector<1x384xf32> to vector<2x384xf32>
    %282 = arith.addf %280, %281 : vector<2x384xf32>
    %283 = arith.index_cast %c7_i32 : i32 to index
    %c0_103 = arith.constant 0 : index
    %c0_104 = arith.constant 0 : index
    %284 = vector.load %arg12[%283, %c0_103, %c0_104] : memref<8x2x384xf32, #tpu.memory_space<vmem>>, vector<1x2x384xf32>
    %285 = vector.shape_cast %284 : vector<1x2x384xf32> to vector<2x384xf32>
    %286 = vector.extract_strided_slice %285 {offsets = [0, 0], sizes = [2, 128], strides = [1, 1]} : vector<2x384xf32> to vector<2x128xf32>
    %287 = vector.extract_strided_slice %282 {offsets = [0, 0], sizes = [2, 128], strides = [1, 1]} : vector<2x384xf32> to vector<2x128xf32>
    %288 = arith.addf %286, %287 : vector<2x128xf32>
    %289 = arith.negf %288 : vector<2x128xf32>
    %290 = math.exp %289 : vector<2x128xf32>
    %cst_105 = arith.constant 1.000000e+00 : f32
    %291 = vector.broadcast %cst_105 : f32 to vector<2x128xf32>
    %292 = arith.addf %291, %290 : vector<2x128xf32>
    %293 = arith.divf %291, %292 : vector<2x128xf32>
    %294 = vector.extract_strided_slice %285 {offsets = [0, 128], sizes = [2, 128], strides = [1, 1]} : vector<2x384xf32> to vector<2x128xf32>
    %295 = vector.extract_strided_slice %282 {offsets = [0, 128], sizes = [2, 128], strides = [1, 1]} : vector<2x384xf32> to vector<2x128xf32>
    %296 = arith.addf %294, %295 : vector<2x128xf32>
    %297 = arith.negf %296 : vector<2x128xf32>
    %298 = math.exp %297 : vector<2x128xf32>
    %cst_106 = arith.constant 1.000000e+00 : f32
    %299 = vector.broadcast %cst_106 : f32 to vector<2x128xf32>
    %300 = arith.addf %299, %298 : vector<2x128xf32>
    %301 = arith.divf %299, %300 : vector<2x128xf32>
    %302 = vector.extract_strided_slice %285 {offsets = [0, 256], sizes = [2, 128], strides = [1, 1]} : vector<2x384xf32> to vector<2x128xf32>
    %303 = vector.extract_strided_slice %282 {offsets = [0, 256], sizes = [2, 128], strides = [1, 1]} : vector<2x384xf32> to vector<2x128xf32>
    %304 = arith.mulf %293, %303 : vector<2x128xf32>
    %305 = arith.addf %302, %304 : vector<2x128xf32>
    %306 = math.tanh %305 : vector<2x128xf32>
    %cst_107 = arith.constant 1.000000e+00 : f32
    %307 = vector.broadcast %cst_107 : f32 to vector<2x128xf32>
    %308 = arith.subf %307, %301 : vector<2x128xf32>
    %309 = arith.mulf %308, %306 : vector<2x128xf32>
    %310 = arith.mulf %301, %279 : vector<2x128xf32>
    %311 = arith.addf %309, %310 : vector<2x128xf32>
    %c0_108 = arith.constant 0 : index
    %c0_109 = arith.constant 0 : index
    %312 = vector.load %arg13[%c0_108, %c0_109] : memref<2x128xf32, #tpu.memory_space<vmem>>, vector<2x128xf32>
    tpu.vector_store %arg13[%c0_108, %c0_109], %311 {strides = array<i32>} : memref<2x128xf32, #tpu.memory_space<vmem>>, vector<2x128xf32>,
    %313 = arith.index_cast %c7_i32 : i32 to index
    %c0_110 = arith.constant 0 : index
    %c0_111 = arith.constant 0 : index
    %314 = vector.load %arg14[%313, %c0_110, %c0_111] : memref<8x2x128xf32, #tpu.memory_space<vmem>>, vector<1x2x128xf32>
    %315 = vector.shape_cast %314 : vector<1x2x128xf32> to vector<2x128xf32>
    %316 = vector.shape_cast %311 : vector<2x128xf32> to vector<1x2x128xf32>
    tpu.vector_store %arg14[%313, %c0_110, %c0_111], %316 {strides = array<i32>} : memref<8x2x128xf32, #tpu.memory_space<vmem>>, vector<1x2x128xf32>,
    %c8_i32 = arith.constant 8 : i32
    %c0_112 = arith.constant 0 : index
    %c0_113 = arith.constant 0 : index
    %317 = vector.load %arg5[%c0_112, %c0_113] : memref<128x384xf32, #tpu.memory_space<vmem>>, vector<128x384xf32>
    %c0_114 = arith.constant 0 : index
    %c0_115 = arith.constant 0 : index
    %318 = vector.load %arg6[%c0_114, %c0_115] : memref<128x384xf32, #tpu.memory_space<vmem>>, vector<128x384xf32>
    %c0_116 = arith.constant 0 : index
    %c0_117 = arith.constant 0 : index
    %319 = vector.load %arg7[%c0_116, %c0_117] : memref<1x384xf32, #tpu.memory_space<vmem>>, vector<1x384xf32>
    %c0_118 = arith.constant 0 : index
    %c0_119 = arith.constant 0 : index
    %320 = vector.load %arg8[%c0_118, %c0_119] : memref<1x384xf32, #tpu.memory_space<vmem>>, vector<1x384xf32>
    %c0_120 = arith.constant 0 : index
    %c0_121 = arith.constant 0 : index
    %c0_122 = arith.constant 0 : index
    %321 = vector.load %arg14[%c0_120, %c0_121, %c0_122] : memref<8x2x128xf32, #tpu.memory_space<vmem>>, vector<8x2x128xf32>
    %322 = vector.shape_cast %321 : vector<8x2x128xf32> to vector<16x128xf32>
    %cst_123 = arith.constant dense<0.000000e+00> : vector<16x384xf32>
    %323 = tpu.matmul %322, %317, %cst_123 {dimension_numbers = #tpu.dot_dimension_numbers<[1], [0], [0], [1], [0, 0, 1, 1], [], []>} : vector<16x128xf32>, vector<128x384xf32>, vector<16x384xf32> -> vector<16x384xf32>
    %324 = vector.broadcast %319 : vector<1x384xf32> to vector<16x384xf32>
    %325 = arith.addf %323, %324 : vector<16x384xf32>
    %326 = vector.shape_cast %325 : vector<16x384xf32> to vector<8x2x384xf32>
    %c0_124 = arith.constant 0 : index
    %c0_125 = arith.constant 0 : index
    %c0_126 = arith.constant 0 : index
    %327 = vector.load %arg12[%c0_124, %c0_125, %c0_126] : memref<8x2x384xf32, #tpu.memory_space<vmem>>, vector<8x2x384xf32>
    tpu.vector_store %arg12[%c0_124, %c0_125, %c0_126], %326 {strides = array<i32>} : memref<8x2x384xf32, #tpu.memory_space<vmem>>, vector<8x2x384xf32>,
    %cst_127 = arith.constant 0.000000e+00 : f32
    %328 = vector.broadcast %cst_127 : f32 to vector<2x128xf32>
    %c0_128 = arith.constant 0 : index
    %c0_129 = arith.constant 0 : index
    %329 = vector.load %arg13[%c0_128, %c0_129] : memref<2x128xf32, #tpu.memory_space<vmem>>, vector<2x128xf32>
    tpu.vector_store %arg13[%c0_128, %c0_129], %328 {strides = array<i32>} : memref<2x128xf32, #tpu.memory_space<vmem>>, vector<2x128xf32>,
    %c0_i32_130 = arith.constant 0 : i32
    %c0_131 = arith.constant 0 : index
    %c0_132 = arith.constant 0 : index
    %330 = vector.load %arg13[%c0_131, %c0_132] : memref<2x128xf32, #tpu.memory_space<vmem>>, vector<2x128xf32>
    %cst_133 = arith.constant dense<0.000000e+00> : vector<2x384xf32>
    %331 = tpu.matmul %330, %318, %cst_133 {dimension_numbers = #tpu.dot_dimension_numbers<[1], [0], [0], [1], [0, 0, 1, 1], [], []>} : vector<2x128xf32>, vector<128x384xf32>, vector<2x384xf32> -> vector<2x384xf32>
    %332 = vector.broadcast %320 : vector<1x384xf32> to vector<2x384xf32>
    %333 = arith.addf %331, %332 : vector<2x384xf32>
    %334 = arith.index_cast %c0_i32_130 : i32 to index
    %c0_134 = arith.constant 0 : index
    %c0_135 = arith.constant 0 : index
    %335 = vector.load %arg12[%334, %c0_134, %c0_135] : memref<8x2x384xf32, #tpu.memory_space<vmem>>, vector<1x2x384xf32>
    %336 = vector.shape_cast %335 : vector<1x2x384xf32> to vector<2x384xf32>
    %337 = vector.extract_strided_slice %336 {offsets = [0, 0], sizes = [2, 128], strides = [1, 1]} : vector<2x384xf32> to vector<2x128xf32>
    %338 = vector.extract_strided_slice %333 {offsets = [0, 0], sizes = [2, 128], strides = [1, 1]} : vector<2x384xf32> to vector<2x128xf32>
    %339 = arith.addf %337, %338 : vector<2x128xf32>
    %340 = arith.negf %339 : vector<2x128xf32>
    %341 = math.exp %340 : vector<2x128xf32>
    %cst_136 = arith.constant 1.000000e+00 : f32
    %342 = vector.broadcast %cst_136 : f32 to vector<2x128xf32>
    %343 = arith.addf %342, %341 : vector<2x128xf32>
    %344 = arith.divf %342, %343 : vector<2x128xf32>
    %345 = vector.extract_strided_slice %336 {offsets = [0, 128], sizes = [2, 128], strides = [1, 1]} : vector<2x384xf32> to vector<2x128xf32>
    %346 = vector.extract_strided_slice %333 {offsets = [0, 128], sizes = [2, 128], strides = [1, 1]} : vector<2x384xf32> to vector<2x128xf32>
    %347 = arith.addf %345, %346 : vector<2x128xf32>
    %348 = arith.negf %347 : vector<2x128xf32>
    %349 = math.exp %348 : vector<2x128xf32>
    %cst_137 = arith.constant 1.000000e+00 : f32
    %350 = vector.broadcast %cst_137 : f32 to vector<2x128xf32>
    %351 = arith.addf %350, %349 : vector<2x128xf32>
    %352 = arith.divf %350, %351 : vector<2x128xf32>
    %353 = vector.extract_strided_slice %336 {offsets = [0, 256], sizes = [2, 128], strides = [1, 1]} : vector<2x384xf32> to vector<2x128xf32>
    %354 = vector.extract_strided_slice %333 {offsets = [0, 256], sizes = [2, 128], strides = [1, 1]} : vector<2x384xf32> to vector<2x128xf32>
    %355 = arith.mulf %344, %354 : vector<2x128xf32>
    %356 = arith.addf %353, %355 : vector<2x128xf32>
    %357 = math.tanh %356 : vector<2x128xf32>
    %cst_138 = arith.constant 1.000000e+00 : f32
    %358 = vector.broadcast %cst_138 : f32 to vector<2x128xf32>
    %359 = arith.subf %358, %352 : vector<2x128xf32>
    %360 = arith.mulf %359, %357 : vector<2x128xf32>
    %361 = arith.mulf %352, %330 : vector<2x128xf32>
    %362 = arith.addf %360, %361 : vector<2x128xf32>
    %c0_139 = arith.constant 0 : index
    %c0_140 = arith.constant 0 : index
    %363 = vector.load %arg13[%c0_139, %c0_140] : memref<2x128xf32, #tpu.memory_space<vmem>>, vector<2x128xf32>
    tpu.vector_store %arg13[%c0_139, %c0_140], %362 {strides = array<i32>} : memref<2x128xf32, #tpu.memory_space<vmem>>, vector<2x128xf32>,
    %c1_i32_141 = arith.constant 1 : i32
    %c0_142 = arith.constant 0 : index
    %c0_143 = arith.constant 0 : index
    %364 = vector.load %arg13[%c0_142, %c0_143] : memref<2x128xf32, #tpu.memory_space<vmem>>, vector<2x128xf32>
    %cst_144 = arith.constant dense<0.000000e+00> : vector<2x384xf32>
    %365 = tpu.matmul %364, %318, %cst_144 {dimension_numbers = #tpu.dot_dimension_numbers<[1], [0], [0], [1], [0, 0, 1, 1], [], []>} : vector<2x128xf32>, vector<128x384xf32>, vector<2x384xf32> -> vector<2x384xf32>
    %366 = vector.broadcast %320 : vector<1x384xf32> to vector<2x384xf32>
    %367 = arith.addf %365, %366 : vector<2x384xf32>
    %368 = arith.index_cast %c1_i32_141 : i32 to index
    %c0_145 = arith.constant 0 : index
    %c0_146 = arith.constant 0 : index
    %369 = vector.load %arg12[%368, %c0_145, %c0_146] : memref<8x2x384xf32, #tpu.memory_space<vmem>>, vector<1x2x384xf32>
    %370 = vector.shape_cast %369 : vector<1x2x384xf32> to vector<2x384xf32>
    %371 = vector.extract_strided_slice %370 {offsets = [0, 0], sizes = [2, 128], strides = [1, 1]} : vector<2x384xf32> to vector<2x128xf32>
    %372 = vector.extract_strided_slice %367 {offsets = [0, 0], sizes = [2, 128], strides = [1, 1]} : vector<2x384xf32> to vector<2x128xf32>
    %373 = arith.addf %371, %372 : vector<2x128xf32>
    %374 = arith.negf %373 : vector<2x128xf32>
    %375 = math.exp %374 : vector<2x128xf32>
    %cst_147 = arith.constant 1.000000e+00 : f32
    %376 = vector.broadcast %cst_147 : f32 to vector<2x128xf32>
    %377 = arith.addf %376, %375 : vector<2x128xf32>
    %378 = arith.divf %376, %377 : vector<2x128xf32>
    %379 = vector.extract_strided_slice %370 {offsets = [0, 128], sizes = [2, 128], strides = [1, 1]} : vector<2x384xf32> to vector<2x128xf32>
    %380 = vector.extract_strided_slice %367 {offsets = [0, 128], sizes = [2, 128], strides = [1, 1]} : vector<2x384xf32> to vector<2x128xf32>
    %381 = arith.addf %379, %380 : vector<2x128xf32>
    %382 = arith.negf %381 : vector<2x128xf32>
    %383 = math.exp %382 : vector<2x128xf32>
    %cst_148 = arith.constant 1.000000e+00 : f32
    %384 = vector.broadcast %cst_148 : f32 to vector<2x128xf32>
    %385 = arith.addf %384, %383 : vector<2x128xf32>
    %386 = arith.divf %384, %385 : vector<2x128xf32>
    %387 = vector.extract_strided_slice %370 {offsets = [0, 256], sizes = [2, 128], strides = [1, 1]} : vector<2x384xf32> to vector<2x128xf32>
    %388 = vector.extract_strided_slice %367 {offsets = [0, 256], sizes = [2, 128], strides = [1, 1]} : vector<2x384xf32> to vector<2x128xf32>
    %389 = arith.mulf %378, %388 : vector<2x128xf32>
    %390 = arith.addf %387, %389 : vector<2x128xf32>
    %391 = math.tanh %390 : vector<2x128xf32>
    %cst_149 = arith.constant 1.000000e+00 : f32
    %392 = vector.broadcast %cst_149 : f32 to vector<2x128xf32>
    %393 = arith.subf %392, %386 : vector<2x128xf32>
    %394 = arith.mulf %393, %391 : vector<2x128xf32>
    %395 = arith.mulf %386, %364 : vector<2x128xf32>
    %396 = arith.addf %394, %395 : vector<2x128xf32>
    %c0_150 = arith.constant 0 : index
    %c0_151 = arith.constant 0 : index
    %397 = vector.load %arg13[%c0_150, %c0_151] : memref<2x128xf32, #tpu.memory_space<vmem>>, vector<2x128xf32>
    tpu.vector_store %arg13[%c0_150, %c0_151], %396 {strides = array<i32>} : memref<2x128xf32, #tpu.memory_space<vmem>>, vector<2x128xf32>,
    %c2_i32_152 = arith.constant 2 : i32
    %c0_153 = arith.constant 0 : index
    %c0_154 = arith.constant 0 : index
    %398 = vector.load %arg13[%c0_153, %c0_154] : memref<2x128xf32, #tpu.memory_space<vmem>>, vector<2x128xf32>
    %cst_155 = arith.constant dense<0.000000e+00> : vector<2x384xf32>
    %399 = tpu.matmul %398, %318, %cst_155 {dimension_numbers = #tpu.dot_dimension_numbers<[1], [0], [0], [1], [0, 0, 1, 1], [], []>} : vector<2x128xf32>, vector<128x384xf32>, vector<2x384xf32> -> vector<2x384xf32>
    %400 = vector.broadcast %320 : vector<1x384xf32> to vector<2x384xf32>
    %401 = arith.addf %399, %400 : vector<2x384xf32>
    %402 = arith.index_cast %c2_i32_152 : i32 to index
    %c0_156 = arith.constant 0 : index
    %c0_157 = arith.constant 0 : index
    %403 = vector.load %arg12[%402, %c0_156, %c0_157] : memref<8x2x384xf32, #tpu.memory_space<vmem>>, vector<1x2x384xf32>
    %404 = vector.shape_cast %403 : vector<1x2x384xf32> to vector<2x384xf32>
    %405 = vector.extract_strided_slice %404 {offsets = [0, 0], sizes = [2, 128], strides = [1, 1]} : vector<2x384xf32> to vector<2x128xf32>
    %406 = vector.extract_strided_slice %401 {offsets = [0, 0], sizes = [2, 128], strides = [1, 1]} : vector<2x384xf32> to vector<2x128xf32>
    %407 = arith.addf %405, %406 : vector<2x128xf32>
    %408 = arith.negf %407 : vector<2x128xf32>
    %409 = math.exp %408 : vector<2x128xf32>
    %cst_158 = arith.constant 1.000000e+00 : f32
    %410 = vector.broadcast %cst_158 : f32 to vector<2x128xf32>
    %411 = arith.addf %410, %409 : vector<2x128xf32>
    %412 = arith.divf %410, %411 : vector<2x128xf32>
    %413 = vector.extract_strided_slice %404 {offsets = [0, 128], sizes = [2, 128], strides = [1, 1]} : vector<2x384xf32> to vector<2x128xf32>
    %414 = vector.extract_strided_slice %401 {offsets = [0, 128], sizes = [2, 128], strides = [1, 1]} : vector<2x384xf32> to vector<2x128xf32>
    %415 = arith.addf %413, %414 : vector<2x128xf32>
    %416 = arith.negf %415 : vector<2x128xf32>
    %417 = math.exp %416 : vector<2x128xf32>
    %cst_159 = arith.constant 1.000000e+00 : f32
    %418 = vector.broadcast %cst_159 : f32 to vector<2x128xf32>
    %419 = arith.addf %418, %417 : vector<2x128xf32>
    %420 = arith.divf %418, %419 : vector<2x128xf32>
    %421 = vector.extract_strided_slice %404 {offsets = [0, 256], sizes = [2, 128], strides = [1, 1]} : vector<2x384xf32> to vector<2x128xf32>
    %422 = vector.extract_strided_slice %401 {offsets = [0, 256], sizes = [2, 128], strides = [1, 1]} : vector<2x384xf32> to vector<2x128xf32>
    %423 = arith.mulf %412, %422 : vector<2x128xf32>
    %424 = arith.addf %421, %423 : vector<2x128xf32>
    %425 = math.tanh %424 : vector<2x128xf32>
    %cst_160 = arith.constant 1.000000e+00 : f32
    %426 = vector.broadcast %cst_160 : f32 to vector<2x128xf32>
    %427 = arith.subf %426, %420 : vector<2x128xf32>
    %428 = arith.mulf %427, %425 : vector<2x128xf32>
    %429 = arith.mulf %420, %398 : vector<2x128xf32>
    %430 = arith.addf %428, %429 : vector<2x128xf32>
    %c0_161 = arith.constant 0 : index
    %c0_162 = arith.constant 0 : index
    %431 = vector.load %arg13[%c0_161, %c0_162] : memref<2x128xf32, #tpu.memory_space<vmem>>, vector<2x128xf32>
    tpu.vector_store %arg13[%c0_161, %c0_162], %430 {strides = array<i32>} : memref<2x128xf32, #tpu.memory_space<vmem>>, vector<2x128xf32>,
    %c3_i32_163 = arith.constant 3 : i32
    %c0_164 = arith.constant 0 : index
    %c0_165 = arith.constant 0 : index
    %432 = vector.load %arg13[%c0_164, %c0_165] : memref<2x128xf32, #tpu.memory_space<vmem>>, vector<2x128xf32>
    %cst_166 = arith.constant dense<0.000000e+00> : vector<2x384xf32>
    %433 = tpu.matmul %432, %318, %cst_166 {dimension_numbers = #tpu.dot_dimension_numbers<[1], [0], [0], [1], [0, 0, 1, 1], [], []>} : vector<2x128xf32>, vector<128x384xf32>, vector<2x384xf32> -> vector<2x384xf32>
    %434 = vector.broadcast %320 : vector<1x384xf32> to vector<2x384xf32>
    %435 = arith.addf %433, %434 : vector<2x384xf32>
    %436 = arith.index_cast %c3_i32_163 : i32 to index
    %c0_167 = arith.constant 0 : index
    %c0_168 = arith.constant 0 : index
    %437 = vector.load %arg12[%436, %c0_167, %c0_168] : memref<8x2x384xf32, #tpu.memory_space<vmem>>, vector<1x2x384xf32>
    %438 = vector.shape_cast %437 : vector<1x2x384xf32> to vector<2x384xf32>
    %439 = vector.extract_strided_slice %438 {offsets = [0, 0], sizes = [2, 128], strides = [1, 1]} : vector<2x384xf32> to vector<2x128xf32>
    %440 = vector.extract_strided_slice %435 {offsets = [0, 0], sizes = [2, 128], strides = [1, 1]} : vector<2x384xf32> to vector<2x128xf32>
    %441 = arith.addf %439, %440 : vector<2x128xf32>
    %442 = arith.negf %441 : vector<2x128xf32>
    %443 = math.exp %442 : vector<2x128xf32>
    %cst_169 = arith.constant 1.000000e+00 : f32
    %444 = vector.broadcast %cst_169 : f32 to vector<2x128xf32>
    %445 = arith.addf %444, %443 : vector<2x128xf32>
    %446 = arith.divf %444, %445 : vector<2x128xf32>
    %447 = vector.extract_strided_slice %438 {offsets = [0, 128], sizes = [2, 128], strides = [1, 1]} : vector<2x384xf32> to vector<2x128xf32>
    %448 = vector.extract_strided_slice %435 {offsets = [0, 128], sizes = [2, 128], strides = [1, 1]} : vector<2x384xf32> to vector<2x128xf32>
    %449 = arith.addf %447, %448 : vector<2x128xf32>
    %450 = arith.negf %449 : vector<2x128xf32>
    %451 = math.exp %450 : vector<2x128xf32>
    %cst_170 = arith.constant 1.000000e+00 : f32
    %452 = vector.broadcast %cst_170 : f32 to vector<2x128xf32>
    %453 = arith.addf %452, %451 : vector<2x128xf32>
    %454 = arith.divf %452, %453 : vector<2x128xf32>
    %455 = vector.extract_strided_slice %438 {offsets = [0, 256], sizes = [2, 128], strides = [1, 1]} : vector<2x384xf32> to vector<2x128xf32>
    %456 = vector.extract_strided_slice %435 {offsets = [0, 256], sizes = [2, 128], strides = [1, 1]} : vector<2x384xf32> to vector<2x128xf32>
    %457 = arith.mulf %446, %456 : vector<2x128xf32>
    %458 = arith.addf %455, %457 : vector<2x128xf32>
    %459 = math.tanh %458 : vector<2x128xf32>
    %cst_171 = arith.constant 1.000000e+00 : f32
    %460 = vector.broadcast %cst_171 : f32 to vector<2x128xf32>
    %461 = arith.subf %460, %454 : vector<2x128xf32>
    %462 = arith.mulf %461, %459 : vector<2x128xf32>
    %463 = arith.mulf %454, %432 : vector<2x128xf32>
    %464 = arith.addf %462, %463 : vector<2x128xf32>
    %c0_172 = arith.constant 0 : index
    %c0_173 = arith.constant 0 : index
    %465 = vector.load %arg13[%c0_172, %c0_173] : memref<2x128xf32, #tpu.memory_space<vmem>>, vector<2x128xf32>
    tpu.vector_store %arg13[%c0_172, %c0_173], %464 {strides = array<i32>} : memref<2x128xf32, #tpu.memory_space<vmem>>, vector<2x128xf32>,
    %c4_i32_174 = arith.constant 4 : i32
    %c0_175 = arith.constant 0 : index
    %c0_176 = arith.constant 0 : index
    %466 = vector.load %arg13[%c0_175, %c0_176] : memref<2x128xf32, #tpu.memory_space<vmem>>, vector<2x128xf32>
    %cst_177 = arith.constant dense<0.000000e+00> : vector<2x384xf32>
    %467 = tpu.matmul %466, %318, %cst_177 {dimension_numbers = #tpu.dot_dimension_numbers<[1], [0], [0], [1], [0, 0, 1, 1], [], []>} : vector<2x128xf32>, vector<128x384xf32>, vector<2x384xf32> -> vector<2x384xf32>
    %468 = vector.broadcast %320 : vector<1x384xf32> to vector<2x384xf32>
    %469 = arith.addf %467, %468 : vector<2x384xf32>
    %470 = arith.index_cast %c4_i32_174 : i32 to index
    %c0_178 = arith.constant 0 : index
    %c0_179 = arith.constant 0 : index
    %471 = vector.load %arg12[%470, %c0_178, %c0_179] : memref<8x2x384xf32, #tpu.memory_space<vmem>>, vector<1x2x384xf32>
    %472 = vector.shape_cast %471 : vector<1x2x384xf32> to vector<2x384xf32>
    %473 = vector.extract_strided_slice %472 {offsets = [0, 0], sizes = [2, 128], strides = [1, 1]} : vector<2x384xf32> to vector<2x128xf32>
    %474 = vector.extract_strided_slice %469 {offsets = [0, 0], sizes = [2, 128], strides = [1, 1]} : vector<2x384xf32> to vector<2x128xf32>
    %475 = arith.addf %473, %474 : vector<2x128xf32>
    %476 = arith.negf %475 : vector<2x128xf32>
    %477 = math.exp %476 : vector<2x128xf32>
    %cst_180 = arith.constant 1.000000e+00 : f32
    %478 = vector.broadcast %cst_180 : f32 to vector<2x128xf32>
    %479 = arith.addf %478, %477 : vector<2x128xf32>
    %480 = arith.divf %478, %479 : vector<2x128xf32>
    %481 = vector.extract_strided_slice %472 {offsets = [0, 128], sizes = [2, 128], strides = [1, 1]} : vector<2x384xf32> to vector<2x128xf32>
    %482 = vector.extract_strided_slice %469 {offsets = [0, 128], sizes = [2, 128], strides = [1, 1]} : vector<2x384xf32> to vector<2x128xf32>
    %483 = arith.addf %481, %482 : vector<2x128xf32>
    %484 = arith.negf %483 : vector<2x128xf32>
    %485 = math.exp %484 : vector<2x128xf32>
    %cst_181 = arith.constant 1.000000e+00 : f32
    %486 = vector.broadcast %cst_181 : f32 to vector<2x128xf32>
    %487 = arith.addf %486, %485 : vector<2x128xf32>
    %488 = arith.divf %486, %487 : vector<2x128xf32>
    %489 = vector.extract_strided_slice %472 {offsets = [0, 256], sizes = [2, 128], strides = [1, 1]} : vector<2x384xf32> to vector<2x128xf32>
    %490 = vector.extract_strided_slice %469 {offsets = [0, 256], sizes = [2, 128], strides = [1, 1]} : vector<2x384xf32> to vector<2x128xf32>
    %491 = arith.mulf %480, %490 : vector<2x128xf32>
    %492 = arith.addf %489, %491 : vector<2x128xf32>
    %493 = math.tanh %492 : vector<2x128xf32>
    %cst_182 = arith.constant 1.000000e+00 : f32
    %494 = vector.broadcast %cst_182 : f32 to vector<2x128xf32>
    %495 = arith.subf %494, %488 : vector<2x128xf32>
    %496 = arith.mulf %495, %493 : vector<2x128xf32>
    %497 = arith.mulf %488, %466 : vector<2x128xf32>
    %498 = arith.addf %496, %497 : vector<2x128xf32>
    %c0_183 = arith.constant 0 : index
    %c0_184 = arith.constant 0 : index
    %499 = vector.load %arg13[%c0_183, %c0_184] : memref<2x128xf32, #tpu.memory_space<vmem>>, vector<2x128xf32>
    tpu.vector_store %arg13[%c0_183, %c0_184], %498 {strides = array<i32>} : memref<2x128xf32, #tpu.memory_space<vmem>>, vector<2x128xf32>,
    %c5_i32_185 = arith.constant 5 : i32
    %c0_186 = arith.constant 0 : index
    %c0_187 = arith.constant 0 : index
    %500 = vector.load %arg13[%c0_186, %c0_187] : memref<2x128xf32, #tpu.memory_space<vmem>>, vector<2x128xf32>
    %cst_188 = arith.constant dense<0.000000e+00> : vector<2x384xf32>
    %501 = tpu.matmul %500, %318, %cst_188 {dimension_numbers = #tpu.dot_dimension_numbers<[1], [0], [0], [1], [0, 0, 1, 1], [], []>} : vector<2x128xf32>, vector<128x384xf32>, vector<2x384xf32> -> vector<2x384xf32>
    %502 = vector.broadcast %320 : vector<1x384xf32> to vector<2x384xf32>
    %503 = arith.addf %501, %502 : vector<2x384xf32>
    %504 = arith.index_cast %c5_i32_185 : i32 to index
    %c0_189 = arith.constant 0 : index
    %c0_190 = arith.constant 0 : index
    %505 = vector.load %arg12[%504, %c0_189, %c0_190] : memref<8x2x384xf32, #tpu.memory_space<vmem>>, vector<1x2x384xf32>
    %506 = vector.shape_cast %505 : vector<1x2x384xf32> to vector<2x384xf32>
    %507 = vector.extract_strided_slice %506 {offsets = [0, 0], sizes = [2, 128], strides = [1, 1]} : vector<2x384xf32> to vector<2x128xf32>
    %508 = vector.extract_strided_slice %503 {offsets = [0, 0], sizes = [2, 128], strides = [1, 1]} : vector<2x384xf32> to vector<2x128xf32>
    %509 = arith.addf %507, %508 : vector<2x128xf32>
    %510 = arith.negf %509 : vector<2x128xf32>
    %511 = math.exp %510 : vector<2x128xf32>
    %cst_191 = arith.constant 1.000000e+00 : f32
    %512 = vector.broadcast %cst_191 : f32 to vector<2x128xf32>
    %513 = arith.addf %512, %511 : vector<2x128xf32>
    %514 = arith.divf %512, %513 : vector<2x128xf32>
    %515 = vector.extract_strided_slice %506 {offsets = [0, 128], sizes = [2, 128], strides = [1, 1]} : vector<2x384xf32> to vector<2x128xf32>
    %516 = vector.extract_strided_slice %503 {offsets = [0, 128], sizes = [2, 128], strides = [1, 1]} : vector<2x384xf32> to vector<2x128xf32>
    %517 = arith.addf %515, %516 : vector<2x128xf32>
    %518 = arith.negf %517 : vector<2x128xf32>
    %519 = math.exp %518 : vector<2x128xf32>
    %cst_192 = arith.constant 1.000000e+00 : f32
    %520 = vector.broadcast %cst_192 : f32 to vector<2x128xf32>
    %521 = arith.addf %520, %519 : vector<2x128xf32>
    %522 = arith.divf %520, %521 : vector<2x128xf32>
    %523 = vector.extract_strided_slice %506 {offsets = [0, 256], sizes = [2, 128], strides = [1, 1]} : vector<2x384xf32> to vector<2x128xf32>
    %524 = vector.extract_strided_slice %503 {offsets = [0, 256], sizes = [2, 128], strides = [1, 1]} : vector<2x384xf32> to vector<2x128xf32>
    %525 = arith.mulf %514, %524 : vector<2x128xf32>
    %526 = arith.addf %523, %525 : vector<2x128xf32>
    %527 = math.tanh %526 : vector<2x128xf32>
    %cst_193 = arith.constant 1.000000e+00 : f32
    %528 = vector.broadcast %cst_193 : f32 to vector<2x128xf32>
    %529 = arith.subf %528, %522 : vector<2x128xf32>
    %530 = arith.mulf %529, %527 : vector<2x128xf32>
    %531 = arith.mulf %522, %500 : vector<2x128xf32>
    %532 = arith.addf %530, %531 : vector<2x128xf32>
    %c0_194 = arith.constant 0 : index
    %c0_195 = arith.constant 0 : index
    %533 = vector.load %arg13[%c0_194, %c0_195] : memref<2x128xf32, #tpu.memory_space<vmem>>, vector<2x128xf32>
    tpu.vector_store %arg13[%c0_194, %c0_195], %532 {strides = array<i32>} : memref<2x128xf32, #tpu.memory_space<vmem>>, vector<2x128xf32>,
    %c6_i32_196 = arith.constant 6 : i32
    %c0_197 = arith.constant 0 : index
    %c0_198 = arith.constant 0 : index
    %534 = vector.load %arg13[%c0_197, %c0_198] : memref<2x128xf32, #tpu.memory_space<vmem>>, vector<2x128xf32>
    %cst_199 = arith.constant dense<0.000000e+00> : vector<2x384xf32>
    %535 = tpu.matmul %534, %318, %cst_199 {dimension_numbers = #tpu.dot_dimension_numbers<[1], [0], [0], [1], [0, 0, 1, 1], [], []>} : vector<2x128xf32>, vector<128x384xf32>, vector<2x384xf32> -> vector<2x384xf32>
    %536 = vector.broadcast %320 : vector<1x384xf32> to vector<2x384xf32>
    %537 = arith.addf %535, %536 : vector<2x384xf32>
    %538 = arith.index_cast %c6_i32_196 : i32 to index
    %c0_200 = arith.constant 0 : index
    %c0_201 = arith.constant 0 : index
    %539 = vector.load %arg12[%538, %c0_200, %c0_201] : memref<8x2x384xf32, #tpu.memory_space<vmem>>, vector<1x2x384xf32>
    %540 = vector.shape_cast %539 : vector<1x2x384xf32> to vector<2x384xf32>
    %541 = vector.extract_strided_slice %540 {offsets = [0, 0], sizes = [2, 128], strides = [1, 1]} : vector<2x384xf32> to vector<2x128xf32>
    %542 = vector.extract_strided_slice %537 {offsets = [0, 0], sizes = [2, 128], strides = [1, 1]} : vector<2x384xf32> to vector<2x128xf32>
    %543 = arith.addf %541, %542 : vector<2x128xf32>
    %544 = arith.negf %543 : vector<2x128xf32>
    %545 = math.exp %544 : vector<2x128xf32>
    %cst_202 = arith.constant 1.000000e+00 : f32
    %546 = vector.broadcast %cst_202 : f32 to vector<2x128xf32>
    %547 = arith.addf %546, %545 : vector<2x128xf32>
    %548 = arith.divf %546, %547 : vector<2x128xf32>
    %549 = vector.extract_strided_slice %540 {offsets = [0, 128], sizes = [2, 128], strides = [1, 1]} : vector<2x384xf32> to vector<2x128xf32>
    %550 = vector.extract_strided_slice %537 {offsets = [0, 128], sizes = [2, 128], strides = [1, 1]} : vector<2x384xf32> to vector<2x128xf32>
    %551 = arith.addf %549, %550 : vector<2x128xf32>
    %552 = arith.negf %551 : vector<2x128xf32>
    %553 = math.exp %552 : vector<2x128xf32>
    %cst_203 = arith.constant 1.000000e+00 : f32
    %554 = vector.broadcast %cst_203 : f32 to vector<2x128xf32>
    %555 = arith.addf %554, %553 : vector<2x128xf32>
    %556 = arith.divf %554, %555 : vector<2x128xf32>
    %557 = vector.extract_strided_slice %540 {offsets = [0, 256], sizes = [2, 128], strides = [1, 1]} : vector<2x384xf32> to vector<2x128xf32>
    %558 = vector.extract_strided_slice %537 {offsets = [0, 256], sizes = [2, 128], strides = [1, 1]} : vector<2x384xf32> to vector<2x128xf32>
    %559 = arith.mulf %548, %558 : vector<2x128xf32>
    %560 = arith.addf %557, %559 : vector<2x128xf32>
    %561 = math.tanh %560 : vector<2x128xf32>
    %cst_204 = arith.constant 1.000000e+00 : f32
    %562 = vector.broadcast %cst_204 : f32 to vector<2x128xf32>
    %563 = arith.subf %562, %556 : vector<2x128xf32>
    %564 = arith.mulf %563, %561 : vector<2x128xf32>
    %565 = arith.mulf %556, %534 : vector<2x128xf32>
    %566 = arith.addf %564, %565 : vector<2x128xf32>
    %c0_205 = arith.constant 0 : index
    %c0_206 = arith.constant 0 : index
    %567 = vector.load %arg13[%c0_205, %c0_206] : memref<2x128xf32, #tpu.memory_space<vmem>>, vector<2x128xf32>
    tpu.vector_store %arg13[%c0_205, %c0_206], %566 {strides = array<i32>} : memref<2x128xf32, #tpu.memory_space<vmem>>, vector<2x128xf32>,
    %c7_i32_207 = arith.constant 7 : i32
    %c0_208 = arith.constant 0 : index
    %c0_209 = arith.constant 0 : index
    %568 = vector.load %arg13[%c0_208, %c0_209] : memref<2x128xf32, #tpu.memory_space<vmem>>, vector<2x128xf32>
    %cst_210 = arith.constant dense<0.000000e+00> : vector<2x384xf32>
    %569 = tpu.matmul %568, %318, %cst_210 {dimension_numbers = #tpu.dot_dimension_numbers<[1], [0], [0], [1], [0, 0, 1, 1], [], []>} : vector<2x128xf32>, vector<128x384xf32>, vector<2x384xf32> -> vector<2x384xf32>
    %570 = vector.broadcast %320 : vector<1x384xf32> to vector<2x384xf32>
    %571 = arith.addf %569, %570 : vector<2x384xf32>
    %572 = arith.index_cast %c7_i32_207 : i32 to index
    %c0_211 = arith.constant 0 : index
    %c0_212 = arith.constant 0 : index
    %573 = vector.load %arg12[%572, %c0_211, %c0_212] : memref<8x2x384xf32, #tpu.memory_space<vmem>>, vector<1x2x384xf32>
    %574 = vector.shape_cast %573 : vector<1x2x384xf32> to vector<2x384xf32>
    %575 = vector.extract_strided_slice %574 {offsets = [0, 0], sizes = [2, 128], strides = [1, 1]} : vector<2x384xf32> to vector<2x128xf32>
    %576 = vector.extract_strided_slice %571 {offsets = [0, 0], sizes = [2, 128], strides = [1, 1]} : vector<2x384xf32> to vector<2x128xf32>
    %577 = arith.addf %575, %576 : vector<2x128xf32>
    %578 = arith.negf %577 : vector<2x128xf32>
    %579 = math.exp %578 : vector<2x128xf32>
    %cst_213 = arith.constant 1.000000e+00 : f32
    %580 = vector.broadcast %cst_213 : f32 to vector<2x128xf32>
    %581 = arith.addf %580, %579 : vector<2x128xf32>
    %582 = arith.divf %580, %581 : vector<2x128xf32>
    %583 = vector.extract_strided_slice %574 {offsets = [0, 128], sizes = [2, 128], strides = [1, 1]} : vector<2x384xf32> to vector<2x128xf32>
    %584 = vector.extract_strided_slice %571 {offsets = [0, 128], sizes = [2, 128], strides = [1, 1]} : vector<2x384xf32> to vector<2x128xf32>
    %585 = arith.addf %583, %584 : vector<2x128xf32>
    %586 = arith.negf %585 : vector<2x128xf32>
    %587 = math.exp %586 : vector<2x128xf32>
    %cst_214 = arith.constant 1.000000e+00 : f32
    %588 = vector.broadcast %cst_214 : f32 to vector<2x128xf32>
    %589 = arith.addf %588, %587 : vector<2x128xf32>
    %590 = arith.divf %588, %589 : vector<2x128xf32>
    %591 = vector.extract_strided_slice %574 {offsets = [0, 256], sizes = [2, 128], strides = [1, 1]} : vector<2x384xf32> to vector<2x128xf32>
    %592 = vector.extract_strided_slice %571 {offsets = [0, 256], sizes = [2, 128], strides = [1, 1]} : vector<2x384xf32> to vector<2x128xf32>
    %593 = arith.mulf %582, %592 : vector<2x128xf32>
    %594 = arith.addf %591, %593 : vector<2x128xf32>
    %595 = math.tanh %594 : vector<2x128xf32>
    %cst_215 = arith.constant 1.000000e+00 : f32
    %596 = vector.broadcast %cst_215 : f32 to vector<2x128xf32>
    %597 = arith.subf %596, %590 : vector<2x128xf32>
    %598 = arith.mulf %597, %595 : vector<2x128xf32>
    %599 = arith.mulf %590, %568 : vector<2x128xf32>
    %600 = arith.addf %598, %599 : vector<2x128xf32>
    %c0_216 = arith.constant 0 : index
    %c0_217 = arith.constant 0 : index
    %601 = vector.load %arg13[%c0_216, %c0_217] : memref<2x128xf32, #tpu.memory_space<vmem>>, vector<2x128xf32>
    tpu.vector_store %arg13[%c0_216, %c0_217], %600 {strides = array<i32>} : memref<2x128xf32, #tpu.memory_space<vmem>>, vector<2x128xf32>,
    %c8_i32_218 = arith.constant 8 : i32
    %c0_219 = arith.constant 0 : index
    %c0_220 = arith.constant 0 : index
    %602 = vector.load %arg13[%c0_219, %c0_220] : memref<2x128xf32, #tpu.memory_space<vmem>>, vector<2x128xf32>
    %c0_221 = arith.constant 0 : index
    %c0_222 = arith.constant 0 : index
    %603 = vector.load %arg9[%c0_221, %c0_222] : memref<128x128xf32, #tpu.memory_space<vmem>>, vector<128x128xf32>
    %cst_223 = arith.constant dense<0.000000e+00> : vector<2x128xf32>
    %604 = tpu.matmul %602, %603, %cst_223 {dimension_numbers = #tpu.dot_dimension_numbers<[1], [0], [0], [1], [0, 0, 1, 1], [], []>} : vector<2x128xf32>, vector<128x128xf32>, vector<2x128xf32> -> vector<2x128xf32>
    %c0_224 = arith.constant 0 : index
    %c0_225 = arith.constant 0 : index
    %605 = vector.load %arg10[%c0_224, %c0_225] : memref<1x128xf32, #tpu.memory_space<vmem>>, vector<1x128xf32>
    %606 = vector.broadcast %605 : vector<1x128xf32> to vector<2x128xf32>
    %607 = arith.addf %604, %606 : vector<2x128xf32>
    %c0_226 = arith.constant 0 : index
    %c0_227 = arith.constant 0 : index
    %608 = vector.load %arg11[%c0_226, %c0_227] : memref<2x128xf32, #tpu.memory_space<vmem>>, vector<2x128xf32>
    tpu.vector_store %arg11[%c0_226, %c0_227], %607 {strides = array<i32>} : memref<2x128xf32, #tpu.memory_space<vmem>>, vector<2x128xf32>,
    return
  }
}

</mosaic_0001>

<bundles_post_ra>
// kernel: gru_model_forward.1
= control target key start
LH: loop header
LB: loop body
LE: loop exit
PB: predicated region body
PF: predicated region fallthrough
CT: control target
= control target key end

     0   :  { %16 = vsyncpa [#allocation6], 0  ;;  %s7171_s0 = inlined_call_operand.vmem [shape: f32[8,2,16], index: 0, kind: input, shape index: {}]   ;;  %s7172_s1 = inlined_call_operand.hbm [shape: f32[16,384], index: 1, kind: input, shape index: {}]   ;;  %s7173_s2 = inlined_call_operand.hbm [shape: f32[128,384], index: 2, kind: input, shape index: {}]   ;;  %s7174_s3 = inlined_call_operand.vmem [shape: f32[1,384], index: 3, kind: input, shape index: {}]   ;;  %s7175_s4 = inlined_call_operand.vmem [shape: f32[1,384], index: 4, kind: input, shape index: {}]   ;;  %s7176_s5 = inlined_call_operand.hbm [shape: f32[128,384], index: 5, kind: input, shape index: {}]   ;;  %s7177_s6 = inlined_call_operand.hbm [shape: f32[128,384], index: 6, kind: input, shape index: {}]   ;;  %s7178_s7 = inlined_call_operand.vmem [shape: f32[1,384], index: 7, kind: input, shape index: {}]   ;;  %s7179_s8 = inlined_call_operand.vmem [shape: f32[1,384], index: 8, kind: input, shape index: {}]   ;;  %s7180_s9 = inlined_call_operand.hbm [shape: f32[128,128], index: 9, kind: input, shape index: {}]   ;;  %s7181_s10 = inlined_call_operand.vmem [shape: f32[1,128], index: 10, kind: input, shape index: {}]   ;;  %s7182_s11 = inlined_call_operand.hbm [shape: f32[2,128], index: 11, kind: output, shape index: {}]  }
   0x1   :  { %17 = vsyncpa [#allocation9], 0 }
   0x2   :  { %18 = vsyncpa [#allocation12], 0 }
   0x3   :  { %19 = vsyncpa [#allocation7], 0  ;;  %s6067_s17 = smov [#allocation8]   ;;  %s6068_s19 = smov [#allocation11]  }
   0x4   :  { %s39_s18 = sshll.u32 %s6067_s17, 4  ;;  %s67_s20 = sshll.u32 %s6068_s19, 4  ;;  %s40_s18 = int_to_ptr.vmem [resolvable:$true] %s39_s18  ;;  %s6141_s20 = int_to_ptr.vmem [resolvable:$true] %s67_s20 }
   0x5   :  { %s5927_s23 = scalar_lea.hbm %s7173_s2, 6144 }
   0x6   :  { %p5928_p0 = scmp.ne.s32.totalorder %s7173_s2, %s5927_s23  ;;  %p5931_p1 = scmp.lt.u32.totalorder %s5927_s23, %s7173_s2 }
   0x8   :  { %p5933_p2 = pnand %p5931_p1, %p5928_p0 }
   0xa   :  { %5936 = shalt.err (!%p5933_p2)
}
   0xb   :  { %s5937_s28 = scalar_lea.vmem %s40_s18, 6144  ;;  %p5942_p4 = scmp.lt.s32.totalorder %s40_s18, %s40_s18 }
   0xc   :  { %p5938_p3 = scmp.ne.s32.totalorder %s40_s18, %s5937_s28  ;;  %p5943_p5 = scmp.lt.s32.totalorder %s5937_s28, %s5937_s28 }
   0xe   :  { %p5944_p6 = por %p5943_p5, %p5942_p4 }
  0x10   :  { %p5945_p7 = pnand %p5944_p6, %p5938_p3 }
  0x12   :  { %5948 = shalt.err (!%p5945_p7)
}
  0x13   :  { %s6069_s29 = smov 384   ;;  %s6070_s30 = smov 24  }
  0x14   :  { %45 = dma.hbm_to_vmem [thread:$0]  %s7173_s2, 6144, %s40_s18, [#allocation9], %s6069_s29, %s6069_s29, %s6070_s30  }
  0x15   :  { %s5949_s16 = scalar_lea.hbm %s7177_s6, 6144 }
  0x16   :  { %p5950_p8 = scmp.ne.s32.totalorder %s7177_s6, %s5949_s16  ;;  %p5953_p9 = scmp.lt.u32.totalorder %s5949_s16, %s7177_s6 }
  0x18   :  { %p5955_p10 = pnand %p5953_p9, %p5950_p8 }
  0x1a   :  { %5958 = shalt.err (!%p5955_p10)
}
  0x1b   :  { %s5959_s23 = scalar_lea.vmem %s6141_s20, 6144  ;;  %p5964_p12 = scmp.lt.s32.totalorder %s6141_s20, %s6141_s20 }
  0x1c   :  { %p5960_p11 = scmp.ne.s32.totalorder %s6141_s20, %s5959_s23  ;;  %p5965_p13 = scmp.lt.s32.totalorder %s5959_s23, %s5959_s23 }
  0x1e   :  { %p5966_p0 = por %p5965_p13, %p5964_p12 }
  0x20   :  { %p5967_p1 = pnand %p5966_p0, %p5960_p11 }
  0x22   :  { %5970 = shalt.err (!%p5967_p1)
}
  0x23   :  { %73 = dma.hbm_to_vmem [thread:$0]  %s7177_s6, 6144, %s6141_s20, [#allocation12], %s6069_s29, %s6069_s29, %s6070_s30  }
  0x24   :  { %s6071_s24 = smov [#allocation5]   ;;  %s6072_s26 = smov [#allocation10]  }
  0x25   :  { %s27_s25 = sshll.u32 %s6071_s24, 4  ;;  %s55_s27 = sshll.u32 %s6072_s26, 4  ;;  %s28_s25 = int_to_ptr.vmem [resolvable:$true] %s27_s25  ;;  %s6178_s27 = int_to_ptr.vmem [resolvable:$true] %s55_s27 }
  0x26   :  { %s5971_s13 = scalar_lea.hbm %s7172_s1, 768 }
  0x27   :  { %p5972_p2 = scmp.ne.s32.totalorder %s7172_s1, %s5971_s13  ;;  %p5975_p3 = scmp.lt.u32.totalorder %s5971_s13, %s7172_s1 }
  0x29   :  { %p5977_p4 = pnand %p5975_p3, %p5972_p2 }
  0x2b   :  { %5980 = shalt.err (!%p5977_p4)
}
  0x2c   :  { %s5981_s6 = scalar_lea.vmem %s28_s25, 768  ;;  %p5986_p6 = scmp.lt.s32.totalorder %s28_s25, %s28_s25 }
  0x2d   :  { %p5982_p5 = scmp.ne.s32.totalorder %s28_s25, %s5981_s6  ;;  %p5987_p7 = scmp.lt.s32.totalorder %s5981_s6, %s5981_s6 }
  0x2f   :  { %p5988_p8 = por %p5987_p7, %p5986_p6 }
  0x31   :  { %p5989_p9 = pnand %p5988_p8, %p5982_p5 }
  0x33   :  { %5992 = shalt.err (!%p5989_p9)
}
  0x34   :  { %33 = dma.hbm_to_vmem [thread:$0]  %s7172_s1, 768, %s28_s25, [#allocation6], %s6069_s29, %s6069_s29, %s6070_s30  }
  0x35   :  { %s5993_s23 = scalar_lea.hbm %s7176_s5, 6144 }
  0x36   :  { %p5994_p10 = scmp.ne.s32.totalorder %s7176_s5, %s5993_s23  ;;  %p5997_p11 = scmp.lt.u32.totalorder %s5993_s23, %s7176_s5 }
  0x38   :  { %p5999_p12 = pnand %p5997_p11, %p5994_p10 }
  0x3a   :  { %6002 = shalt.err (!%p5999_p12)
}
  0x3b   :  { %s6003_s28 = scalar_lea.vmem %s6178_s27, 6144  ;;  %p6008_p0 = scmp.lt.s32.totalorder %s6178_s27, %s6178_s27 }
  0x3c   :  { %p6004_p13 = scmp.ne.s32.totalorder %s6178_s27, %s6003_s28  ;;  %p6009_p1 = scmp.lt.s32.totalorder %s6003_s28, %s6003_s28 }
  0x3e   :  { %p6010_p2 = por %p6009_p1, %p6008_p0 }
  0x40   :  { %p6011_p3 = pnand %p6010_p2, %p6004_p13 }
  0x42   :  { %6014 = shalt.err (!%p6011_p3)
}
  0x43   :  { %61 = dma.hbm_to_vmem [thread:$0]  %s7176_s5, 6144, %s6178_s27, [#allocation9], %s6069_s29, %s6069_s29, %s6070_s30  }
  0x44   :  { %s6073_s12 = smov [#allocation13]   ;;  %s6015_s16 = scalar_lea.hbm %s7180_s9, 2048 }
  0x45   :  { %s83_s13 = sshll.u32 %s6073_s12, 4  ;;  %p6016_p4 = scmp.ne.s32.totalorder %s7180_s9, %s6015_s16  ;;  %s84_s13 = int_to_ptr.vmem [resolvable:$true] %s83_s13 }
  0x46   :  { %p6019_p5 = scmp.lt.u32.totalorder %s6015_s16, %s7180_s9 }
  0x48   :  { %p6021_p6 = pnand %p6019_p5, %p6016_p4 }
  0x4a   :  { %6024 = shalt.err (!%p6021_p6)
}
  0x4b   :  { %s6025_s21 = scalar_lea.vmem %s84_s13, 2048  ;;  %p6030_p8 = scmp.lt.s32.totalorder %s84_s13, %s84_s13 }
  0x4c   :  { %p6026_p7 = scmp.ne.s32.totalorder %s84_s13, %s6025_s21  ;;  %p6031_p9 = scmp.lt.s32.totalorder %s6025_s21, %s6025_s21 }
  0x4e   :  { %p6032_p10 = por %p6031_p9, %p6030_p8 }
  0x50   :  { %p6033_p11 = pnand %p6032_p10, %p6026_p7 }
  0x52   :  { %6036 = shalt.err (!%p6033_p11)
}
  0x53   :  { %s6074_s5 = smov 128   ;;  %s6075_s29 = smov 8  }
  0x54   :  { %89 = dma.hbm_to_vmem [thread:$0]  %s7180_s9, 2048, %s84_s13, [#allocation12], %s6074_s5, %s6074_s5, %s6075_s29  }
  0x55   :  { %6059 = dma.done.wait [#allocation6], 768  }
  0x56   :  { %6060 = vsyncadd [#allocation6], 4294966528 }
  0x57   :  { %6061 = dma.done.wait [#allocation9], 12288  }
  0x58   :  { %6062 = vsyncadd [#allocation9], 4294955008 }
  0x59   :  { %6063 = dma.done.wait [#allocation12], 8192  }
  0x5a   :  { %6064 = vsyncadd [#allocation12], 4294959104  ;;  %v6076_v0 = vmov 0.0   ;;  %v172_v1 = vlaneseq  ;;  %v6077_v2 = vmov 1983009808   ;;  %v108_v6 = vld [vmem:[#allocation5 + $0x8] sm:$0xff] }
  0x5b   :  { %298 = vmatprep.mubr.f32.mxu1 %v6076_v0  ;;  %478 = vst [vmem:[#allocation3] sm:$0x3] %v6076_v0  ;;  %v198_v3 = vunpack.c.l.s4 %v6077_v2  ;;  %560 = vmatprep.mubr.f32.mxu0 %v6076_v0  ;;  %v111_v7 = vld [vmem:[#allocation5 + $0x20] sm:$0xff]  ;;  %v114_v8 = vld [vmem:[#allocation8 + $0x8] sm:$0xff]  ;;  %v117_v10 = vld [vmem:[#allocation8 + $0x20] sm:$0xff]  ;;  %vm229_vm0 = vcmask 130048  }
  0x5c   :  { %v6230_v4 = vshrl.u32 %v172_v1, 7  ;;  %v4761_v9 = vpack.c.bf16 %v111_v7, %v108_v6  ;;  %v107_v11 = vld [vmem:[#allocation5] sm:$0xff]  ;;  %v110_v12 = vld [vmem:[#allocation5 + $0x18] sm:$0xff]  ;;  %v6232_v13 = vpack.c.bf16 %v117_v10, %v114_v8  ;;  %v113_v15 = vld [vmem:[#allocation8] sm:$0xff]  ;;  %v6078_v60 = vmov 0.0|0.0   ;;  %s6080_s29 = smov [#allocation14]  }
  0x5d   :  { %v199_v5 = vunpack.c.0.s8 %v198_v3  ;;  %v4763_v14 = vpack.c.bf16 %v110_v12, %v107_v11  ;;  %v116_v16 = vld [vmem:[#allocation8 + $0x18] sm:$0xff]  ;;  %v163_v17 = vld [vmem:[%s7171_s0] sm:$0x3]  ;;  %v164_v20 = vld [vmem:[%s7171_s0 + $0x2] sm:$0x3]  ;;  %vm6079_vm1 = vmmov 0  }
  0x5e   :  { %4762 = vmatprep.subr.bf16.mxu1 %v4761_v9  ;;  %v6240_v19 = vpack.c.bf16 %v116_v16, %v113_v15  ;;  %v165_v21 = vld [vmem:[%s7171_s0 + $0x4] sm:$0x3]  ;;  %v166_v22 = vld [vmem:[%s7171_s0 + $0x6] sm:$0x3]  ;;  %4770 = vmatprep.subr.bf16.mxu0 %v6232_v13  ;;  %v195_v23 = vcombine.low %v163_v17, %v164_v20  ;;  %v120_v25 = vld [vmem:[#allocation8 + $0x38] sm:$0xff]  ;;  %s3765_s30 = sshll.u32 %s6080_s29, 4  ;;  %s3766_s30 = int_to_ptr.vmem [resolvable:$true] %s3765_s30 }
  0x5f   :  { %v6238_v18 = vsub.s32 %v199_v5, %v6230_v4  ;;  %4764 = vmatpush1.bf16.msra.mxu1 %v4763_v14  ;;  %v196_v24 = vcombine.low %v165_v21, %v166_v22  ;;  %v123_v26 = vld [vmem:[#allocation8 + $0x50] sm:$0xff]  ;;  %v122_v29 = vld [vmem:[#allocation8 + $0x48] sm:$0xff]  ;;  %v168_v31 = vld [vmem:[%s7171_s0 + $0xa] sm:$0x3]  ;;  %s6037_s27 = scalar_lea.vmem %s3766_s30, 32  ;;  %p6042_p13 = scmp.lt.s32.totalorder %s3766_s30, %s3766_s30 }
  0x60   :  { %v119_v27 = vld [vmem:[#allocation8 + $0x30] sm:$0xff]  ;;  %4772 = vmatpush1.bf16.msra.mxu0 %v6240_v19  ;;  %v6253_v28 = vpack.c.bf16 %v123_v26, %v120_v25  ;;  %v169_v35 = vld [vmem:[%s7171_s0 + $0xc] sm:$0x3]  ;;  %v170_v36 = vld [vmem:[%s7171_s0 + $0xe] sm:$0x3]  ;;  %p6038_p12 = scmp.ne.s32.totalorder %s3766_s30, %s6037_s27  ;;  %p6043_p0 = scmp.lt.s32.totalorder %s6037_s27, %s6037_s27 }
  0x61   :  { %v167_v30 = vld [vmem:[%s7171_s0 + $0x8] sm:$0x3]  ;;  %v203_v32 = vrot.slane %v195_v23, %v6238_v18  ;;  %v210_v33 = vrot.slane %v196_v24, %v6238_v18  ;;  %v6263_v34 = vpack.c.bf16 %v122_v29, %v119_v27  ;;  %v109_v38 = vld [vmem:[#allocation5 + $0x10] sm:$0xff]  ;;  %v213_v39 = vcombine.low %v169_v35, %v170_v36  ;;  %v112_v40 = vld [vmem:[#allocation5 + $0x28] sm:$0xff] }
  0x62   :  { %v212_v37 = vcombine.low %v167_v30, %v168_v31  ;;  %4774 = vmatprep.subr.bf16.mxu0 %v6253_v28  ;;  %v126_v41 = vld [vmem:[#allocation8 + $0x68] sm:$0xff]  ;;  %v129_v42 = vld [vmem:[#allocation8 + $0x80] sm:$0xff]  ;;  %v4765_v45 = vpack.c.bf16 %v112_v40, %v109_v38  ;;  %v128_v48 = vld [vmem:[#allocation8 + $0x78] sm:$0xff]  ;;  %p6044_p1 = por %p6043_p0, %p6042_p13 }
  0x63   :  { %v211_v43 = vcombine.low %v203_v32, %v210_v33  ;;  %v6273_v46 = vpack.c.bf16 %v129_v42, %v126_v41  ;;  %v125_v47 = vld [vmem:[#allocation8 + $0x60] sm:$0xff]  ;;  %v132_v49 = vld [vmem:[#allocation8 + $0x98] sm:$0xff]  ;;  %v227_v50 = vrot.slane %v213_v39, %v6238_v18  ;;  %v135_v52 = vld [vmem:[#allocation8 + $0xb0] sm:$0xff] }
  0x64   :  { %v220_v44 = vrot.slane %v212_v37, %v6238_v18  ;;  %4776 = vmatpush1.bf16.msra.mxu0 %v6263_v34  ;;  %v6277_v51 = vpack.c.bf16 %v128_v48, %v125_v47  ;;  %4766 = vmatprep.subr.bf16.mxu1 %v4765_v45  ;;  %v6280_v53 = vpack.c.bf16 %v135_v52, %v132_v49  ;;  %v131_v54 = vld [vmem:[#allocation8 + $0x90] sm:$0xff]  ;;  %v134_v55 = vld [vmem:[#allocation8 + $0xa8] sm:$0xff]  ;;  %v141_v58 = vld [vmem:[#allocation8 + $0xe0] sm:$0xff]  ;;  %p6045_p2 = pnand %p6044_p1, %p6038_p12 }
  0x65   :  { %3776 = vmatmul.mubr.msk.f32.vlgmr.msra.gmra.mrb[0].mxu1 %vm229_vm0, %v211_v43  ;;  %4778 = vmatprep.subr.bf16.mxu0 %v6273_v46  ;;  %v138_v57 = vld [vmem:[#allocation8 + $0xc8] sm:$0xff]  ;;  %v6285_v59 = vpack.c.bf16 %v134_v55, %v131_v54  ;;  %v137_v62 = vld [vmem:[#allocation8 + $0xc0] sm:$0xff]  ;;  %v140_v63 = vld [vmem:[#allocation8 + $0xd8] sm:$0xff]  ;;  %v6392_v54 = vsub.s32 0, %v6230_v4 }
  0x66   :  { %304 = vmatprep.mubr.f32.mxu1 %v6076_v0  ;;  %v228_v56 = vcombine.low %v220_v44, %v227_v50  ;;  %4768 = vmatpush3.bf16.msra.mxu1 %v4765_v45  ;;  %v6290_v61 = vpack.c.bf16 %v141_v58, %v138_v57  ;;  %v115_v1 = vld [vmem:[#allocation8 + $0x10] sm:$0xff]  ;;  %v144_v2 = vld [vmem:[#allocation8 + $0xf8] sm:$0xff]  ;;  %v118_v5 = vld [vmem:[#allocation8 + $0x28] sm:$0xff]  ;;  %v6296_v9 = vpack.c.bf16 %v140_v63, %v137_v62 }
  0x67   :  { %4801 = vmatprep.subr.bf16.mxu1 %v6078_v60  ;;  %v147_v3 = vld [vmem:[#allocation8 + $0x110] sm:$0xff]  ;;  %v6293_v6 = vpack.c.bf16 %v118_v5, %v115_v1  ;;  %v121_v7 = vld [vmem:[#allocation8 + $0x40] sm:$0xff]  ;;  %v124_v8 = vld [vmem:[#allocation8 + $0x58] sm:$0xff] }
  0x68   :  { %4780 = vmatpush1.bf16.msra.mxu0 %v6277_v51  ;;  %v6300_v10 = vpack.c.bf16 %v147_v3, %v144_v2  ;;  %v143_v11 = vld [vmem:[#allocation8 + $0xf0] sm:$0xff]  ;;  %v146_v12 = vld [vmem:[#allocation8 + $0x108] sm:$0xff]  ;;  %v153_v15 = vld [vmem:[#allocation8 + $0x140] sm:$0xff]  ;;  %v6303_v16 = vpack.c.bf16 %v124_v8, %v121_v7  ;;  %v6403_v3 = vsub.s32 2, %v6230_v4 }
  0x69   :  { %3777 = vmatmul.mubr.msk.f32.gmra.mrb[2].mxu1 %vm229_vm0, %v228_v56  ;;  %4782 = vmatprep.subr.bf16.mxu0 %v6280_v53  ;;  %v150_v14 = vld [vmem:[#allocation8 + $0x128] sm:$0xff]  ;;  %v127_v17 = vld [vmem:[#allocation8 + $0x70] sm:$0xff]  ;;  %v6309_v21 = vpack.c.bf16 %v146_v12, %v143_v11  ;;  %v149_v23 = vld [vmem:[#allocation8 + $0x120] sm:$0xff] }
  0x6a   :  { %4128 = vmatprep.mubr.msk.f32.mxu1 %vm229_vm0, %v211_v43  ;;  %v130_v20 = vld [vmem:[#allocation8 + $0x88] sm:$0xff]  ;;  %v6312_v22 = vpack.c.bf16 %v153_v15, %v150_v14  ;;  %v152_v24 = vld [vmem:[#allocation8 + $0x138] sm:$0xff]  ;;  %v159_v26 = vld [vmem:[#allocation8 + $0x170] sm:$0xff] }
  0x6b   :  { %v156_v25 = vld [vmem:[#allocation8 + $0x158] sm:$0xff]  ;;  %v6315_v27 = vpack.c.bf16 %v130_v20, %v127_v17  ;;  %v133_v29 = vld [vmem:[#allocation8 + $0xa0] sm:$0xff]  ;;  %v6319_v31 = vpack.c.bf16 %v152_v24, %v149_v23  ;;  %v155_v33 = vld [vmem:[#allocation8 + $0x150] sm:$0xff] }
  0x6c   :  { %4784 = vmatpush1.bf16.msra.mxu0 %v6285_v59  ;;  %v136_v30 = vld [vmem:[#allocation8 + $0xb8] sm:$0xff]  ;;  %v6322_v32 = vpack.c.bf16 %v159_v26, %v156_v25  ;;  %v158_v35 = vld [vmem:[#allocation8 + $0x168] sm:$0xff]  ;;  %v139_v37 = vld [vmem:[#allocation8 + $0xd0] sm:$0xff] }
  0x6d   :  { %4129 = vmatmul.mubr.msk.f32.vlgmr.msra.gmra.mrb[4].mxu1 %vm229_vm0, %v228_v56  ;;  %4786 = vmatprep.subr.bf16.mxu0 %v6290_v61  ;;  %v6325_v36 = vpack.c.bf16 %v136_v30, %v133_v29  ;;  %v142_v38 = vld [vmem:[#allocation8 + $0xe8] sm:$0xff]  ;;  %v6329_v39 = vpack.c.bf16 %v158_v35, %v155_v33  ;;  %v145_v41 = vld [vmem:[#allocation8 + $0x100] sm:$0xff]  ;;  %v148_v42 = vld [vmem:[#allocation8 + $0x118] sm:$0xff]  ;;  %v6398_v56 = vsub.s32 1, %v6230_v4 }
  0x6e   :  { %4803 = vmatpush3.bf16.msra.mxu1 %v6293_v6  ;;  %4163 = vmatprep.mubr.msk.f32.mxu1 %vm6079_vm1, %v6076_v0  ;;  %v6333_v40 = vpack.c.bf16 %v142_v38, %v139_v37  ;;  %v6337_v43 = vld [vmem:[#allocation3] sm:$0x3]  ;;  %v6341_v44 = vpack.c.bf16 %v148_v42, %v145_v41  ;;  %v151_v45 = vld [vmem:[#allocation8 + $0x130] sm:$0xff]  ;;  %v154_v47 = vld [vmem:[#allocation8 + $0x148] sm:$0xff] }
  0x6f   :  { %4804 = vmatprep.subr.bf16.mxu1 %v6078_v60  ;;  %v6349_v48 = vpack.c.bf16 %v154_v47, %v151_v45  ;;  %v157_v49 = vld [vmem:[#allocation8 + $0x160] sm:$0xff]  ;;  %v160_v50 = vld [vmem:[#allocation8 + $0x178] sm:$0xff]  ;;  %v161_v55 = vld [vmem:[%s7174_s3] sm:$0x7] }
  0x70   :  { %4788 = vmatpush1.bf16.msra.mxu0 %v6296_v9  ;;  %v6355_v52 = vpack.c.bf16 %v160_v50, %v157_v49  ;;  %v175_v57 = vrot.slane %v161_v55, %v6392_v54  ;;  %v179_v58 = vrot.slane %v161_v55, %v6398_v56  ;;  %v183_v15 = vrot.slane %v161_v55, %v6403_v3 }
  0x71   :  { %4790 = vmatprep.subr.bf16.mxu0 %v6300_v10 }
  0x72   :  { %4806 = vmatpush3.bf16.msra.mxu1 %v6303_v16 }
  0x73   :  { %4807 = vmatprep.subr.bf16.mxu1 %v6078_v60 }
  0x74   :  { %4792 = vmatpush1.bf16.msra.mxu0 %v6309_v21 }
  0x75   :  { %4794 = vmatprep.subr.bf16.mxu0 %v6312_v22 }
  0x76   :  { %4809 = vmatpush3.bf16.msra.mxu1 %v6315_v27 }
  0x77   :  { %4810 = vmatprep.subr.bf16.mxu1 %v6078_v60 }
  0x78   :  { %4796 = vmatpush1.bf16.msra.mxu0 %v6319_v31 }
  0x79   :  { %4798 = vmatprep.subr.bf16.mxu0 %v6322_v32 }
  0x7a   :  { %4812 = vmatpush3.bf16.msra.mxu1 %v6325_v36 }
  0x7b   :  { %4813 = vmatprep.subr.bf16.mxu1 %v6078_v60 }
  0x7c   :  { %4800 = vmatpush1.bf16.msra.mxu0 %v6329_v39 }
  0x7d   :  { %4826 = vmatprep.subr.bf16.mxu0 %v6232_v13 }
  0x7e   :  { %4815 = vmatpush3.bf16.msra.mxu1 %v6333_v40 }
  0x7f   :  { %561 = vmatmul.mubr.f32.vlgmr.msra.gmra.mrb[0].mxu0 %v6337_v43  ;;  %4816 = vmatprep.subr.bf16.mxu1 %v6078_v60 }
  0x80   :  { %4828 = vmatpush1.bf16.msra.mxu0 %v6240_v19  ;;  %731 = vmatprep.mubr.f32.mxu0 %v6076_v0 }
  0x81   :  { %4830 = vmatprep.subr.bf16.mxu0 %v6253_v28 }
  0x82   :  { %4818 = vmatpush3.bf16.msra.mxu1 %v6341_v44 }
  0x83   :  { %4819 = vmatprep.subr.bf16.mxu1 %v6078_v60 }
  0x84   :  { %4832 = vmatpush1.bf16.msra.mxu0 %v6263_v34 }
  0x85   :  { %4834 = vmatprep.subr.bf16.mxu0 %v6273_v46 }
  0x86   :  { %4821 = vmatpush3.bf16.msra.mxu1 %v6349_v48 }
  0x87   :  { %4822 = vmatprep.subr.bf16.mxu1 %v6078_v60 }
  0x88   :  { %4836 = vmatpush1.bf16.msra.mxu0 %v6277_v51 }
  0x89   :  { %4838 = vmatprep.subr.bf16.mxu0 %v6280_v53 }
  0x8a   :  { %4824 = vmatpush3.bf16.msra.mxu1 %v6355_v52 }
  0x8b   :  { %4857 = vmatprep.subr.bf16.mxu1 %v6078_v60 }
  0x8c   :  { %4840 = vmatpush1.bf16.msra.mxu0 %v6285_v59 }
  0x8d   :  { %4164 = vmatmul.mubr.f32.vlgmr.msra.gmra.mrb[6].mxu1 %v6337_v43  ;;  %4842 = vmatprep.subr.bf16.mxu0 %v6290_v61 }
  0x8e   :  { %4859 = vmatpush3.bf16.msra.mxu1 %v6293_v6  ;;  %4198 = vmatprep.mubr.msk.f32.mxu1 %vm6079_vm1, %v6076_v0 }
  0x8f   :  { %4860 = vmatprep.subr.bf16.mxu1 %v6078_v60 }
  0x90   :  { %4844 = vmatpush1.bf16.msra.mxu0 %v6296_v9 }
  0x91   :  { %4846 = vmatprep.subr.bf16.mxu0 %v6300_v10 }
  0x92   :  { %4862 = vmatpush3.bf16.msra.mxu1 %v6303_v16 }
  0x93   :  { %4863 = vmatprep.subr.bf16.mxu1 %v6078_v60 }
  0x94   :  { %4848 = vmatpush1.bf16.msra.mxu0 %v6309_v21 }
  0x95   :  { %4850 = vmatprep.subr.bf16.mxu0 %v6312_v22 }
  0x96   :  { %4865 = vmatpush3.bf16.msra.mxu1 %v6315_v27 }
  0x97   :  { %4866 = vmatprep.subr.bf16.mxu1 %v6078_v60 }
  0x98   :  { %4852 = vmatpush1.bf16.msra.mxu0 %v6319_v31 }
  0x99   :  { %4854 = vmatprep.subr.bf16.mxu0 %v6322_v32 }
  0x9a   :  { %4868 = vmatpush3.bf16.msra.mxu1 %v6325_v36 }
  0x9b   :  { %4869 = vmatprep.subr.bf16.mxu1 %v6078_v60 }
  0x9c   :  { %4856 = vmatpush1.bf16.msra.mxu0 %v6329_v39 }
  0x9d   :  { %4882 = vmatprep.subr.bf16.mxu0 %v6232_v13 }
  0x9e   :  { %4871 = vmatpush3.bf16.msra.mxu1 %v6333_v40 }
  0x9f   :  { %4872 = vmatprep.subr.bf16.mxu1 %v6078_v60 }
  0xa2   :  { %4874 = vmatpush3.bf16.msra.mxu1 %v6341_v44 }
  0xa3   :  { %4875 = vmatprep.subr.bf16.mxu1 %v6078_v60 }
  0xa6   :  { %4877 = vmatpush3.bf16.msra.mxu1 %v6349_v48 }
  0xa7   :  { %4878 = vmatprep.subr.bf16.mxu1 %v6078_v60 }
  0xaa   :  { %4880 = vmatpush3.bf16.msra.mxu1 %v6355_v52 }
  0xab   :  { %4913 = vmatprep.subr.bf16.mxu1 %v6078_v60 }
 0x138   :  { %v300_v62 = vpop.f32.mrb[0].mxu1 }
 0x139   :  { %v301_v63 = vadd.f32 %v300_v62, %v175_v57  ;;  %v302_v1 = vpop.f32.mrb[1].mxu1 }
 0x13a   :  { %v303_v2 = vadd.f32 %v302_v1, %v179_v58  ;;  %v162_v1 = vld [vmem:[%s7175_s4] sm:$0x7] }
 0x13c   :  { %v392_v5 = vcombine.low %v301_v63, %v303_v2  ;;  %v393_v7 = vcombine.high %v301_v63, %v303_v2  ;;  %v306_v8 = vpop.f32.mrb[2].mxu1  ;;  %v6418_v2 = vrot.slane %v162_v1, %v6392_v54 }
 0x13d   :  { %v307_v11 = vadd.f32 %v306_v8, %v175_v57  ;;  %v308_v12 = vpop.f32.mrb[3].mxu1 }
 0x13e   :  { %v309_v14 = vadd.f32 %v308_v12, %v179_v58  ;;  %v401_v26 = vrot.slane %v392_v5, %v6238_v18  ;;  %v408_v47 = vrot.slane %v393_v7, %v6238_v18  ;;  %v6421_v5 = vrot.slane %v162_v1, %v6398_v56 }
 0x140   :  { %v427_v17 = vcombine.low %v307_v11, %v309_v14  ;;  %v428_v20 = vcombine.high %v307_v11, %v309_v14  ;;  %v4130_v23 = vpop.f32.mrb[4].mxu1 }
 0x141   :  { %v383_v24 = vadd.f32 %v4130_v23, %v183_v15  ;;  %v377_v25 = vpop.f32.mrb[5].mxu1 }
 0x142   :  { %v436_v29 = vrot.slane %v427_v17, %v6238_v18  ;;  %v378_v30 = vadd.f32 %v377_v25, %v183_v15  ;;  %v443_v4 = vrot.slane %v428_v20, %v6238_v18 }
 0x143   :  { %v429_v33 = vcombine.high %v383_v24, %v383_v24  ;;  %v450_v35 = vrot.slane %v383_v24, %v6238_v18 }
 0x144   :  { %v394_v37 = vcombine.high %v378_v30, %v378_v30  ;;  %v415_v38 = vrot.slane %v378_v30, %v6238_v18 }
 0x145   :  { %v457_v41 = vrot.slane %v429_v33, %v6238_v18  ;;  %v458_v42 = vcombine.low %v436_v29, %v450_v35  ;;  %v459_v45 = vcombine.high %v436_v29, %v450_v35 }
 0x146   :  { %v422_v49 = vrot.slane %v394_v37, %v6238_v18  ;;  %v423_v50 = vcombine.low %v401_v26, %v415_v38  ;;  %v424_v55 = vcombine.high %v401_v26, %v415_v38 }
 0x147   :  { %v460_v57 = vcombine.low %v443_v4, %v457_v41  ;;  %v461_v58 = vcombine.high %v443_v4, %v457_v41  ;;  %474 = vst [vmem:[#allocation2 + $0x18] sm:$0x3f] %v458_v42  ;;  %475 = vst [vmem:[#allocation2 + $0x1e] sm:$0x3f] %v459_v45  ;;  %v6426_v4 = vrot.slane %v162_v1, %v6403_v3 }
 0x148   :  { %v425_v62 = vcombine.low %v408_v47, %v422_v49  ;;  %v426_v63 = vcombine.high %v408_v47, %v422_v49  ;;  %470 = vst [vmem:[#allocation2] sm:$0x3f] %v423_v50  ;;  %471 = vst [vmem:[#allocation2 + $0x6] sm:$0x3f] %v424_v55 }
 0x149   :  { %476 = vst [vmem:[#allocation2 + $0x24] sm:$0x3f] %v460_v57  ;;  %477 = vst [vmem:[#allocation2 + $0x2a] sm:$0x3f] %v461_v58 }
 0x14a   :  { %472 = vst [vmem:[#allocation2 + $0xc] sm:$0x3f] %v425_v62  ;;  %473 = vst [vmem:[#allocation2 + $0x12] sm:$0x3f] %v426_v63 }
 0x14f   :  { %v637_v11 = vld [vmem:[#allocation2] sm:$0x3f] }
 0x150   :  { %v646_v17 = vrot.slane %v637_v11, 2  ;;  %v656_v42 = vrot.slane %v637_v11, 4 }
 0x152   :  { %v562_v7 = vpop.f32.mrb[0].mxu0 }
 0x153   :  { %v563_v8 = vadd.f32 %v562_v7, %v6418_v2  ;;  %v564_v12 = vpop.f32.mrb[1].mxu0  ;;  %v809_v7 = vld [vmem:[#allocation2 + $0x6] sm:$0x3f] }
 0x154   :  { %v565_v14 = vadd.f32 %v564_v12, %v6421_v5 }
 0x155   :  { %v638_v15 = vadd.f32 %v637_v11, %v563_v8 }
 0x156   :  { %v648_v23 = vadd.f32 %v646_v17, %v565_v14 }
 0x157   :  { %v3780_v20 = vmul.f32 -1.442695, %v638_v15  ;;  %v818_v15 = vrot.slane %v809_v7, 2 }
 0x158   :  { %v3781_v24 = vmul.f32 -1.442695, %v648_v23 }
 0x159   :  { %5767 = vpow2.f32 %v3780_v20 }
 0x15a   :  { %5769 = vpow2.f32 %v3781_v24 }
 0x160   :  { %v633_v25 = vpop.f32.mrb[6].mxu1 }
 0x161   :  { %v4165_v26 = vpop.f32.mrb[7].mxu1  ;;  %v634_v37 = vadd.f32 %v633_v25, %v6426_v4 }
 0x163   :  { %v5768_v29 = vpop.eup %5767 }
 0x164   :  { %v642_v30 = vadd.f32 1.0, %v5768_v29  ;;  %v5770_v33 = vpop.eup %5769 }
 0x165   :  { %v652_v35 = vadd.f32 1.0, %v5770_v33 }
 0x166   :  { %5771 = vrcp.f32 %v642_v30 }
 0x167   :  { %5773 = vrcp.f32 %v652_v35 }
 0x170   :  { %v5772_v38 = vpop.eup %5771 }
 0x171   :  { %v655_v41 = vmul.f32 %v5772_v38, %v634_v37  ;;  %v5774_v47 = vpop.eup %5773  ;;  %v828_v37 = vrot.slane %v809_v7, 4 }
 0x172   :  { %v660_v49 = vsub.f32 1.0, %v5774_v47  ;;  %v662_v55 = vmul.f32 %v5774_v47, %v6337_v43 }
 0x173   :  { %v658_v45 = vadd.f32 %v656_v42, %v655_v41 }
 0x175   :  { %5775 = vtanh.f32 %v658_v45 }
 0x17f   :  { %v5776_v50 = vpop.eup %5775 }
 0x180   :  { %v661_v57 = vmul.f32 %v5776_v50, %v660_v49 }
 0x182   :  { %v663_v58 = vadd.f32 %v662_v55, %v661_v57 }
 0x184   :  { %664 = vst [vmem:[#allocation3] sm:$0x3] %v663_v58  ;;  %665 = vst [vmem:[#allocation4] sm:$0x3] %v663_v58 }
 0x18b   :  { %v6430_v62 = vld [vmem:[#allocation3] sm:$0x3] }
 0x18c   :  { %732 = vmatmul.mubr.f32.vlgmr.msra.gmra.mrb[2].mxu0 %v6430_v62  ;;  %4199 = vmatmul.mubr.f32.vlgmr.msra.gmra.mrb[8].mxu1 %v6430_v62 }
 0x18d   :  { %4884 = vmatpush1.bf16.msra.mxu0 %v6240_v19  ;;  %4915 = vmatpush3.bf16.msra.mxu1 %v6293_v6 }
 0x18e   :  { %4886 = vmatprep.subr.bf16.mxu0 %v6253_v28  ;;  %4916 = vmatprep.subr.bf16.mxu1 %v6078_v60 }
 0x18f   :  { %904 = vmatprep.mubr.f32.mxu0 %v6076_v0  ;;  %4233 = vmatprep.mubr.msk.f32.mxu1 %vm6079_vm1, %v6076_v0 }
 0x191   :  { %4888 = vmatpush1.bf16.msra.mxu0 %v6263_v34  ;;  %4918 = vmatpush3.bf16.msra.mxu1 %v6303_v16 }
 0x192   :  { %4890 = vmatprep.subr.bf16.mxu0 %v6273_v46  ;;  %4919 = vmatprep.subr.bf16.mxu1 %v6078_v60 }
 0x195   :  { %4892 = vmatpush1.bf16.msra.mxu0 %v6277_v51  ;;  %4921 = vmatpush3.bf16.msra.mxu1 %v6315_v27 }
 0x196   :  { %4894 = vmatprep.subr.bf16.mxu0 %v6280_v53  ;;  %4922 = vmatprep.subr.bf16.mxu1 %v6078_v60 }
 0x199   :  { %4896 = vmatpush1.bf16.msra.mxu0 %v6285_v59  ;;  %4924 = vmatpush3.bf16.msra.mxu1 %v6325_v36 }
 0x19a   :  { %4898 = vmatprep.subr.bf16.mxu0 %v6290_v61  ;;  %4925 = vmatprep.subr.bf16.mxu1 %v6078_v60 }
 0x19d   :  { %4900 = vmatpush1.bf16.msra.mxu0 %v6296_v9  ;;  %4927 = vmatpush3.bf16.msra.mxu1 %v6333_v40 }
 0x19e   :  { %4902 = vmatprep.subr.bf16.mxu0 %v6300_v10  ;;  %4928 = vmatprep.subr.bf16.mxu1 %v6078_v60 }
 0x1a1   :  { %4904 = vmatpush1.bf16.msra.mxu0 %v6309_v21  ;;  %4930 = vmatpush3.bf16.msra.mxu1 %v6341_v44 }
 0x1a2   :  { %4906 = vmatprep.subr.bf16.mxu0 %v6312_v22  ;;  %4931 = vmatprep.subr.bf16.mxu1 %v6078_v60 }
 0x1a5   :  { %4908 = vmatpush1.bf16.msra.mxu0 %v6319_v31  ;;  %4933 = vmatpush3.bf16.msra.mxu1 %v6349_v48 }
 0x1a6   :  { %4910 = vmatprep.subr.bf16.mxu0 %v6322_v32  ;;  %4934 = vmatprep.subr.bf16.mxu1 %v6078_v60 }
 0x1a9   :  { %4912 = vmatpush1.bf16.msra.mxu0 %v6329_v39  ;;  %4936 = vmatpush3.bf16.msra.mxu1 %v6355_v52 }
 0x1aa   :  { %4938 = vmatprep.subr.bf16.mxu0 %v6232_v13  ;;  %4969 = vmatprep.subr.bf16.mxu1 %v6078_v60 }
 0x25f   :  { %v733_v43 = vpop.f32.mrb[2].mxu0  ;;  %v804_v63 = vpop.f32.mrb[8].mxu1 }
 0x260   :  { %v734_v1 = vadd.f32 %v733_v43, %v6418_v2  ;;  %v735_v8 = vpop.f32.mrb[3].mxu0  ;;  %v4200_v11 = vpop.f32.mrb[9].mxu1  ;;  %v805_v30 = vadd.f32 %v804_v63, %v6426_v4  ;;  %v982_v43 = vld [vmem:[#allocation2 + $0xc] sm:$0x3f] }
 0x261   :  { %v736_v12 = vadd.f32 %v735_v8, %v6421_v5  ;;  %v991_v11 = vrot.slane %v982_v43, 2 }
 0x262   :  { %v810_v14 = vadd.f32 %v809_v7, %v734_v1 }
 0x263   :  { %v820_v20 = vadd.f32 %v818_v15, %v736_v12 }
 0x264   :  { %v3782_v17 = vmul.f32 -1.442695, %v810_v14 }
 0x265   :  { %v3783_v23 = vmul.f32 -1.442695, %v820_v20 }
 0x266   :  { %5777 = vpow2.f32 %v3782_v17 }
 0x267   :  { %5779 = vpow2.f32 %v3783_v23 }
 0x270   :  { %v5778_v24 = vpop.eup %5777 }
 0x271   :  { %v814_v25 = vadd.f32 1.0, %v5778_v24  ;;  %v5780_v26 = vpop.eup %5779 }
 0x272   :  { %v824_v29 = vadd.f32 1.0, %v5780_v26 }
 0x273   :  { %5781 = vrcp.f32 %v814_v25 }
 0x274   :  { %5783 = vrcp.f32 %v824_v29 }
 0x27d   :  { %v5782_v33 = vpop.eup %5781 }
 0x27e   :  { %v827_v35 = vmul.f32 %v5782_v33, %v805_v30  ;;  %v5784_v41 = vpop.eup %5783  ;;  %v1001_v30 = vrot.slane %v982_v43, 4 }
 0x27f   :  { %v832_v42 = vsub.f32 1.0, %v5784_v41  ;;  %v834_v49 = vmul.f32 %v5784_v41, %v6430_v62 }
 0x280   :  { %v830_v38 = vadd.f32 %v828_v37, %v827_v35 }
 0x282   :  { %5785 = vtanh.f32 %v830_v38 }
 0x28c   :  { %v5786_v45 = vpop.eup %5785 }
 0x28d   :  { %v833_v47 = vmul.f32 %v5786_v45, %v832_v42 }
 0x28f   :  { %v835_v50 = vadd.f32 %v834_v49, %v833_v47 }
 0x291   :  { %836 = vst [vmem:[#allocation3] sm:$0x3] %v835_v50  ;;  %838 = vst [vmem:[#allocation4 + $0x2] sm:$0x3] %v835_v50 }
 0x298   :  { %v6473_v55 = vld [vmem:[#allocation3] sm:$0x3] }
 0x299   :  { %905 = vmatmul.mubr.f32.vlgmr.msra.gmra.mrb[4].mxu0 %v6473_v55  ;;  %4234 = vmatmul.mubr.f32.vlgmr.msra.gmra.mrb[10].mxu1 %v6473_v55 }
 0x29a   :  { %4940 = vmatpush1.bf16.msra.mxu0 %v6240_v19  ;;  %4971 = vmatpush3.bf16.msra.mxu1 %v6293_v6 }
 0x29b   :  { %4942 = vmatprep.subr.bf16.mxu0 %v6253_v28  ;;  %4972 = vmatprep.subr.bf16.mxu1 %v6078_v60 }
 0x29c   :  { %1077 = vmatprep.mubr.f32.mxu0 %v6076_v0  ;;  %4268 = vmatprep.mubr.msk.f32.mxu1 %vm6079_vm1, %v6076_v0 }
 0x29e   :  { %4944 = vmatpush1.bf16.msra.mxu0 %v6263_v34  ;;  %4974 = vmatpush3.bf16.msra.mxu1 %v6303_v16 }
 0x29f   :  { %4946 = vmatprep.subr.bf16.mxu0 %v6273_v46  ;;  %4975 = vmatprep.subr.bf16.mxu1 %v6078_v60 }
 0x2a2   :  { %4948 = vmatpush1.bf16.msra.mxu0 %v6277_v51  ;;  %4977 = vmatpush3.bf16.msra.mxu1 %v6315_v27 }
 0x2a3   :  { %4950 = vmatprep.subr.bf16.mxu0 %v6280_v53  ;;  %4978 = vmatprep.subr.bf16.mxu1 %v6078_v60 }
 0x2a6   :  { %4952 = vmatpush1.bf16.msra.mxu0 %v6285_v59  ;;  %4980 = vmatpush3.bf16.msra.mxu1 %v6325_v36 }
 0x2a7   :  { %4954 = vmatprep.subr.bf16.mxu0 %v6290_v61  ;;  %4981 = vmatprep.subr.bf16.mxu1 %v6078_v60 }
 0x2aa   :  { %4956 = vmatpush1.bf16.msra.mxu0 %v6296_v9  ;;  %4983 = vmatpush3.bf16.msra.mxu1 %v6333_v40 }
 0x2ab   :  { %4958 = vmatprep.subr.bf16.mxu0 %v6300_v10  ;;  %4984 = vmatprep.subr.bf16.mxu1 %v6078_v60 }
 0x2ae   :  { %4960 = vmatpush1.bf16.msra.mxu0 %v6309_v21  ;;  %4986 = vmatpush3.bf16.msra.mxu1 %v6341_v44 }
 0x2af   :  { %4962 = vmatprep.subr.bf16.mxu0 %v6312_v22  ;;  %4987 = vmatprep.subr.bf16.mxu1 %v6078_v60 }
 0x2b2   :  { %4964 = vmatpush1.bf16.msra.mxu0 %v6319_v31  ;;  %4989 = vmatpush3.bf16.msra.mxu1 %v6349_v48 }
 0x2b3   :  { %4966 = vmatprep.subr.bf16.mxu0 %v6322_v32  ;;  %4990 = vmatprep.subr.bf16.mxu1 %v6078_v60 }
 0x2b6   :  { %4968 = vmatpush1.bf16.msra.mxu0 %v6329_v39  ;;  %4992 = vmatpush3.bf16.msra.mxu1 %v6355_v52 }
 0x2b7   :  { %4994 = vmatprep.subr.bf16.mxu0 %v6232_v13  ;;  %5025 = vmatprep.subr.bf16.mxu1 %v6078_v60 }
 0x36c   :  { %v906_v57 = vpop.f32.mrb[4].mxu0  ;;  %v977_v58 = vpop.f32.mrb[10].mxu1 }
 0x36d   :  { %v907_v62 = vadd.f32 %v906_v57, %v6418_v2  ;;  %v908_v63 = vpop.f32.mrb[5].mxu0  ;;  %v4235_v1 = vpop.f32.mrb[11].mxu1  ;;  %v978_v25 = vadd.f32 %v977_v58, %v6426_v4  ;;  %v1155_v57 = vld [vmem:[#allocation2 + $0x12] sm:$0x3f] }
 0x36e   :  { %v909_v7 = vadd.f32 %v908_v63, %v6421_v5  ;;  %v1164_v1 = vrot.slane %v1155_v57, 2 }
 0x36f   :  { %v983_v8 = vadd.f32 %v982_v43, %v907_v62 }
 0x370   :  { %v993_v14 = vadd.f32 %v991_v11, %v909_v7 }
 0x371   :  { %v3784_v12 = vmul.f32 -1.442695, %v983_v8 }
 0x372   :  { %v3785_v15 = vmul.f32 -1.442695, %v993_v14 }
 0x373   :  { %5787 = vpow2.f32 %v3784_v12 }
 0x374   :  { %5789 = vpow2.f32 %v3785_v15 }
 0x37d   :  { %v5788_v17 = vpop.eup %5787 }
 0x37e   :  { %v987_v20 = vadd.f32 1.0, %v5788_v17  ;;  %v5790_v23 = vpop.eup %5789 }
 0x37f   :  { %v997_v24 = vadd.f32 1.0, %v5790_v23 }
 0x380   :  { %5791 = vrcp.f32 %v987_v20 }
 0x381   :  { %5793 = vrcp.f32 %v997_v24 }
 0x38a   :  { %v5792_v26 = vpop.eup %5791 }
 0x38b   :  { %v1000_v29 = vmul.f32 %v5792_v26, %v978_v25  ;;  %v5794_v35 = vpop.eup %5793  ;;  %v1174_v25 = vrot.slane %v1155_v57, 4 }
 0x38c   :  { %v1005_v37 = vsub.f32 1.0, %v5794_v35  ;;  %v1007_v42 = vmul.f32 %v5794_v35, %v6473_v55 }
 0x38d   :  { %v1003_v33 = vadd.f32 %v1001_v30, %v1000_v29 }
 0x38f   :  { %5795 = vtanh.f32 %v1003_v33 }
 0x399   :  { %v5796_v38 = vpop.eup %5795 }
 0x39a   :  { %v1006_v41 = vmul.f32 %v5796_v38, %v1005_v37 }
 0x39c   :  { %v1008_v45 = vadd.f32 %v1007_v42, %v1006_v41 }
 0x39e   :  { %1009 = vst [vmem:[#allocation3] sm:$0x3] %v1008_v45  ;;  %1011 = vst [vmem:[#allocation4 + $0x4] sm:$0x3] %v1008_v45 }
 0x3a5   :  { %v6516_v47 = vld [vmem:[#allocation3] sm:$0x3] }
 0x3a6   :  { %1078 = vmatmul.mubr.f32.vlgmr.msra.gmra.mrb[6].mxu0 %v6516_v47  ;;  %4269 = vmatmul.mubr.f32.vlgmr.msra.gmra.mrb[12].mxu1 %v6516_v47 }
 0x3a7   :  { %4996 = vmatpush1.bf16.msra.mxu0 %v6240_v19  ;;  %5027 = vmatpush3.bf16.msra.mxu1 %v6293_v6 }
 0x3a8   :  { %4998 = vmatprep.subr.bf16.mxu0 %v6253_v28  ;;  %5028 = vmatprep.subr.bf16.mxu1 %v6078_v60 }
 0x3a9   :  { %1250 = vmatprep.mubr.f32.mxu0 %v6076_v0  ;;  %4303 = vmatprep.mubr.msk.f32.mxu1 %vm6079_vm1, %v6076_v0 }
 0x3ab   :  { %5000 = vmatpush1.bf16.msra.mxu0 %v6263_v34  ;;  %5030 = vmatpush3.bf16.msra.mxu1 %v6303_v16 }
 0x3ac   :  { %5002 = vmatprep.subr.bf16.mxu0 %v6273_v46  ;;  %5031 = vmatprep.subr.bf16.mxu1 %v6078_v60 }
 0x3af   :  { %5004 = vmatpush1.bf16.msra.mxu0 %v6277_v51  ;;  %5033 = vmatpush3.bf16.msra.mxu1 %v6315_v27 }
 0x3b0   :  { %5006 = vmatprep.subr.bf16.mxu0 %v6280_v53  ;;  %5034 = vmatprep.subr.bf16.mxu1 %v6078_v60 }
 0x3b3   :  { %5008 = vmatpush1.bf16.msra.mxu0 %v6285_v59  ;;  %5036 = vmatpush3.bf16.msra.mxu1 %v6325_v36 }
 0x3b4   :  { %5010 = vmatprep.subr.bf16.mxu0 %v6290_v61  ;;  %5037 = vmatprep.subr.bf16.mxu1 %v6078_v60 }
 0x3b7   :  { %5012 = vmatpush1.bf16.msra.mxu0 %v6296_v9  ;;  %5039 = vmatpush3.bf16.msra.mxu1 %v6333_v40 }
 0x3b8   :  { %5014 = vmatprep.subr.bf16.mxu0 %v6300_v10  ;;  %5040 = vmatprep.subr.bf16.mxu1 %v6078_v60 }
 0x3bb   :  { %5016 = vmatpush1.bf16.msra.mxu0 %v6309_v21  ;;  %5042 = vmatpush3.bf16.msra.mxu1 %v6341_v44 }
 0x3bc   :  { %5018 = vmatprep.subr.bf16.mxu0 %v6312_v22  ;;  %5043 = vmatprep.subr.bf16.mxu1 %v6078_v60 }
 0x3bf   :  { %5020 = vmatpush1.bf16.msra.mxu0 %v6319_v31  ;;  %5045 = vmatpush3.bf16.msra.mxu1 %v6349_v48 }
 0x3c0   :  { %5022 = vmatprep.subr.bf16.mxu0 %v6322_v32  ;;  %5046 = vmatprep.subr.bf16.mxu1 %v6078_v60 }
 0x3c3   :  { %5024 = vmatpush1.bf16.msra.mxu0 %v6329_v39  ;;  %5048 = vmatpush3.bf16.msra.mxu1 %v6355_v52 }
 0x3c4   :  { %5050 = vmatprep.subr.bf16.mxu0 %v6232_v13  ;;  %5081 = vmatprep.subr.bf16.mxu1 %v6078_v60 }
 0x479   :  { %v1079_v49 = vpop.f32.mrb[6].mxu0  ;;  %v1150_v50 = vpop.f32.mrb[12].mxu1 }
 0x47a   :  { %v1080_v55 = vadd.f32 %v1079_v49, %v6418_v2  ;;  %v1081_v58 = vpop.f32.mrb[7].mxu0  ;;  %v4270_v62 = vpop.f32.mrb[13].mxu1  ;;  %v1151_v20 = vadd.f32 %v1150_v50, %v6426_v4  ;;  %v1328_v49 = vld [vmem:[#allocation2 + $0x18] sm:$0x3f] }
 0x47b   :  { %v1082_v43 = vadd.f32 %v1081_v58, %v6421_v5  ;;  %v1337_v62 = vrot.slane %v1328_v49, 2 }
 0x47c   :  { %v1156_v63 = vadd.f32 %v1155_v57, %v1080_v55 }
 0x47d   :  { %v1166_v8 = vadd.f32 %v1164_v1, %v1082_v43 }
 0x47e   :  { %v3786_v7 = vmul.f32 -1.442695, %v1156_v63 }
 0x47f   :  { %v3787_v11 = vmul.f32 -1.442695, %v1166_v8 }
 0x480   :  { %5797 = vpow2.f32 %v3786_v7 }
 0x481   :  { %5799 = vpow2.f32 %v3787_v11 }
 0x48a   :  { %v5798_v12 = vpop.eup %5797 }
 0x48b   :  { %v1160_v14 = vadd.f32 1.0, %v5798_v12  ;;  %v5800_v15 = vpop.eup %5799 }
 0x48c   :  { %v1170_v17 = vadd.f32 1.0, %v5800_v15 }
 0x48d   :  { %5801 = vrcp.f32 %v1160_v14 }
 0x48e   :  { %5803 = vrcp.f32 %v1170_v17 }
 0x497   :  { %v5802_v23 = vpop.eup %5801 }
 0x498   :  { %v1173_v24 = vmul.f32 %v5802_v23, %v1151_v20  ;;  %v5804_v29 = vpop.eup %5803  ;;  %v1347_v20 = vrot.slane %v1328_v49, 4 }
 0x499   :  { %v1178_v30 = vsub.f32 1.0, %v5804_v29  ;;  %v1180_v37 = vmul.f32 %v5804_v29, %v6516_v47 }
 0x49a   :  { %v1176_v26 = vadd.f32 %v1174_v25, %v1173_v24 }
 0x49c   :  { %5805 = vtanh.f32 %v1176_v26 }
 0x4a6   :  { %v5806_v33 = vpop.eup %5805 }
 0x4a7   :  { %v1179_v35 = vmul.f32 %v5806_v33, %v1178_v30 }
 0x4a9   :  { %v1181_v38 = vadd.f32 %v1180_v37, %v1179_v35 }
 0x4ab   :  { %1182 = vst [vmem:[#allocation3] sm:$0x3] %v1181_v38  ;;  %1184 = vst [vmem:[#allocation4 + $0x6] sm:$0x3] %v1181_v38 }
 0x4b2   :  { %v6559_v41 = vld [vmem:[#allocation3] sm:$0x3] }
 0x4b3   :  { %1251 = vmatmul.mubr.f32.vlgmr.msra.gmra.mrb[8].mxu0 %v6559_v41  ;;  %4304 = vmatmul.mubr.f32.vlgmr.msra.gmra.mrb[14].mxu1 %v6559_v41 }
 0x4b4   :  { %5052 = vmatpush1.bf16.msra.mxu0 %v6240_v19  ;;  %5083 = vmatpush3.bf16.msra.mxu1 %v6293_v6 }
 0x4b5   :  { %5054 = vmatprep.subr.bf16.mxu0 %v6253_v28  ;;  %5084 = vmatprep.subr.bf16.mxu1 %v6078_v60 }
 0x4b6   :  { %1423 = vmatprep.mubr.f32.mxu0 %v6076_v0  ;;  %4338 = vmatprep.mubr.msk.f32.mxu1 %vm6079_vm1, %v6076_v0 }
 0x4b8   :  { %5056 = vmatpush1.bf16.msra.mxu0 %v6263_v34  ;;  %5086 = vmatpush3.bf16.msra.mxu1 %v6303_v16 }
 0x4b9   :  { %5058 = vmatprep.subr.bf16.mxu0 %v6273_v46  ;;  %5087 = vmatprep.subr.bf16.mxu1 %v6078_v60 }
 0x4bc   :  { %5060 = vmatpush1.bf16.msra.mxu0 %v6277_v51  ;;  %5089 = vmatpush3.bf16.msra.mxu1 %v6315_v27 }
 0x4bd   :  { %5062 = vmatprep.subr.bf16.mxu0 %v6280_v53  ;;  %5090 = vmatprep.subr.bf16.mxu1 %v6078_v60 }
 0x4c0   :  { %5064 = vmatpush1.bf16.msra.mxu0 %v6285_v59  ;;  %5092 = vmatpush3.bf16.msra.mxu1 %v6325_v36 }
 0x4c1   :  { %5066 = vmatprep.subr.bf16.mxu0 %v6290_v61  ;;  %5093 = vmatprep.subr.bf16.mxu1 %v6078_v60 }
 0x4c4   :  { %5068 = vmatpush1.bf16.msra.mxu0 %v6296_v9  ;;  %5095 = vmatpush3.bf16.msra.mxu1 %v6333_v40 }
 0x4c5   :  { %5070 = vmatprep.subr.bf16.mxu0 %v6300_v10  ;;  %5096 = vmatprep.subr.bf16.mxu1 %v6078_v60 }
 0x4c8   :  { %5072 = vmatpush1.bf16.msra.mxu0 %v6309_v21  ;;  %5098 = vmatpush3.bf16.msra.mxu1 %v6341_v44 }
 0x4c9   :  { %5074 = vmatprep.subr.bf16.mxu0 %v6312_v22  ;;  %5099 = vmatprep.subr.bf16.mxu1 %v6078_v60 }
 0x4cc   :  { %5076 = vmatpush1.bf16.msra.mxu0 %v6319_v31  ;;  %5101 = vmatpush3.bf16.msra.mxu1 %v6349_v48 }
 0x4cd   :  { %5078 = vmatprep.subr.bf16.mxu0 %v6322_v32  ;;  %5102 = vmatprep.subr.bf16.mxu1 %v6078_v60 }
 0x4d0   :  { %5080 = vmatpush1.bf16.msra.mxu0 %v6329_v39  ;;  %5104 = vmatpush3.bf16.msra.mxu1 %v6355_v52 }
 0x4d1   :  { %5106 = vmatprep.subr.bf16.mxu0 %v6232_v13  ;;  %5137 = vmatprep.subr.bf16.mxu1 %v6078_v60 }
 0x586   :  { %v1252_v42 = vpop.f32.mrb[8].mxu0  ;;  %v1323_v45 = vpop.f32.mrb[14].mxu1 }
 0x587   :  { %v1253_v47 = vadd.f32 %v1252_v42, %v6418_v2  ;;  %v1254_v50 = vpop.f32.mrb[9].mxu0  ;;  %v4305_v55 = vpop.f32.mrb[15].mxu1  ;;  %v1324_v14 = vadd.f32 %v1323_v45, %v6426_v4  ;;  %v1501_v42 = vld [vmem:[#allocation2 + $0x1e] sm:$0x3f] }
 0x588   :  { %v1255_v57 = vadd.f32 %v1254_v50, %v6421_v5  ;;  %v1510_v55 = vrot.slane %v1501_v42, 2 }
 0x589   :  { %v1329_v58 = vadd.f32 %v1328_v49, %v1253_v47 }
 0x58a   :  { %v1339_v63 = vadd.f32 %v1337_v62, %v1255_v57 }
 0x58b   :  { %v3788_v43 = vmul.f32 -1.442695, %v1329_v58 }
 0x58c   :  { %v3789_v1 = vmul.f32 -1.442695, %v1339_v63 }
 0x58d   :  { %5807 = vpow2.f32 %v3788_v43 }
 0x58e   :  { %5809 = vpow2.f32 %v3789_v1 }
 0x597   :  { %v5808_v7 = vpop.eup %5807 }
 0x598   :  { %v1333_v8 = vadd.f32 1.0, %v5808_v7  ;;  %v5810_v11 = vpop.eup %5809 }
 0x599   :  { %v1343_v12 = vadd.f32 1.0, %v5810_v11 }
 0x59a   :  { %5811 = vrcp.f32 %v1333_v8 }
 0x59b   :  { %5813 = vrcp.f32 %v1343_v12  ;;  %v1520_v12 = vrot.slane %v1501_v42, 4 }
 0x5a4   :  { %v5812_v15 = vpop.eup %5811 }
 0x5a5   :  { %v1346_v17 = vmul.f32 %v5812_v15, %v1324_v14  ;;  %v5814_v24 = vpop.eup %5813 }
 0x5a6   :  { %v1351_v25 = vsub.f32 1.0, %v5814_v24  ;;  %v1353_v30 = vmul.f32 %v5814_v24, %v6559_v41 }
 0x5a7   :  { %v1349_v23 = vadd.f32 %v1347_v20, %v1346_v17 }
 0x5a9   :  { %5815 = vtanh.f32 %v1349_v23 }
 0x5b3   :  { %v5816_v26 = vpop.eup %5815 }
 0x5b4   :  { %v1352_v29 = vmul.f32 %v5816_v26, %v1351_v25 }
 0x5b6   :  { %v1354_v33 = vadd.f32 %v1353_v30, %v1352_v29 }
 0x5b8   :  { %1355 = vst [vmem:[#allocation3] sm:$0x3] %v1354_v33  ;;  %1357 = vst [vmem:[#allocation4 + $0x8] sm:$0x3] %v1354_v33 }
 0x5bf   :  { %v6602_v35 = vld [vmem:[#allocation3] sm:$0x3] }
 0x5c0   :  { %1424 = vmatmul.mubr.f32.vlgmr.msra.gmra.mrb[10].mxu0 %v6602_v35  ;;  %4339 = vmatmul.mubr.f32.vlgmr.msra.gmra.mrb[16].mxu1 %v6602_v35 }
 0x5c1   :  { %5108 = vmatpush1.bf16.msra.mxu0 %v6240_v19  ;;  %5139 = vmatpush3.bf16.msra.mxu1 %v6293_v6 }
 0x5c2   :  { %5110 = vmatprep.subr.bf16.mxu0 %v6253_v28  ;;  %5140 = vmatprep.subr.bf16.mxu1 %v6078_v60 }
 0x5c3   :  { %1596 = vmatprep.mubr.f32.mxu0 %v6076_v0  ;;  %4373 = vmatprep.mubr.msk.f32.mxu1 %vm6079_vm1, %v6076_v0 }
 0x5c5   :  { %5112 = vmatpush1.bf16.msra.mxu0 %v6263_v34  ;;  %5142 = vmatpush3.bf16.msra.mxu1 %v6303_v16 }
 0x5c6   :  { %5114 = vmatprep.subr.bf16.mxu0 %v6273_v46  ;;  %5143 = vmatprep.subr.bf16.mxu1 %v6078_v60 }
 0x5c9   :  { %5116 = vmatpush1.bf16.msra.mxu0 %v6277_v51  ;;  %5145 = vmatpush3.bf16.msra.mxu1 %v6315_v27 }
 0x5ca   :  { %5118 = vmatprep.subr.bf16.mxu0 %v6280_v53  ;;  %5146 = vmatprep.subr.bf16.mxu1 %v6078_v60 }
 0x5cd   :  { %5120 = vmatpush1.bf16.msra.mxu0 %v6285_v59  ;;  %5148 = vmatpush3.bf16.msra.mxu1 %v6325_v36 }
 0x5ce   :  { %5122 = vmatprep.subr.bf16.mxu0 %v6290_v61  ;;  %5149 = vmatprep.subr.bf16.mxu1 %v6078_v60 }
 0x5d1   :  { %5124 = vmatpush1.bf16.msra.mxu0 %v6296_v9  ;;  %5151 = vmatpush3.bf16.msra.mxu1 %v6333_v40 }
 0x5d2   :  { %5126 = vmatprep.subr.bf16.mxu0 %v6300_v10  ;;  %5152 = vmatprep.subr.bf16.mxu1 %v6078_v60 }
 0x5d5   :  { %5128 = vmatpush1.bf16.msra.mxu0 %v6309_v21  ;;  %5154 = vmatpush3.bf16.msra.mxu1 %v6341_v44 }
 0x5d6   :  { %5130 = vmatprep.subr.bf16.mxu0 %v6312_v22  ;;  %5155 = vmatprep.subr.bf16.mxu1 %v6078_v60 }
 0x5d9   :  { %5132 = vmatpush1.bf16.msra.mxu0 %v6319_v31  ;;  %5157 = vmatpush3.bf16.msra.mxu1 %v6349_v48 }
 0x5da   :  { %5134 = vmatprep.subr.bf16.mxu0 %v6322_v32  ;;  %5158 = vmatprep.subr.bf16.mxu1 %v6078_v60 }
 0x5dd   :  { %5136 = vmatpush1.bf16.msra.mxu0 %v6329_v39  ;;  %5160 = vmatpush3.bf16.msra.mxu1 %v6355_v52 }
 0x5de   :  { %5162 = vmatprep.subr.bf16.mxu0 %v6232_v13  ;;  %5193 = vmatprep.subr.bf16.mxu1 %v6078_v60 }
 0x693   :  { %v1425_v37 = vpop.f32.mrb[10].mxu0  ;;  %v1496_v38 = vpop.f32.mrb[16].mxu1 }
 0x694   :  { %v1426_v41 = vadd.f32 %v1425_v37, %v6418_v2  ;;  %v1427_v45 = vpop.f32.mrb[11].mxu0  ;;  %v4340_v47 = vpop.f32.mrb[17].mxu1  ;;  %v1497_v7 = vadd.f32 %v1496_v38, %v6426_v4 }
 0x695   :  { %v1428_v49 = vadd.f32 %v1427_v45, %v6421_v5  ;;  %v1976_v45 = vld [vmem:[#allocation4 + $0x2] sm:$0x3]  ;;  %v1977_v47 = vld [vmem:[#allocation4 + $0x4] sm:$0x3] }
 0x696   :  { %v1502_v50 = vadd.f32 %v1501_v42, %v1426_v41  ;;  %v1978_v41 = vld [vmem:[#allocation4 + $0x6] sm:$0x3] }
 0x697   :  { %v1512_v58 = vadd.f32 %v1510_v55, %v1428_v49  ;;  %v2008_v49 = vcombine.low %v1977_v47, %v1978_v41 }
 0x698   :  { %v3790_v57 = vmul.f32 -1.442695, %v1502_v50  ;;  %v1975_v50 = vld [vmem:[#allocation4] sm:$0x3] }
 0x699   :  { %v3791_v62 = vmul.f32 -1.442695, %v1512_v58  ;;  %v2007_v55 = vcombine.low %v1975_v50, %v1976_v45  ;;  %v1880_v58 = vld [vmem:[#allocation10 + $0x18] sm:$0xff]  ;;  %v1882_v45 = vld [vmem:[#allocation10 + $0x28] sm:$0xff] }
 0x69a   :  { %5817 = vpow2.f32 %v3790_v57  ;;  %v1877_v57 = vld [vmem:[#allocation10] sm:$0xff]  ;;  %v1888_v50 = vld [vmem:[#allocation10 + $0x58] sm:$0xff] }
 0x69b   :  { %5819 = vpow2.f32 %v3791_v62  ;;  %v2022_v62 = vrot.slane %v2008_v49, %v6238_v18  ;;  %v1885_v49 = vld [vmem:[#allocation10 + $0x40] sm:$0xff] }
 0x6a4   :  { %v5818_v43 = vpop.eup %5817 }
 0x6a5   :  { %v1506_v13 = vadd.f32 1.0, %v5818_v43  ;;  %v5820_v63 = vpop.eup %5819  ;;  %v1884_v43 = vld [vmem:[#allocation10 + $0x38] sm:$0xff] }
 0x6a6   :  { %v1516_v1 = vadd.f32 1.0, %v5820_v63  ;;  %v5219_v63 = vpack.c.bf16 %v1880_v58, %v1877_v57  ;;  %v1891_v57 = vld [vmem:[#allocation10 + $0x70] sm:$0xff]  ;;  %v1894_v58 = vld [vmem:[#allocation10 + $0x88] sm:$0xff] }
 0x6a7   :  { %5821 = vrcp.f32 %v1506_v13  ;;  %v1887_v13 = vld [vmem:[#allocation10 + $0x50] sm:$0xff] }
 0x6a8   :  { %5823 = vrcp.f32 %v1516_v1  ;;  %v2015_v1 = vrot.slane %v2007_v55, %v6238_v18  ;;  %v5253_v55 = vpack.c.bf16 %v1888_v50, %v1885_v49  ;;  %v1955_v49 = vld [vmem:[#allocation11 + $0xf0] sm:$0xff]  ;;  %v1958_v50 = vld [vmem:[#allocation11 + $0x108] sm:$0xff] }
 0x6b1   :  { %v5822_v8 = vpop.eup %5821 }
 0x6b2   :  { %v1519_v11 = vmul.f32 %v5822_v8, %v1497_v7  ;;  %v5824_v15 = vpop.eup %5823  ;;  %v5221_v7 = vpack.c.bf16 %v1887_v13, %v1884_v43  ;;  %v1883_v8 = vld [vmem:[#allocation10 + $0x30] sm:$0xff]  ;;  %v1897_v43 = vld [vmem:[#allocation10 + $0xa0] sm:$0xff]  ;;  %v1900_v13 = vld [vmem:[#allocation10 + $0xb8] sm:$0xff] }
 0x6b3   :  { %v1524_v17 = vsub.f32 1.0, %v5824_v15  ;;  %v1526_v24 = vmul.f32 %v5824_v15, %v6602_v35  ;;  %v1890_v15 = vld [vmem:[#allocation10 + $0x68] sm:$0xff] }
 0x6b4   :  { %v1522_v14 = vadd.f32 %v1520_v12, %v1519_v11  ;;  %v1886_v11 = vld [vmem:[#allocation10 + $0x48] sm:$0xff] }
 0x6b6   :  { %5825 = vtanh.f32 %v1522_v14  ;;  %v2023_v14 = vcombine.low %v2015_v1, %v2022_v62  ;;  %v5257_v62 = vpack.c.bf16 %v1894_v58, %v1891_v57  ;;  %v5261_v1 = vpack.c.bf16 %v1900_v13, %v1897_v43  ;;  %v1965_v58 = vld [vmem:[#allocation11 + $0x140] sm:$0xff]  ;;  %v1964_v43 = vld [vmem:[#allocation11 + $0x138] sm:$0xff] }
 0x6b7   :  { %v6727_v57 = vpack.c.bf16 %v1958_v50, %v1955_v49 }
 0x6c0   :  { %v5826_v20 = vpop.eup %5825 }
 0x6c1   :  { %v1525_v23 = vmul.f32 %v5826_v20, %v1524_v17  ;;  %v1893_v17 = vld [vmem:[#allocation10 + $0x80] sm:$0xff]  ;;  %v5223_v20 = vpack.c.bf16 %v1886_v11, %v1883_v8  ;;  %v1928_v11 = vld [vmem:[#allocation11 + $0x18] sm:$0xff] }
 0x6c2   :  { %v1925_v8 = vld [vmem:[#allocation11] sm:$0xff] }
 0x6c3   :  { %v1527_v25 = vadd.f32 %v1526_v24, %v1525_v23  ;;  %v5225_v23 = vpack.c.bf16 %v1893_v17, %v1890_v15  ;;  %v1889_v24 = vld [vmem:[#allocation10 + $0x60] sm:$0xff]  ;;  %v6696_v15 = vpack.c.bf16 %v1928_v11, %v1925_v8  ;;  %v1903_v17 = vld [vmem:[#allocation10 + $0xd0] sm:$0xff] }
 0x6c4   :  { %v1967_v11 = vld [vmem:[#allocation11 + $0x150] sm:$0xff] }
 0x6c5   :  { %1528 = vst [vmem:[#allocation3] sm:$0x3] %v1527_v25  ;;  %1530 = vst [vmem:[#allocation4 + $0xa] sm:$0x3] %v1527_v25  ;;  %v1892_v25 = vld [vmem:[#allocation10 + $0x78] sm:$0xff] }
 0x6cc   :  { %v6645_v26 = vld [vmem:[#allocation3] sm:$0x3] }
 0x6cd   :  { %1597 = vmatmul.mubr.f32.vlgmr.msra.gmra.mrb[12].mxu0 %v6645_v26  ;;  %4374 = vmatmul.mubr.f32.vlgmr.msra.gmra.mrb[18].mxu1 %v6645_v26 }
 0x6ce   :  { %5164 = vmatpush1.bf16.msra.mxu0 %v6240_v19  ;;  %5195 = vmatpush3.bf16.msra.mxu1 %v6293_v6  ;;  %v1878_v19 = vld [vmem:[#allocation10 + $0x8] sm:$0xff] }
 0x6cf   :  { %5166 = vmatprep.subr.bf16.mxu0 %v6253_v28  ;;  %5196 = vmatprep.subr.bf16.mxu1 %v6078_v60  ;;  %v1881_v28 = vld [vmem:[#allocation10 + $0x20] sm:$0xff] }
 0x6d0   :  { %1769 = vmatprep.mubr.f32.mxu0 %v6076_v0  ;;  %4408 = vmatprep.mubr.msk.f32.mxu1 %vm6079_vm1, %v6076_v0 }
 0x6d2   :  { %5168 = vmatpush1.bf16.msra.mxu0 %v6263_v34  ;;  %5198 = vmatpush3.bf16.msra.mxu1 %v6303_v16  ;;  %v5217_v34 = vpack.c.bf16 %v1881_v28, %v1878_v19  ;;  %v1899_v19 = vld [vmem:[#allocation10 + $0xb0] sm:$0xff]  ;;  %v5227_v28 = vpack.c.bf16 %v1892_v25, %v1889_v24 }
 0x6d3   :  { %5170 = vmatprep.subr.bf16.mxu0 %v6273_v46  ;;  %5199 = vmatprep.subr.bf16.mxu1 %v6078_v60  ;;  %v1935_v25 = vld [vmem:[#allocation11 + $0x50] sm:$0xff] }
 0x6d6   :  { %5172 = vmatpush1.bf16.msra.mxu0 %v6277_v51  ;;  %5201 = vmatpush3.bf16.msra.mxu1 %v6315_v27 }
 0x6d7   :  { %5174 = vmatprep.subr.bf16.mxu0 %v6280_v53  ;;  %5202 = vmatprep.subr.bf16.mxu1 %v6078_v60 }
 0x6da   :  { %5176 = vmatpush1.bf16.msra.mxu0 %v6285_v59  ;;  %5204 = vmatpush3.bf16.msra.mxu1 %v6325_v36  ;;  %v1674_v59 = vld [vmem:[#allocation2 + $0x24] sm:$0x3f] }
 0x6db   :  { %5178 = vmatprep.subr.bf16.mxu0 %v6290_v61  ;;  %5205 = vmatprep.subr.bf16.mxu1 %v6078_v60  ;;  %v1683_v16 = vrot.slane %v1674_v59, 2 }
 0x6de   :  { %5180 = vmatpush1.bf16.msra.mxu0 %v6296_v9  ;;  %5207 = vmatpush3.bf16.msra.mxu1 %v6333_v40 }
 0x6df   :  { %5182 = vmatprep.subr.bf16.mxu0 %v6300_v10  ;;  %5208 = vmatprep.subr.bf16.mxu1 %v6078_v60 }
 0x6e2   :  { %5184 = vmatpush1.bf16.msra.mxu0 %v6309_v21  ;;  %5210 = vmatpush3.bf16.msra.mxu1 %v6341_v44 }
 0x6e3   :  { %5186 = vmatprep.subr.bf16.mxu0 %v6312_v22  ;;  %5211 = vmatprep.subr.bf16.mxu1 %v6078_v60 }
 0x6e6   :  { %5188 = vmatpush1.bf16.msra.mxu0 %v6319_v31  ;;  %5213 = vmatpush3.bf16.msra.mxu1 %v6349_v48 }
 0x6e7   :  { %5190 = vmatprep.subr.bf16.mxu0 %v6322_v32  ;;  %5214 = vmatprep.subr.bf16.mxu1 %v6078_v60 }
 0x6ea   :  { %5192 = vmatpush1.bf16.msra.mxu0 %v6329_v39  ;;  %5216 = vmatpush3.bf16.msra.mxu1 %v6355_v52  ;;  %v1693_v52 = vrot.slane %v1674_v59, 4 }
 0x6eb   :  { %5218 = vmatprep.subr.bf16.mxu0 %v5217_v34 }
 0x7a0   :  { %v1598_v46 = vpop.f32.mrb[12].mxu0  ;;  %v1669_v51 = vpop.f32.mrb[18].mxu1 }
 0x7a1   :  { %v1599_v53 = vadd.f32 %v1598_v46, %v6418_v2  ;;  %v1600_v61 = vpop.f32.mrb[13].mxu0  ;;  %v4375_v6 = vpop.f32.mrb[19].mxu1  ;;  %v1670_v40 = vadd.f32 %v1669_v51, %v6426_v4  ;;  %v1895_v46 = vld [vmem:[#allocation10 + $0x90] sm:$0xff]  ;;  %v1898_v51 = vld [vmem:[#allocation10 + $0xa8] sm:$0xff] }
 0x7a2   :  { %v1601_v9 = vadd.f32 %v1600_v61, %v6421_v5  ;;  %v5231_v61 = vpack.c.bf16 %v1898_v51, %v1895_v46  ;;  %v1909_v46 = vld [vmem:[#allocation10 + $0x100] sm:$0xff]  ;;  %v1912_v51 = vld [vmem:[#allocation10 + $0x118] sm:$0xff] }
 0x7a3   :  { %v1675_v10 = vadd.f32 %v1674_v59, %v1599_v53  ;;  %v1902_v53 = vld [vmem:[#allocation10 + $0xc8] sm:$0xff]  ;;  %v1905_v59 = vld [vmem:[#allocation10 + $0xe0] sm:$0xff] }
 0x7a4   :  { %v1685_v22 = vadd.f32 %v1683_v16, %v1601_v9  ;;  %v5233_v6 = vpack.c.bf16 %v1905_v59, %v1902_v53  ;;  %v1901_v9 = vld [vmem:[#allocation10 + $0xc0] sm:$0xff]  ;;  %v1908_v16 = vld [vmem:[#allocation10 + $0xf8] sm:$0xff]  ;;  %v1938_v53 = vld [vmem:[#allocation11 + $0x68] sm:$0xff]  ;;  %v5269_v59 = vpack.c.bf16 %v1912_v51, %v1909_v46 }
 0x7a5   :  { %v3792_v21 = vmul.f32 -1.442695, %v1675_v10  ;;  %v1904_v10 = vld [vmem:[#allocation10 + $0xd8] sm:$0xff] }
 0x7a6   :  { %v3793_v27 = vmul.f32 -1.442695, %v1685_v22  ;;  %v5235_v22 = vpack.c.bf16 %v1904_v10, %v1901_v9  ;;  %v1940_v9 = vld [vmem:[#allocation11 + $0x78] sm:$0xff] }
 0x7a7   :  { %5827 = vpow2.f32 %v3792_v21  ;;  %v1911_v21 = vld [vmem:[#allocation10 + $0x110] sm:$0xff] }
 0x7a8   :  { %5829 = vpow2.f32 %v3793_v27  ;;  %v5237_v27 = vpack.c.bf16 %v1911_v21, %v1908_v16  ;;  %v1915_v21 = vld [vmem:[#allocation10 + $0x130] sm:$0xff] }
 0x7b1   :  { %v5828_v31 = vpop.eup %5827 }
 0x7b2   :  { %v1679_v32 = vadd.f32 1.0, %v5828_v31  ;;  %v5830_v36 = vpop.eup %5829  ;;  %v1907_v31 = vld [vmem:[#allocation10 + $0xf0] sm:$0xff] }
 0x7b3   :  { %v1689_v39 = vadd.f32 1.0, %v5830_v36  ;;  %v1914_v36 = vld [vmem:[#allocation10 + $0x128] sm:$0xff] }
 0x7b4   :  { %5831 = vrcp.f32 %v1679_v32  ;;  %v1910_v32 = vld [vmem:[#allocation10 + $0x108] sm:$0xff] }
 0x7b5   :  { %5833 = vrcp.f32 %v1689_v39  ;;  %v1917_v39 = vld [vmem:[#allocation10 + $0x140] sm:$0xff] }
 0x7be   :  { %v5832_v44 = vpop.eup %5831 }
 0x7bf   :  { %v1692_v48 = vmul.f32 %v5832_v44, %v1670_v40  ;;  %v5834_v30 = vpop.eup %5833  ;;  %v5239_v40 = vpack.c.bf16 %v1910_v32, %v1907_v31  ;;  %v5241_v44 = vpack.c.bf16 %v1917_v39, %v1914_v36  ;;  %v1947_v32 = vld [vmem:[#allocation11 + $0xb0] sm:$0xff]  ;;  %v1946_v39 = vld [vmem:[#allocation11 + $0xa8] sm:$0xff] }
 0x7c0   :  { %v1697_v33 = vsub.f32 1.0, %v5834_v30  ;;  %v1699_v38 = vmul.f32 %v5834_v30, %v6645_v26  ;;  %v1896_v26 = vld [vmem:[#allocation10 + $0x98] sm:$0xff]  ;;  %v1923_v30 = vld [vmem:[#allocation10 + $0x170] sm:$0xff] }
 0x7c1   :  { %v1695_v29 = vadd.f32 %v1693_v52, %v1692_v48  ;;  %v5229_v34 = vpack.c.bf16 %v1899_v19, %v1896_v26  ;;  %v1913_v48 = vld [vmem:[#allocation10 + $0x120] sm:$0xff]  ;;  %v1916_v52 = vld [vmem:[#allocation10 + $0x138] sm:$0xff]  ;;  %v1931_v26 = vld [vmem:[#allocation11 + $0x30] sm:$0xff] }
 0x7c2   :  { %v1934_v19 = vld [vmem:[#allocation11 + $0x48] sm:$0xff]  ;;  %v1943_v36 = vld [vmem:[#allocation11 + $0x90] sm:$0xff] }
 0x7c3   :  { %5835 = vtanh.f32 %v1695_v29  ;;  %v1920_v29 = vld [vmem:[#allocation10 + $0x158] sm:$0xff] }
 0x7cd   :  { %v5836_v35 = vpop.eup %5835 }
 0x7ce   :  { %v1698_v37 = vmul.f32 %v5836_v35, %v1697_v33  ;;  %v5243_v33 = vpack.c.bf16 %v1916_v52, %v1913_v48  ;;  %v5245_v35 = vpack.c.bf16 %v1923_v30, %v1920_v29  ;;  %v1924_v48 = vld [vmem:[#allocation10 + $0x178] sm:$0xff]  ;;  %v1950_v52 = vld [vmem:[#allocation11 + $0xc8] sm:$0xff]  ;;  %v6714_v29 = vpack.c.bf16 %v1946_v39, %v1943_v36 }
 0x7d0   :  { %v1700_v42 = vadd.f32 %v1699_v38, %v1698_v37  ;;  %v1919_v37 = vld [vmem:[#allocation10 + $0x150] sm:$0xff]  ;;  %v1922_v38 = vld [vmem:[#allocation10 + $0x168] sm:$0xff] }
 0x7d1   :  { %v5247_v41 = vpack.c.bf16 %v1922_v38, %v1919_v37  ;;  %v1949_v37 = vld [vmem:[#allocation11 + $0xc0] sm:$0xff]  ;;  %v1952_v38 = vld [vmem:[#allocation11 + $0xd8] sm:$0xff] }
 0x7d2   :  { %1701 = vst [vmem:[#allocation3] sm:$0x3] %v1700_v42  ;;  %1703 = vst [vmem:[#allocation4 + $0xc] sm:$0x3] %v1700_v42  ;;  %v1879_v42 = vld [vmem:[#allocation10 + $0x10] sm:$0xff] }
 0x7d3   :  { %v5249_v47 = vpack.c.bf16 %v1882_v45, %v1879_v42  ;;  %v1956_v42 = vld [vmem:[#allocation11 + $0xf8] sm:$0xff]  ;;  %v1959_v45 = vld [vmem:[#allocation11 + $0x110] sm:$0xff] }
 0x7d5   :  { %5250 = vmatprep.subr.bf16.mxu1 %v5249_v47 }
 0x7d9   :  { %v6688_v12 = vld [vmem:[#allocation3] sm:$0x3] }
 0x7da   :  { %1770 = vmatmul.mubr.f32.vlgmr.msra.gmra.mrb[14].mxu0 %v6688_v12  ;;  %4409 = vmatmul.mubr.f32.vlgmr.msra.gmra.mrb[20].mxu1 %v6688_v12 }
 0x7db   :  { %5220 = vmatpush1.bf16.msra.mxu0 %v5219_v63  ;;  %4443 = vmatprep.mubr.f32.mxu1 %v2023_v14  ;;  %v1926_v63 = vld [vmem:[#allocation11 + $0x8] sm:$0xff] }
 0x7dc   :  { %5222 = vmatprep.subr.bf16.mxu0 %v5221_v7  ;;  %2107 = vmatprep.mubr.f32.mxu0 %v6076_v0  ;;  %v1929_v7 = vld [vmem:[#allocation11 + $0x20] sm:$0xff] }
 0x7dd   :  { %5252 = vmatpush3.bf16.msra.mxu1 %v5249_v47  ;;  %v6724_v47 = vpack.c.bf16 %v1959_v45, %v1956_v42 }
 0x7de   :  { %5254 = vmatprep.subr.bf16.mxu1 %v5253_v55 }
 0x7df   :  { %5224 = vmatpush1.bf16.msra.mxu0 %v5223_v20  ;;  %v1906_v20 = vld [vmem:[#allocation10 + $0xe8] sm:$0xff] }
 0x7e0   :  { %5226 = vmatprep.subr.bf16.mxu0 %v5225_v23  ;;  %v1932_v23 = vld [vmem:[#allocation11 + $0x38] sm:$0xff]  ;;  %v5265_v24 = vpack.c.bf16 %v1906_v20, %v1903_v17  ;;  %v1970_v17 = vld [vmem:[#allocation11 + $0x168] sm:$0xff] }
 0x7e1   :  { %5256 = vmatpush3.bf16.msra.mxu1 %v5253_v55  ;;  %v1962_v55 = vld [vmem:[#allocation11 + $0x128] sm:$0xff]  ;;  %v6739_v20 = vpack.c.bf16 %v1970_v17, %v1967_v11 }
 0x7e2   :  { %5258 = vmatprep.subr.bf16.mxu1 %v5257_v62  ;;  %v6730_v13 = vpack.c.bf16 %v1965_v58, %v1962_v55  ;;  %v1981_v11 = vld [vmem:[#allocation4 + $0xc] sm:$0x3] }
 0x7e3   :  { %5228 = vmatpush1.bf16.msra.mxu0 %v5227_v28  ;;  %v6700_v28 = vpack.c.bf16 %v1935_v25, %v1932_v23 }
 0x7e4   :  { %5230 = vmatprep.subr.bf16.mxu0 %v5229_v34  ;;  %v6702_v34 = vpack.c.bf16 %v1934_v19, %v1931_v26  ;;  %v1847_v26 = vld [vmem:[#allocation2 + $0x2a] sm:$0x3f] }
 0x7e5   :  { %5260 = vmatpush3.bf16.msra.mxu1 %v5257_v62  ;;  %v1961_v62 = vld [vmem:[#allocation11 + $0x120] sm:$0xff] }
 0x7e6   :  { %5262 = vmatprep.subr.bf16.mxu1 %v5261_v1 }
 0x7e7   :  { %5232 = vmatpush1.bf16.msra.mxu0 %v5231_v61  ;;  %v1941_v61 = vld [vmem:[#allocation11 + $0x80] sm:$0xff] }
 0x7e8   :  { %5234 = vmatprep.subr.bf16.mxu0 %v5233_v6  ;;  %v1937_v6 = vld [vmem:[#allocation11 + $0x60] sm:$0xff]  ;;  %v6706_v10 = vpack.c.bf16 %v1941_v61, %v1938_v53 }
 0x7e9   :  { %5264 = vmatpush3.bf16.msra.mxu1 %v5261_v1  ;;  %v6708_v16 = vpack.c.bf16 %v1940_v9, %v1937_v6  ;;  %v1971_v1 = vld [vmem:[#allocation11 + $0x170] sm:$0xff] }
 0x7ea   :  { %5266 = vmatprep.subr.bf16.mxu1 %v5265_v24 }
 0x7eb   :  { %5236 = vmatpush1.bf16.msra.mxu0 %v5235_v22  ;;  %v1918_v22 = vld [vmem:[#allocation10 + $0x148] sm:$0xff] }
 0x7ec   :  { %5238 = vmatprep.subr.bf16.mxu0 %v5237_v27  ;;  %v1944_v27 = vld [vmem:[#allocation11 + $0x98] sm:$0xff]  ;;  %v5273_v31 = vpack.c.bf16 %v1918_v22, %v1915_v21 }
 0x7ed   :  { %5268 = vmatpush3.bf16.msra.mxu1 %v5265_v24 }
 0x7ee   :  { %5270 = vmatprep.subr.bf16.mxu1 %v5269_v59 }
 0x7ef   :  { %5240 = vmatpush1.bf16.msra.mxu0 %v5239_v40  ;;  %v6711_v40 = vpack.c.bf16 %v1947_v32, %v1944_v27 }
 0x7f0   :  { %5242 = vmatprep.subr.bf16.mxu0 %v5241_v44  ;;  %v1921_v44 = vld [vmem:[#allocation10 + $0x160] sm:$0xff] }
 0x7f1   :  { %5272 = vmatpush3.bf16.msra.mxu1 %v5269_v59  ;;  %v5277_v30 = vpack.c.bf16 %v1924_v48, %v1921_v44  ;;  %v1856_v59 = vrot.slane %v1847_v26, 2  ;;  %v1866_v48 = vrot.slane %v1847_v26, 4 }
 0x7f2   :  { %5274 = vmatprep.subr.bf16.mxu1 %v5273_v31 }
 0x7f3   :  { %5244 = vmatpush1.bf16.msra.mxu0 %v5243_v33  ;;  %v1953_v33 = vld [vmem:[#allocation11 + $0xe0] sm:$0xff] }
 0x7f4   :  { %5246 = vmatprep.subr.bf16.mxu0 %v5245_v35  ;;  %v6717_v35 = vpack.c.bf16 %v1953_v33, %v1950_v52 }
 0x7f5   :  { %5276 = vmatpush3.bf16.msra.mxu1 %v5273_v31 }
 0x7f6   :  { %5278 = vmatprep.subr.bf16.mxu1 %v5277_v30 }
 0x7f7   :  { %5248 = vmatpush1.bf16.msra.mxu0 %v5247_v41  ;;  %v6720_v41 = vpack.c.bf16 %v1952_v38, %v1949_v37 }
 0x7f9   :  { %5280 = vmatpush3.bf16.msra.mxu1 %v5277_v30 }
 0x7fa   :  { %2108 = vmatmul.mubr.f32.vlgmr.msra.gmra.mrb[16].mxu0 %v2023_v14  ;;  %v6694_v14 = vpack.c.bf16 %v1929_v7, %v1926_v63  ;;  %5313 = vmatprep.subr.bf16.mxu1 %v6078_v60  ;;  %v1968_v63 = vld [vmem:[#allocation11 + $0x158] sm:$0xff]  ;;  %v6733_v7 = vpack.c.bf16 %v1964_v43, %v1961_v62  ;;  %v1980_v43 = vld [vmem:[#allocation4 + $0xa] sm:$0x3] }
 0x7fb   :  { %2113 = vmatprep.mubr.f32.mxu0 %v6076_v0  ;;  %v6736_v8 = vpack.c.bf16 %v1971_v1, %v1968_v63  ;;  %v1979_v63 = vld [vmem:[#allocation4 + $0x8] sm:$0x3] }
 0x7fc   :  { %5282 = vmatprep.subr.bf16.mxu0 %v6694_v14  ;;  %v2024_v1 = vcombine.low %v1979_v63, %v1980_v43 }
 0x7fd   :  { %5284 = vmatpush1.bf16.msra.mxu0 %v6696_v15 }
 0x7fe   :  { %5286 = vmatprep.subr.bf16.mxu0 %v6700_v28 }
 0x801   :  { %5288 = vmatpush1.bf16.msra.mxu0 %v6702_v34 }
 0x802   :  { %5290 = vmatprep.subr.bf16.mxu0 %v6706_v10 }
 0x805   :  { %5292 = vmatpush1.bf16.msra.mxu0 %v6708_v16 }
 0x806   :  { %5294 = vmatprep.subr.bf16.mxu0 %v6711_v40 }
 0x809   :  { %5296 = vmatpush1.bf16.msra.mxu0 %v6714_v29 }
 0x80a   :  { %5298 = vmatprep.subr.bf16.mxu0 %v6717_v35 }
 0x80d   :  { %5300 = vmatpush1.bf16.msra.mxu0 %v6720_v41 }
 0x80e   :  { %5302 = vmatprep.subr.bf16.mxu0 %v6724_v47 }
 0x811   :  { %5304 = vmatpush1.bf16.msra.mxu0 %v6727_v57 }
 0x812   :  { %5306 = vmatprep.subr.bf16.mxu0 %v6730_v13 }
 0x815   :  { %5308 = vmatpush1.bf16.msra.mxu0 %v6733_v7 }
 0x816   :  { %5310 = vmatprep.subr.bf16.mxu0 %v6736_v8 }
 0x819   :  { %5312 = vmatpush1.bf16.msra.mxu0 %v6739_v20 }
 0x81a   :  { %5338 = vmatprep.subr.bf16.mxu0 %v6694_v14 }
 0x8ad   :  { %v1771_v23 = vpop.f32.mrb[14].mxu0  ;;  %v1842_v24 = vpop.f32.mrb[20].mxu1 }
 0x8ae   :  { %v1772_v25 = vadd.f32 %v1771_v23, %v6418_v2  ;;  %v1773_v19 = vpop.f32.mrb[15].mxu0  ;;  %v4410_v46 = vpop.f32.mrb[21].mxu1  ;;  %v6749_v2 = vld [vmem:[%s7178_s7] sm:$0x7]  ;;  %v1843_v32 = vadd.f32 %v1842_v24, %v6426_v4 }
 0x8af   :  { %v1774_v51 = vadd.f32 %v1773_v19, %v6421_v5  ;;  %v6754_v5 = vrot.slane %v6749_v2, %v6392_v54  ;;  %v6758_v39 = vrot.slane %v6749_v2, %v6398_v56  ;;  %v1927_v24 = vld [vmem:[#allocation11 + $0x10] sm:$0xff] }
 0x8b0   :  { %v1848_v53 = vadd.f32 %v1847_v26, %v1772_v25  ;;  %v1930_v25 = vld [vmem:[#allocation11 + $0x28] sm:$0xff]  ;;  %v2032_v26 = vrot.slane %v2024_v1, %v6238_v18 }
 0x8b1   :  { %v1858_v6 = vadd.f32 %v1856_v59, %v1774_v51  ;;  %v6774_v46 = vpack.c.bf16 %v1930_v25, %v1927_v24  ;;  %v1933_v51 = vld [vmem:[#allocation11 + $0x40] sm:$0xff] }
 0x8b2   :  { %v3794_v61 = vmul.f32 -1.442695, %v1848_v53  ;;  %v1936_v53 = vld [vmem:[#allocation11 + $0x58] sm:$0xff] }
 0x8b3   :  { %v3795_v9 = vmul.f32 -1.442695, %v1858_v6  ;;  %v1939_v6 = vld [vmem:[#allocation11 + $0x70] sm:$0xff] }
 0x8b4   :  { %5837 = vpow2.f32 %v3794_v61  ;;  %v6780_v61 = vpack.c.bf16 %v1936_v53, %v1933_v51 }
 0x8b5   :  { %5839 = vpow2.f32 %v3795_v9  ;;  %v1942_v9 = vld [vmem:[#allocation11 + $0x88] sm:$0xff] }
 0x8be   :  { %v5838_v21 = vpop.eup %5837 }
 0x8bf   :  { %v1852_v22 = vadd.f32 1.0, %v5838_v21  ;;  %v5840_v27 = vpop.eup %5839  ;;  %v6787_v21 = vpack.c.bf16 %v1942_v9, %v1939_v6 }
 0x8c0   :  { %v1862_v31 = vadd.f32 1.0, %v5840_v27  ;;  %v1948_v27 = vld [vmem:[#allocation11 + $0xb8] sm:$0xff] }
 0x8c1   :  { %5841 = vrcp.f32 %v1852_v22  ;;  %v1945_v22 = vld [vmem:[#allocation11 + $0xa0] sm:$0xff] }
 0x8c2   :  { %5843 = vrcp.f32 %v1862_v31  ;;  %v6794_v31 = vpack.c.bf16 %v1948_v27, %v1945_v22 }
 0x8cb   :  { %v5842_v36 = vpop.eup %5841 }
 0x8cc   :  { %v1865_v44 = vmul.f32 %v5842_v36, %v1843_v32  ;;  %v5844_v45 = vpop.eup %5843  ;;  %v1951_v32 = vld [vmem:[#allocation11 + $0xd0] sm:$0xff]  ;;  %v1954_v36 = vld [vmem:[#allocation11 + $0xe8] sm:$0xff] }
 0x8cd   :  { %v2109_v52 = vpop.f32.mrb[16].mxu0  ;;  %v1870_v49 = vsub.f32 1.0, %v5844_v45  ;;  %v1872_v58 = vmul.f32 %v5844_v45, %v6688_v12  ;;  %v1966_v45 = vld [vmem:[#allocation11 + $0x148] sm:$0xff] }
 0x8ce   :  { %v1868_v30 = vadd.f32 %v1866_v48, %v1865_v44  ;;  %v6761_v33 = vadd.f32 %v2109_v52, %v6754_v5  ;;  %v2111_v37 = vpop.f32.mrb[17].mxu0  ;;  %v6800_v44 = vpack.c.bf16 %v1954_v36, %v1951_v32  ;;  %v1957_v48 = vld [vmem:[#allocation11 + $0x100] sm:$0xff]  ;;  %v1960_v52 = vld [vmem:[#allocation11 + $0x118] sm:$0xff] }
 0x8cf   :  { %v6764_v4 = vadd.f32 %v2111_v37, %v6758_v39  ;;  %v1963_v37 = vld [vmem:[#allocation11 + $0x130] sm:$0xff] }
 0x8d0   :  { %5845 = vtanh.f32 %v1868_v30  ;;  %v6806_v30 = vpack.c.bf16 %v1960_v52, %v1957_v48 }
 0x8d1   :  { %v2201_v38 = vcombine.low %v6761_v33, %v6764_v4  ;;  %v2202_v42 = vcombine.high %v6761_v33, %v6764_v4 }
 0x8d3   :  { %v2217_v52 = vrot.slane %v2202_v42, %v6238_v18 }
 0x8da   :  { %v5846_v50 = vpop.eup %5845 }
 0x8db   :  { %v1871_v55 = vmul.f32 %v5846_v50, %v1870_v49  ;;  %v6812_v49 = vpack.c.bf16 %v1966_v45, %v1963_v37  ;;  %v1969_v50 = vld [vmem:[#allocation11 + $0x160] sm:$0xff] }
 0x8dd   :  { %v1873_v62 = vadd.f32 %v1872_v58, %v1871_v55  ;;  %v1972_v55 = vld [vmem:[#allocation11 + $0x178] sm:$0xff] }
 0x8de   :  { %v6818_v58 = vpack.c.bf16 %v1972_v55, %v1969_v50 }
 0x8df   :  { %1874 = vst [vmem:[#allocation3] sm:$0x3] %v1873_v62  ;;  %1876 = vst [vmem:[#allocation4 + $0xe] sm:$0x3] %v1873_v62  ;;  %v1995_v62 = vrot.slane %v6749_v2, %v6403_v3  ;;  %v1974_v2 = vld [vmem:[%s7179_s8] sm:$0x7] }
 0x8e0   :  { %2287 = vst [vmem:[#allocation3] sm:$0x3] %v6076_v0  ;;  %v6866_v48 = vrot.slane %v1974_v2, %v6392_v54  ;;  %v6874_v33 = vrot.slane %v1974_v2, %v6398_v56 }
 0x8e6   :  { %v1982_v17 = vld [vmem:[#allocation4 + $0xe] sm:$0x3] }
 0x8e7   :  { %v2025_v23 = vcombine.low %v1981_v11, %v1982_v17  ;;  %v6778_v59 = vld [vmem:[#allocation3] sm:$0x3] }
 0x8e9   :  { %v2039_v19 = vrot.slane %v2025_v23, %v6238_v18 }
 0x8eb   :  { %v2040_v12 = vcombine.low %v2032_v26, %v2039_v19  ;;  %v2210_v26 = vrot.slane %v2201_v38, %v6238_v18 }
 0x8ed   :  { %2114 = vmatmul.mubr.f32.gmra.mrb[18].mxu0 %v2040_v12  ;;  %4444 = vmatmul.mubr.f32.vlgmr.msra.gmra.mrb[22].mxu1 %v2040_v12 }
 0x8ee   :  { %5315 = vmatpush3.bf16.msra.mxu1 %v6774_v46  ;;  %2369 = vmatprep.mubr.f32.mxu0 %v6076_v0 }
 0x8ef   :  { %5316 = vmatprep.subr.bf16.mxu1 %v6078_v60  ;;  %4478 = vmatprep.mubr.msk.f32.mxu1 %vm6079_vm1, %v6076_v0 }
 0x8f1   :  { %2370 = vmatmul.mubr.f32.vlgmr.msra.gmra.mrb[20].mxu0 %v6778_v59 }
 0x8f2   :  { %5318 = vmatpush3.bf16.msra.mxu1 %v6780_v61  ;;  %5340 = vmatpush1.bf16.msra.mxu0 %v6696_v15 }
 0x8f3   :  { %5319 = vmatprep.subr.bf16.mxu1 %v6078_v60  ;;  %5342 = vmatprep.subr.bf16.mxu0 %v6700_v28 }
 0x8f4   :  { %2539 = vmatprep.mubr.f32.mxu0 %v6076_v0 }
 0x8f6   :  { %5321 = vmatpush3.bf16.msra.mxu1 %v6787_v21  ;;  %5344 = vmatpush1.bf16.msra.mxu0 %v6702_v34 }
 0x8f7   :  { %5322 = vmatprep.subr.bf16.mxu1 %v6078_v60  ;;  %5346 = vmatprep.subr.bf16.mxu0 %v6706_v10 }
 0x8fa   :  { %5324 = vmatpush3.bf16.msra.mxu1 %v6794_v31  ;;  %5348 = vmatpush1.bf16.msra.mxu0 %v6708_v16 }
 0x8fb   :  { %5325 = vmatprep.subr.bf16.mxu1 %v6078_v60  ;;  %5350 = vmatprep.subr.bf16.mxu0 %v6711_v40 }
 0x8fe   :  { %5327 = vmatpush3.bf16.msra.mxu1 %v6800_v44  ;;  %5352 = vmatpush1.bf16.msra.mxu0 %v6714_v29 }
 0x8ff   :  { %5328 = vmatprep.subr.bf16.mxu1 %v6078_v60  ;;  %5354 = vmatprep.subr.bf16.mxu0 %v6717_v35 }
 0x902   :  { %5330 = vmatpush3.bf16.msra.mxu1 %v6806_v30  ;;  %5356 = vmatpush1.bf16.msra.mxu0 %v6720_v41 }
 0x903   :  { %5331 = vmatprep.subr.bf16.mxu1 %v6078_v60  ;;  %5358 = vmatprep.subr.bf16.mxu0 %v6724_v47 }
 0x906   :  { %5333 = vmatpush3.bf16.msra.mxu1 %v6812_v49  ;;  %5360 = vmatpush1.bf16.msra.mxu0 %v6727_v57 }
 0x907   :  { %5334 = vmatprep.subr.bf16.mxu1 %v6078_v60  ;;  %5362 = vmatprep.subr.bf16.mxu0 %v6730_v13 }
 0x90a   :  { %5336 = vmatpush3.bf16.msra.mxu1 %v6818_v58  ;;  %5364 = vmatpush1.bf16.msra.mxu0 %v6733_v7 }
 0x90b   :  { %5369 = vmatprep.subr.bf16.mxu1 %v6078_v60  ;;  %5366 = vmatprep.subr.bf16.mxu0 %v6736_v8 }
 0x90d   :  { %4479 = vmatmul.mubr.f32.vlgmr.msra.gmra.mrb[24].mxu1 %v6778_v59 }
 0x90e   :  { %5371 = vmatpush3.bf16.msra.mxu1 %v6774_v46  ;;  %5368 = vmatpush1.bf16.msra.mxu0 %v6739_v20 }
 0x90f   :  { %5372 = vmatprep.subr.bf16.mxu1 %v6078_v60  ;;  %4513 = vmatprep.mubr.msk.f32.mxu1 %vm6079_vm1, %v6076_v0 }
 0x910   :  { %5394 = vmatprep.subr.bf16.mxu0 %v6694_v14 }
 0x912   :  { %5374 = vmatpush3.bf16.msra.mxu1 %v6780_v61 }
 0x913   :  { %5375 = vmatprep.subr.bf16.mxu1 %v6078_v60 }
 0x916   :  { %5377 = vmatpush3.bf16.msra.mxu1 %v6787_v21 }
 0x917   :  { %5378 = vmatprep.subr.bf16.mxu1 %v6078_v60 }
 0x91a   :  { %5380 = vmatpush3.bf16.msra.mxu1 %v6794_v31 }
 0x91b   :  { %5381 = vmatprep.subr.bf16.mxu1 %v6078_v60 }
 0x91e   :  { %5383 = vmatpush3.bf16.msra.mxu1 %v6800_v44 }
 0x91f   :  { %5384 = vmatprep.subr.bf16.mxu1 %v6078_v60 }
 0x922   :  { %5386 = vmatpush3.bf16.msra.mxu1 %v6806_v30 }
 0x923   :  { %5387 = vmatprep.subr.bf16.mxu1 %v6078_v60 }
 0x926   :  { %5389 = vmatpush3.bf16.msra.mxu1 %v6812_v49 }
 0x927   :  { %5390 = vmatprep.subr.bf16.mxu1 %v6078_v60 }
 0x92a   :  { %5392 = vmatpush3.bf16.msra.mxu1 %v6818_v58 }
 0x92b   :  { %5425 = vmatprep.subr.bf16.mxu1 %v6078_v60 }
 0x9c0   :  { %v2115_v43 = vpop.f32.mrb[18].mxu0  ;;  %v4445_v63 = vpop.f32.mrb[22].mxu1 }
 0x9c1   :  { %v2116_v1 = vadd.f32 %v2115_v43, %v6754_v5  ;;  %v2192_v11 = vadd.f32 %v4445_v63, %v1995_v62  ;;  %v2117_v17 = vpop.f32.mrb[19].mxu0  ;;  %v2186_v23 = vpop.f32.mrb[23].mxu1 }
 0x9c2   :  { %v2118_v24 = vadd.f32 %v2117_v17, %v6758_v39  ;;  %v2187_v25 = vadd.f32 %v2186_v23, %v1995_v62 }
 0x9c3   :  { %v2238_v19 = vcombine.high %v2192_v11, %v2192_v11  ;;  %v2259_v9 = vrot.slane %v2192_v11, %v6238_v18 }
 0x9c4   :  { %v2236_v12 = vcombine.low %v2116_v1, %v2118_v24  ;;  %v2237_v51 = vcombine.high %v2116_v1, %v2118_v24  ;;  %v2203_v53 = vcombine.high %v2187_v25, %v2187_v25  ;;  %v2224_v5 = vrot.slane %v2187_v25, %v6238_v18  ;;  %v2371_v6 = vpop.f32.mrb[20].mxu0 }
 0x9c5   :  { %v2266_v39 = vrot.slane %v2238_v19, %v6238_v18  ;;  %v2373_v22 = vpop.f32.mrb[21].mxu0  ;;  %v2372_v54 = vadd.f32 %v2371_v6, %v6866_v48 }
 0x9c6   :  { %v2245_v27 = vrot.slane %v2236_v12, %v6238_v18  ;;  %v2252_v38 = vrot.slane %v2237_v51, %v6238_v18  ;;  %v2231_v32 = vrot.slane %v2203_v53, %v6238_v18  ;;  %v2232_v36 = vcombine.low %v2210_v26, %v2224_v5 }
 0x9c7   :  { %v2233_v37 = vcombine.high %v2210_v26, %v2224_v5  ;;  %v2374_v1 = vadd.f32 %v2373_v22, %v6874_v33  ;;  %v6878_v12 = vrot.slane %v1974_v2, %v6403_v3 }
 0x9c8   :  { %v2267_v45 = vcombine.low %v2245_v27, %v2259_v9  ;;  %v2268_v50 = vcombine.high %v2245_v27, %v2259_v9  ;;  %v2269_v55 = vcombine.low %v2252_v38, %v2266_v39  ;;  %v2270_v62 = vcombine.high %v2252_v38, %v2266_v39  ;;  %2279 = vst [vmem:[#allocation2] sm:$0x3f] %v2232_v36 }
 0x9c9   :  { %v2234_v43 = vcombine.low %v2217_v52, %v2231_v32  ;;  %v2235_v63 = vcombine.high %v2217_v52, %v2231_v32  ;;  %2280 = vst [vmem:[#allocation2 + $0x6] sm:$0x3f] %v2233_v37 }
 0x9ca   :  { %2283 = vst [vmem:[#allocation2 + $0x18] sm:$0x3f] %v2267_v45  ;;  %2284 = vst [vmem:[#allocation2 + $0x1e] sm:$0x3f] %v2268_v50 }
 0x9cb   :  { %2285 = vst [vmem:[#allocation2 + $0x24] sm:$0x3f] %v2269_v55  ;;  %2286 = vst [vmem:[#allocation2 + $0x2a] sm:$0x3f] %v2270_v62 }
 0x9cc   :  { %2281 = vst [vmem:[#allocation2 + $0xc] sm:$0x3f] %v2234_v43  ;;  %2282 = vst [vmem:[#allocation2 + $0x12] sm:$0x3f] %v2235_v63 }
 0x9cf   :  { %v2446_v18 = vld [vmem:[#allocation2] sm:$0x3f] }
 0x9d0   :  { %v2447_v4 = vadd.f32 %v2446_v18, %v2372_v54  ;;  %v2455_v42 = vrot.slane %v2446_v18, 2  ;;  %v2465_v9 = vrot.slane %v2446_v18, 4  ;;  %v2616_v45 = vld [vmem:[#allocation2 + $0x6] sm:$0x3f] }
 0x9d1   :  { %v2625_v63 = vrot.slane %v2616_v45, 2 }
 0x9d2   :  { %v3796_v11 = vmul.f32 -1.442695, %v2447_v4  ;;  %v2457_v17 = vadd.f32 %v2455_v42, %v2374_v1 }
 0x9d4   :  { %5847 = vpow2.f32 %v3796_v11  ;;  %v3797_v23 = vmul.f32 -1.442695, %v2457_v17 }
 0x9d6   :  { %5849 = vpow2.f32 %v3797_v23 }
 0x9de   :  { %v5848_v24 = vpop.eup %5847 }
 0x9df   :  { %v2451_v25 = vadd.f32 1.0, %v5848_v24 }
 0x9e0   :  { %v2442_v26 = vpop.f32.mrb[24].mxu1  ;;  %v5850_v56 = vpop.eup %5849 }
 0x9e1   :  { %5851 = vrcp.f32 %v2451_v25  ;;  %v4480_v19 = vpop.f32.mrb[25].mxu1  ;;  %v2461_v51 = vadd.f32 1.0, %v5850_v56  ;;  %v2443_v53 = vadd.f32 %v2442_v26, %v6878_v12  ;;  %v2635_v26 = vrot.slane %v2616_v45, 4 }
 0x9e3   :  { %5853 = vrcp.f32 %v2461_v51 }
 0x9eb   :  { %v5852_v5 = vpop.eup %5851 }
 0x9ec   :  { %v2464_v6 = vmul.f32 %v5852_v5, %v2443_v53 }
 0x9ed   :  { %v5854_v22 = vpop.eup %5853 }
 0x9ee   :  { %v2467_v39 = vadd.f32 %v2465_v9, %v2464_v6  ;;  %v2469_v27 = vsub.f32 1.0, %v5854_v22  ;;  %v2471_v32 = vmul.f32 %v5854_v22, %v6778_v59 }
 0x9f0   :  { %5855 = vtanh.f32 %v2467_v39 }
 0x9fa   :  { %v5856_v38 = vpop.eup %5855 }
 0x9fb   :  { %v2470_v36 = vmul.f32 %v5856_v38, %v2469_v27 }
 0x9fd   :  { %v2472_v52 = vadd.f32 %v2471_v32, %v2470_v36  ;;  %v2786_v32 = vld [vmem:[#allocation2 + $0xc] sm:$0x3f] }
 0x9ff   :  { %2473 = vst [vmem:[#allocation3] sm:$0x3] %v2472_v52 }
 0xa06   :  { %v6882_v3 = vld [vmem:[#allocation3] sm:$0x3] }
 0xa07   :  { %2540 = vmatmul.mubr.f32.vlgmr.msra.gmra.mrb[22].mxu0 %v6882_v3  ;;  %4514 = vmatmul.mubr.f32.vlgmr.msra.gmra.mrb[26].mxu1 %v6882_v3 }
 0xa08   :  { %5396 = vmatpush1.bf16.msra.mxu0 %v6696_v15  ;;  %5427 = vmatpush3.bf16.msra.mxu1 %v6774_v46 }
 0xa09   :  { %5398 = vmatprep.subr.bf16.mxu0 %v6700_v28  ;;  %5428 = vmatprep.subr.bf16.mxu1 %v6078_v60 }
 0xa0a   :  { %2709 = vmatprep.mubr.f32.mxu0 %v6076_v0  ;;  %4548 = vmatprep.mubr.msk.f32.mxu1 %vm6079_vm1, %v6076_v0 }
 0xa0c   :  { %5400 = vmatpush1.bf16.msra.mxu0 %v6702_v34  ;;  %5430 = vmatpush3.bf16.msra.mxu1 %v6780_v61 }
 0xa0d   :  { %5402 = vmatprep.subr.bf16.mxu0 %v6706_v10  ;;  %5431 = vmatprep.subr.bf16.mxu1 %v6078_v60 }
 0xa10   :  { %5404 = vmatpush1.bf16.msra.mxu0 %v6708_v16  ;;  %5433 = vmatpush3.bf16.msra.mxu1 %v6787_v21 }
 0xa11   :  { %5406 = vmatprep.subr.bf16.mxu0 %v6711_v40  ;;  %5434 = vmatprep.subr.bf16.mxu1 %v6078_v60 }
 0xa14   :  { %5408 = vmatpush1.bf16.msra.mxu0 %v6714_v29  ;;  %5436 = vmatpush3.bf16.msra.mxu1 %v6794_v31 }
 0xa15   :  { %5410 = vmatprep.subr.bf16.mxu0 %v6717_v35  ;;  %5437 = vmatprep.subr.bf16.mxu1 %v6078_v60 }
 0xa18   :  { %5412 = vmatpush1.bf16.msra.mxu0 %v6720_v41  ;;  %5439 = vmatpush3.bf16.msra.mxu1 %v6800_v44 }
 0xa19   :  { %5414 = vmatprep.subr.bf16.mxu0 %v6724_v47  ;;  %5440 = vmatprep.subr.bf16.mxu1 %v6078_v60 }
 0xa1c   :  { %5416 = vmatpush1.bf16.msra.mxu0 %v6727_v57  ;;  %5442 = vmatpush3.bf16.msra.mxu1 %v6806_v30 }
 0xa1d   :  { %5418 = vmatprep.subr.bf16.mxu0 %v6730_v13  ;;  %5443 = vmatprep.subr.bf16.mxu1 %v6078_v60 }
 0xa20   :  { %5420 = vmatpush1.bf16.msra.mxu0 %v6733_v7  ;;  %5445 = vmatpush3.bf16.msra.mxu1 %v6812_v49 }
 0xa21   :  { %5422 = vmatprep.subr.bf16.mxu0 %v6736_v8  ;;  %5446 = vmatprep.subr.bf16.mxu1 %v6078_v60 }
 0xa24   :  { %5424 = vmatpush1.bf16.msra.mxu0 %v6739_v20  ;;  %5448 = vmatpush3.bf16.msra.mxu1 %v6818_v58 }
 0xa25   :  { %5450 = vmatprep.subr.bf16.mxu0 %v6694_v14  ;;  %5481 = vmatprep.subr.bf16.mxu1 %v6078_v60 }
 0xada   :  { %v2541_v59 = vpop.f32.mrb[22].mxu0  ;;  %v2612_v2 = vpop.f32.mrb[26].mxu1 }
 0xadb   :  { %v2542_v37 = vadd.f32 %v2541_v59, %v6866_v48  ;;  %v2543_v50 = vpop.f32.mrb[23].mxu0  ;;  %v4515_v55 = vpop.f32.mrb[27].mxu1  ;;  %v2613_v23 = vadd.f32 %v2612_v2, %v6878_v12  ;;  %v2795_v2 = vrot.slane %v2786_v32, 2 }
 0xadc   :  { %v2544_v62 = vadd.f32 %v2543_v50, %v6874_v33 }
 0xadd   :  { %v2617_v43 = vadd.f32 %v2616_v45, %v2542_v37 }
 0xade   :  { %v2627_v18 = vadd.f32 %v2625_v63, %v2544_v62 }
 0xadf   :  { %v3798_v54 = vmul.f32 -1.442695, %v2617_v43 }
 0xae0   :  { %v3799_v4 = vmul.f32 -1.442695, %v2627_v18 }
 0xae1   :  { %5857 = vpow2.f32 %v3798_v54 }
 0xae2   :  { %5859 = vpow2.f32 %v3799_v4 }
 0xaeb   :  { %v5858_v42 = vpop.eup %5857 }
 0xaec   :  { %v2621_v1 = vadd.f32 1.0, %v5858_v42  ;;  %v5860_v11 = vpop.eup %5859  ;;  %v2805_v42 = vrot.slane %v2786_v32, 4 }
 0xaed   :  { %v2631_v17 = vadd.f32 1.0, %v5860_v11 }
 0xaee   :  { %5861 = vrcp.f32 %v2621_v1 }
 0xaef   :  { %5863 = vrcp.f32 %v2631_v17 }
 0xaf8   :  { %v5862_v24 = vpop.eup %5861 }
 0xaf9   :  { %v2634_v25 = vmul.f32 %v5862_v24, %v2613_v23  ;;  %v5864_v56 = vpop.eup %5863 }
 0xafa   :  { %v2639_v51 = vsub.f32 1.0, %v5864_v56  ;;  %v2641_v6 = vmul.f32 %v5864_v56, %v6882_v3 }
 0xafb   :  { %v2637_v19 = vadd.f32 %v2635_v26, %v2634_v25 }
 0xafd   :  { %5865 = vtanh.f32 %v2637_v19 }
 0xb07   :  { %v5866_v53 = vpop.eup %5865 }
 0xb08   :  { %v2640_v5 = vmul.f32 %v5866_v53, %v2639_v51 }
 0xb0a   :  { %v2642_v9 = vadd.f32 %v2641_v6, %v2640_v5  ;;  %v2956_v5 = vld [vmem:[#allocation2 + $0x12] sm:$0x3f] }
 0xb0c   :  { %2643 = vst [vmem:[#allocation3] sm:$0x3] %v2642_v9 }
 0xb13   :  { %v6925_v39 = vld [vmem:[#allocation3] sm:$0x3] }
 0xb14   :  { %2710 = vmatmul.mubr.f32.vlgmr.msra.gmra.mrb[24].mxu0 %v6925_v39  ;;  %4549 = vmatmul.mubr.f32.vlgmr.msra.gmra.mrb[28].mxu1 %v6925_v39 }
 0xb15   :  { %5452 = vmatpush1.bf16.msra.mxu0 %v6696_v15  ;;  %5483 = vmatpush3.bf16.msra.mxu1 %v6774_v46 }
 0xb16   :  { %5454 = vmatprep.subr.bf16.mxu0 %v6700_v28  ;;  %5484 = vmatprep.subr.bf16.mxu1 %v6078_v60 }
 0xb17   :  { %2879 = vmatprep.mubr.f32.mxu0 %v6076_v0  ;;  %4583 = vmatprep.mubr.msk.f32.mxu1 %vm6079_vm1, %v6076_v0 }
 0xb19   :  { %5456 = vmatpush1.bf16.msra.mxu0 %v6702_v34  ;;  %5486 = vmatpush3.bf16.msra.mxu1 %v6780_v61 }
 0xb1a   :  { %5458 = vmatprep.subr.bf16.mxu0 %v6706_v10  ;;  %5487 = vmatprep.subr.bf16.mxu1 %v6078_v60 }
 0xb1d   :  { %5460 = vmatpush1.bf16.msra.mxu0 %v6708_v16  ;;  %5489 = vmatpush3.bf16.msra.mxu1 %v6787_v21 }
 0xb1e   :  { %5462 = vmatprep.subr.bf16.mxu0 %v6711_v40  ;;  %5490 = vmatprep.subr.bf16.mxu1 %v6078_v60 }
 0xb21   :  { %5464 = vmatpush1.bf16.msra.mxu0 %v6714_v29  ;;  %5492 = vmatpush3.bf16.msra.mxu1 %v6794_v31 }
 0xb22   :  { %5466 = vmatprep.subr.bf16.mxu0 %v6717_v35  ;;  %5493 = vmatprep.subr.bf16.mxu1 %v6078_v60 }
 0xb25   :  { %5468 = vmatpush1.bf16.msra.mxu0 %v6720_v41  ;;  %5495 = vmatpush3.bf16.msra.mxu1 %v6800_v44 }
 0xb26   :  { %5470 = vmatprep.subr.bf16.mxu0 %v6724_v47  ;;  %5496 = vmatprep.subr.bf16.mxu1 %v6078_v60 }
 0xb29   :  { %5472 = vmatpush1.bf16.msra.mxu0 %v6727_v57  ;;  %5498 = vmatpush3.bf16.msra.mxu1 %v6806_v30 }
 0xb2a   :  { %5474 = vmatprep.subr.bf16.mxu0 %v6730_v13  ;;  %5499 = vmatprep.subr.bf16.mxu1 %v6078_v60 }
 0xb2d   :  { %5476 = vmatpush1.bf16.msra.mxu0 %v6733_v7  ;;  %5501 = vmatpush3.bf16.msra.mxu1 %v6812_v49 }
 0xb2e   :  { %5478 = vmatprep.subr.bf16.mxu0 %v6736_v8  ;;  %5502 = vmatprep.subr.bf16.mxu1 %v6078_v60 }
 0xb31   :  { %5480 = vmatpush1.bf16.msra.mxu0 %v6739_v20  ;;  %5504 = vmatpush3.bf16.msra.mxu1 %v6818_v58 }
 0xb32   :  { %5506 = vmatprep.subr.bf16.mxu0 %v6694_v14  ;;  %5537 = vmatprep.subr.bf16.mxu1 %v6078_v60 }
 0xbe7   :  { %v2711_v22 = vpop.f32.mrb[24].mxu0  ;;  %v2782_v27 = vpop.f32.mrb[28].mxu1 }
 0xbe8   :  { %v2712_v38 = vadd.f32 %v2711_v22, %v6866_v48  ;;  %v2713_v36 = vpop.f32.mrb[25].mxu0  ;;  %v4550_v52 = vpop.f32.mrb[29].mxu1  ;;  %v2783_v54 = vadd.f32 %v2782_v27, %v6878_v12  ;;  %v2965_v27 = vrot.slane %v2956_v5, 2 }
 0xbe9   :  { %v2714_v3 = vadd.f32 %v2713_v36, %v6874_v33 }
 0xbea   :  { %v2787_v59 = vadd.f32 %v2786_v32, %v2712_v38 }
 0xbeb   :  { %v2797_v45 = vadd.f32 %v2795_v2, %v2714_v3 }
 0xbec   :  { %v3800_v37 = vmul.f32 -1.442695, %v2787_v59 }
 0xbed   :  { %v3801_v50 = vmul.f32 -1.442695, %v2797_v45 }
 0xbee   :  { %5867 = vpow2.f32 %v3800_v37 }
 0xbef   :  { %5869 = vpow2.f32 %v3801_v50 }
 0xbf8   :  { %v5868_v55 = vpop.eup %5867 }
 0xbf9   :  { %v2791_v62 = vadd.f32 1.0, %v5868_v55  ;;  %v5870_v43 = vpop.eup %5869  ;;  %v2975_v55 = vrot.slane %v2956_v5, 4 }
 0xbfa   :  { %v2801_v63 = vadd.f32 1.0, %v5870_v43 }
 0xbfb   :  { %5871 = vrcp.f32 %v2791_v62 }
 0xbfc   :  { %5873 = vrcp.f32 %v2801_v63 }
 0xc05   :  { %v5872_v18 = vpop.eup %5871 }
 0xc06   :  { %v2804_v4 = vmul.f32 %v5872_v18, %v2783_v54  ;;  %v5874_v11 = vpop.eup %5873 }
 0xc07   :  { %v2809_v17 = vsub.f32 1.0, %v5874_v11  ;;  %v2811_v25 = vmul.f32 %v5874_v11, %v6925_v39 }
 0xc08   :  { %v2807_v1 = vadd.f32 %v2805_v42, %v2804_v4 }
 0xc0a   :  { %5875 = vtanh.f32 %v2807_v1 }
 0xc14   :  { %v5876_v23 = vpop.eup %5875 }
 0xc15   :  { %v2810_v24 = vmul.f32 %v5876_v23, %v2809_v17 }
 0xc17   :  { %v2812_v26 = vadd.f32 %v2811_v25, %v2810_v24  ;;  %v3126_v24 = vld [vmem:[#allocation2 + $0x18] sm:$0x3f] }
 0xc19   :  { %2813 = vst [vmem:[#allocation3] sm:$0x3] %v2812_v26 }
 0xc20   :  { %v6968_v19 = vld [vmem:[#allocation3] sm:$0x3] }
 0xc21   :  { %2880 = vmatmul.mubr.f32.vlgmr.msra.gmra.mrb[26].mxu0 %v6968_v19  ;;  %4584 = vmatmul.mubr.f32.vlgmr.msra.gmra.mrb[30].mxu1 %v6968_v19 }
 0xc22   :  { %5508 = vmatpush1.bf16.msra.mxu0 %v6696_v15  ;;  %5539 = vmatpush3.bf16.msra.mxu1 %v6774_v46 }
 0xc23   :  { %5510 = vmatprep.subr.bf16.mxu0 %v6700_v28  ;;  %5540 = vmatprep.subr.bf16.mxu1 %v6078_v60 }
 0xc24   :  { %3049 = vmatprep.mubr.f32.mxu0 %v6076_v0  ;;  %4618 = vmatprep.mubr.msk.f32.mxu1 %vm6079_vm1, %v6076_v0 }
 0xc26   :  { %5512 = vmatpush1.bf16.msra.mxu0 %v6702_v34  ;;  %5542 = vmatpush3.bf16.msra.mxu1 %v6780_v61 }
 0xc27   :  { %5514 = vmatprep.subr.bf16.mxu0 %v6706_v10  ;;  %5543 = vmatprep.subr.bf16.mxu1 %v6078_v60 }
 0xc2a   :  { %5516 = vmatpush1.bf16.msra.mxu0 %v6708_v16  ;;  %5545 = vmatpush3.bf16.msra.mxu1 %v6787_v21 }
 0xc2b   :  { %5518 = vmatprep.subr.bf16.mxu0 %v6711_v40  ;;  %5546 = vmatprep.subr.bf16.mxu1 %v6078_v60 }
 0xc2e   :  { %5520 = vmatpush1.bf16.msra.mxu0 %v6714_v29  ;;  %5548 = vmatpush3.bf16.msra.mxu1 %v6794_v31 }
 0xc2f   :  { %5522 = vmatprep.subr.bf16.mxu0 %v6717_v35  ;;  %5549 = vmatprep.subr.bf16.mxu1 %v6078_v60 }
 0xc32   :  { %5524 = vmatpush1.bf16.msra.mxu0 %v6720_v41  ;;  %5551 = vmatpush3.bf16.msra.mxu1 %v6800_v44 }
 0xc33   :  { %5526 = vmatprep.subr.bf16.mxu0 %v6724_v47  ;;  %5552 = vmatprep.subr.bf16.mxu1 %v6078_v60 }
 0xc36   :  { %5528 = vmatpush1.bf16.msra.mxu0 %v6727_v57  ;;  %5554 = vmatpush3.bf16.msra.mxu1 %v6806_v30 }
 0xc37   :  { %5530 = vmatprep.subr.bf16.mxu0 %v6730_v13  ;;  %5555 = vmatprep.subr.bf16.mxu1 %v6078_v60 }
 0xc3a   :  { %5532 = vmatpush1.bf16.msra.mxu0 %v6733_v7  ;;  %5557 = vmatpush3.bf16.msra.mxu1 %v6812_v49 }
 0xc3b   :  { %5534 = vmatprep.subr.bf16.mxu0 %v6736_v8  ;;  %5558 = vmatprep.subr.bf16.mxu1 %v6078_v60 }
 0xc3e   :  { %5536 = vmatpush1.bf16.msra.mxu0 %v6739_v20  ;;  %5560 = vmatpush3.bf16.msra.mxu1 %v6818_v58 }
 0xc3f   :  { %5562 = vmatprep.subr.bf16.mxu0 %v6694_v14  ;;  %5593 = vmatprep.subr.bf16.mxu1 %v6078_v60 }
 0xcf4   :  { %v2881_v56 = vpop.f32.mrb[26].mxu0  ;;  %v2952_v51 = vpop.f32.mrb[30].mxu1 }
 0xcf5   :  { %v2882_v53 = vadd.f32 %v2881_v56, %v6866_v48  ;;  %v2883_v6 = vpop.f32.mrb[27].mxu0  ;;  %v4585_v9 = vpop.f32.mrb[31].mxu1  ;;  %v2953_v37 = vadd.f32 %v2952_v51, %v6878_v12  ;;  %v3135_v51 = vrot.slane %v3126_v24, 2 }
 0xcf6   :  { %v2884_v39 = vadd.f32 %v2883_v6, %v6874_v33 }
 0xcf7   :  { %v2957_v22 = vadd.f32 %v2956_v5, %v2882_v53 }
 0xcf8   :  { %v2967_v32 = vadd.f32 %v2965_v27, %v2884_v39 }
 0xcf9   :  { %v3802_v38 = vmul.f32 -1.442695, %v2957_v22 }
 0xcfa   :  { %v3803_v36 = vmul.f32 -1.442695, %v2967_v32 }
 0xcfb   :  { %5877 = vpow2.f32 %v3802_v38 }
 0xcfc   :  { %5879 = vpow2.f32 %v3803_v36 }
 0xd05   :  { %v5878_v52 = vpop.eup %5877 }
 0xd06   :  { %v2961_v3 = vadd.f32 1.0, %v5878_v52  ;;  %v5880_v59 = vpop.eup %5879  ;;  %v3145_v52 = vrot.slane %v3126_v24, 4 }
 0xd07   :  { %v2971_v2 = vadd.f32 1.0, %v5880_v59 }
 0xd08   :  { %5881 = vrcp.f32 %v2961_v3 }
 0xd09   :  { %5883 = vrcp.f32 %v2971_v2 }
 0xd12   :  { %v5882_v45 = vpop.eup %5881 }
 0xd13   :  { %v2974_v50 = vmul.f32 %v5882_v45, %v2953_v37  ;;  %v5884_v43 = vpop.eup %5883 }
 0xd14   :  { %v2979_v63 = vsub.f32 1.0, %v5884_v43  ;;  %v2981_v4 = vmul.f32 %v5884_v43, %v6968_v19 }
 0xd15   :  { %v2977_v62 = vadd.f32 %v2975_v55, %v2974_v50 }
 0xd17   :  { %5885 = vtanh.f32 %v2977_v62 }
 0xd21   :  { %v5886_v54 = vpop.eup %5885 }
 0xd22   :  { %v2980_v18 = vmul.f32 %v5886_v54, %v2979_v63 }
 0xd24   :  { %v2982_v42 = vadd.f32 %v2981_v4, %v2980_v18  ;;  %v3296_v18 = vld [vmem:[#allocation2 + $0x1e] sm:$0x3f] }
 0xd26   :  { %2983 = vst [vmem:[#allocation3] sm:$0x3] %v2982_v42 }
 0xd2d   :  { %v7011_v1 = vld [vmem:[#allocation3] sm:$0x3] }
 0xd2e   :  { %3050 = vmatmul.mubr.f32.vlgmr.msra.gmra.mrb[28].mxu0 %v7011_v1  ;;  %4619 = vmatmul.mubr.f32.vlgmr.msra.gmra.mrb[32].mxu1 %v7011_v1 }
 0xd2f   :  { %5564 = vmatpush1.bf16.msra.mxu0 %v6696_v15  ;;  %5595 = vmatpush3.bf16.msra.mxu1 %v6774_v46 }
 0xd30   :  { %5566 = vmatprep.subr.bf16.mxu0 %v6700_v28  ;;  %5596 = vmatprep.subr.bf16.mxu1 %v6078_v60 }
 0xd31   :  { %3219 = vmatprep.mubr.f32.mxu0 %v6076_v0  ;;  %4653 = vmatprep.mubr.msk.f32.mxu1 %vm6079_vm1, %v6076_v0 }
 0xd33   :  { %5568 = vmatpush1.bf16.msra.mxu0 %v6702_v34  ;;  %5598 = vmatpush3.bf16.msra.mxu1 %v6780_v61 }
 0xd34   :  { %5570 = vmatprep.subr.bf16.mxu0 %v6706_v10  ;;  %5599 = vmatprep.subr.bf16.mxu1 %v6078_v60 }
 0xd37   :  { %5572 = vmatpush1.bf16.msra.mxu0 %v6708_v16  ;;  %5601 = vmatpush3.bf16.msra.mxu1 %v6787_v21 }
 0xd38   :  { %5574 = vmatprep.subr.bf16.mxu0 %v6711_v40  ;;  %5602 = vmatprep.subr.bf16.mxu1 %v6078_v60 }
 0xd3b   :  { %5576 = vmatpush1.bf16.msra.mxu0 %v6714_v29  ;;  %5604 = vmatpush3.bf16.msra.mxu1 %v6794_v31 }
 0xd3c   :  { %5578 = vmatprep.subr.bf16.mxu0 %v6717_v35  ;;  %5605 = vmatprep.subr.bf16.mxu1 %v6078_v60 }
 0xd3f   :  { %5580 = vmatpush1.bf16.msra.mxu0 %v6720_v41  ;;  %5607 = vmatpush3.bf16.msra.mxu1 %v6800_v44 }
 0xd40   :  { %5582 = vmatprep.subr.bf16.mxu0 %v6724_v47  ;;  %5608 = vmatprep.subr.bf16.mxu1 %v6078_v60 }
 0xd43   :  { %5584 = vmatpush1.bf16.msra.mxu0 %v6727_v57  ;;  %5610 = vmatpush3.bf16.msra.mxu1 %v6806_v30 }
 0xd44   :  { %5586 = vmatprep.subr.bf16.mxu0 %v6730_v13  ;;  %5611 = vmatprep.subr.bf16.mxu1 %v6078_v60 }
 0xd47   :  { %5588 = vmatpush1.bf16.msra.mxu0 %v6733_v7  ;;  %5613 = vmatpush3.bf16.msra.mxu1 %v6812_v49 }
 0xd48   :  { %5590 = vmatprep.subr.bf16.mxu0 %v6736_v8  ;;  %5614 = vmatprep.subr.bf16.mxu1 %v6078_v60 }
 0xd4b   :  { %5592 = vmatpush1.bf16.msra.mxu0 %v6739_v20  ;;  %5616 = vmatpush3.bf16.msra.mxu1 %v6818_v58 }
 0xd4c   :  { %5618 = vmatprep.subr.bf16.mxu0 %v6694_v14  ;;  %5649 = vmatprep.subr.bf16.mxu1 %v6078_v60 }
 0xe01   :  { %v3051_v11 = vpop.f32.mrb[28].mxu0  ;;  %v3122_v17 = vpop.f32.mrb[32].mxu1 }
 0xe02   :  { %v3052_v23 = vadd.f32 %v3051_v11, %v6866_v48  ;;  %v3053_v25 = vpop.f32.mrb[29].mxu0  ;;  %v4620_v26 = vpop.f32.mrb[33].mxu1  ;;  %v3123_v38 = vadd.f32 %v3122_v17, %v6878_v12  ;;  %v3305_v17 = vrot.slane %v3296_v18, 2 }
 0xe03   :  { %v3054_v19 = vadd.f32 %v3053_v25, %v6874_v33 }
 0xe04   :  { %v3127_v56 = vadd.f32 %v3126_v24, %v3052_v23 }
 0xe05   :  { %v3137_v5 = vadd.f32 %v3135_v51, %v3054_v19 }
 0xe06   :  { %v3804_v53 = vmul.f32 -1.442695, %v3127_v56 }
 0xe07   :  { %v3805_v6 = vmul.f32 -1.442695, %v3137_v5 }
 0xe08   :  { %5887 = vpow2.f32 %v3804_v53 }
 0xe09   :  { %5889 = vpow2.f32 %v3805_v6  ;;  %v3315_v6 = vrot.slane %v3296_v18, 4 }
 0xe12   :  { %v5888_v9 = vpop.eup %5887 }
 0xe13   :  { %v3131_v39 = vadd.f32 1.0, %v5888_v9  ;;  %v5890_v22 = vpop.eup %5889 }
 0xe14   :  { %v3141_v27 = vadd.f32 1.0, %v5890_v22 }
 0xe15   :  { %5891 = vrcp.f32 %v3131_v39 }
 0xe16   :  { %5893 = vrcp.f32 %v3141_v27 }
 0xe1f   :  { %v5892_v32 = vpop.eup %5891 }
 0xe20   :  { %v3144_v36 = vmul.f32 %v5892_v32, %v3123_v38  ;;  %v5894_v59 = vpop.eup %5893 }
 0xe21   :  { %v3149_v2 = vsub.f32 1.0, %v5894_v59  ;;  %v3151_v50 = vmul.f32 %v5894_v59, %v7011_v1 }
 0xe22   :  { %v3147_v3 = vadd.f32 %v3145_v52, %v3144_v36 }
 0xe24   :  { %5895 = vtanh.f32 %v3147_v3 }
 0xe2e   :  { %v5896_v37 = vpop.eup %5895 }
 0xe2f   :  { %v3150_v45 = vmul.f32 %v5896_v37, %v3149_v2 }
 0xe31   :  { %v3152_v55 = vadd.f32 %v3151_v50, %v3150_v45  ;;  %v3665_v50 = vld [vmem:[#allocation13] sm:$0xff] }
 0xe33   :  { %3153 = vst [vmem:[#allocation3] sm:$0x3] %v3152_v55  ;;  %v3666_v55 = vld [vmem:[#allocation13 + $0x8] sm:$0xff] }
 0xe3a   :  { %v7054_v62 = vld [vmem:[#allocation3] sm:$0x3] }
 0xe3b   :  { %3220 = vmatmul.mubr.f32.vlgmr.msra.gmra.mrb[30].mxu0 %v7054_v62  ;;  %4654 = vmatmul.mubr.f32.vlgmr.msra.gmra.mrb[34].mxu1 %v7054_v62 }
 0xe3c   :  { %5620 = vmatpush1.bf16.msra.mxu0 %v6696_v15  ;;  %5651 = vmatpush3.bf16.msra.mxu1 %v6774_v46 }
 0xe3d   :  { %5622 = vmatprep.subr.bf16.mxu0 %v6700_v28  ;;  %5652 = vmatprep.subr.bf16.mxu1 %v6078_v60 }
 0xe3e   :  { %3389 = vmatprep.mubr.f32.mxu0 %v6076_v0  ;;  %4688 = vmatprep.mubr.msk.f32.mxu1 %vm6079_vm1, %v6076_v0 }
 0xe40   :  { %5624 = vmatpush1.bf16.msra.mxu0 %v6702_v34  ;;  %5654 = vmatpush3.bf16.msra.mxu1 %v6780_v61 }
 0xe41   :  { %5626 = vmatprep.subr.bf16.mxu0 %v6706_v10  ;;  %5655 = vmatprep.subr.bf16.mxu1 %v6078_v60 }
 0xe44   :  { %5628 = vmatpush1.bf16.msra.mxu0 %v6708_v16  ;;  %5657 = vmatpush3.bf16.msra.mxu1 %v6787_v21 }
 0xe45   :  { %5630 = vmatprep.subr.bf16.mxu0 %v6711_v40  ;;  %5658 = vmatprep.subr.bf16.mxu1 %v6078_v60 }
 0xe48   :  { %5632 = vmatpush1.bf16.msra.mxu0 %v6714_v29  ;;  %5660 = vmatpush3.bf16.msra.mxu1 %v6794_v31 }
 0xe49   :  { %5634 = vmatprep.subr.bf16.mxu0 %v6717_v35  ;;  %5661 = vmatprep.subr.bf16.mxu1 %v6078_v60 }
 0xe4c   :  { %5636 = vmatpush1.bf16.msra.mxu0 %v6720_v41  ;;  %5663 = vmatpush3.bf16.msra.mxu1 %v6800_v44 }
 0xe4d   :  { %5638 = vmatprep.subr.bf16.mxu0 %v6724_v47  ;;  %5664 = vmatprep.subr.bf16.mxu1 %v6078_v60 }
 0xe50   :  { %5640 = vmatpush1.bf16.msra.mxu0 %v6727_v57  ;;  %5666 = vmatpush3.bf16.msra.mxu1 %v6806_v30 }
 0xe51   :  { %5642 = vmatprep.subr.bf16.mxu0 %v6730_v13  ;;  %5667 = vmatprep.subr.bf16.mxu1 %v6078_v60 }
 0xe54   :  { %5644 = vmatpush1.bf16.msra.mxu0 %v6733_v7  ;;  %5669 = vmatpush3.bf16.msra.mxu1 %v6812_v49 }
 0xe55   :  { %5646 = vmatprep.subr.bf16.mxu0 %v6736_v8  ;;  %5670 = vmatprep.subr.bf16.mxu1 %v6078_v60 }
 0xe58   :  { %5648 = vmatpush1.bf16.msra.mxu0 %v6739_v20  ;;  %5672 = vmatpush3.bf16.msra.mxu1 %v6818_v58 }
 0xe59   :  { %5674 = vmatprep.subr.bf16.mxu0 %v6694_v14  ;;  %5705 = vmatprep.subr.bf16.mxu1 %v6078_v60 }
 0xf0e   :  { %v3221_v43 = vpop.f32.mrb[30].mxu0  ;;  %v3292_v63 = vpop.f32.mrb[34].mxu1 }
 0xf0f   :  { %v3222_v54 = vadd.f32 %v3221_v43, %v6866_v48  ;;  %v3223_v4 = vpop.f32.mrb[31].mxu0  ;;  %v4655_v42 = vpop.f32.mrb[35].mxu1  ;;  %v3293_v51 = vadd.f32 %v3292_v63, %v6878_v12  ;;  %v3667_v43 = vld [vmem:[#allocation13 + $0x10] sm:$0xff]  ;;  %v3668_v63 = vld [vmem:[#allocation13 + $0x18] sm:$0xff] }
 0xf10   :  { %v3224_v1 = vadd.f32 %v3223_v4, %v6874_v33  ;;  %v3670_v4 = vld [vmem:[#allocation13 + $0x28] sm:$0xff] }
 0xf11   :  { %v3297_v11 = vadd.f32 %v3296_v18, %v3222_v54  ;;  %v5733_v54 = vpack.c.bf16 %v3668_v63, %v3667_v43  ;;  %v3669_v18 = vld [vmem:[#allocation13 + $0x20] sm:$0xff] }
 0xf12   :  { %v3307_v24 = vadd.f32 %v3305_v17, %v3224_v1  ;;  %v5736_v42 = vpack.c.bf16 %v3670_v4, %v3669_v18  ;;  %v3671_v1 = vld [vmem:[#allocation13 + $0x30] sm:$0xff]  ;;  %v3673_v17 = vld [vmem:[#allocation13 + $0x40] sm:$0xff] }
 0xf13   :  { %v3806_v23 = vmul.f32 -1.442695, %v3297_v11 }
 0xf14   :  { %v3807_v25 = vmul.f32 -1.442695, %v3307_v24 }
 0xf15   :  { %5897 = vpow2.f32 %v3806_v23  ;;  %v3674_v23 = vld [vmem:[#allocation13 + $0x48] sm:$0xff] }
 0xf16   :  { %5899 = vpow2.f32 %v3807_v25  ;;  %v5742_v24 = vpack.c.bf16 %v3674_v23, %v3673_v17  ;;  %v3675_v25 = vld [vmem:[#allocation13 + $0x50] sm:$0xff] }
 0xf1f   :  { %v5898_v26 = vpop.eup %5897 }
 0xf20   :  { %v3301_v14 = vadd.f32 1.0, %v5898_v26  ;;  %v5900_v19 = vpop.eup %5899  ;;  %v3676_v26 = vld [vmem:[#allocation13 + $0x58] sm:$0xff] }
 0xf21   :  { %v3311_v56 = vadd.f32 1.0, %v5900_v19  ;;  %v3677_v19 = vld [vmem:[#allocation13 + $0x60] sm:$0xff] }
 0xf22   :  { %5901 = vrcp.f32 %v3301_v14  ;;  %v5745_v14 = vpack.c.bf16 %v3676_v26, %v3675_v25 }
 0xf23   :  { %5903 = vrcp.f32 %v3311_v56  ;;  %v3678_v56 = vld [vmem:[#allocation13 + $0x68] sm:$0xff] }
 0xf2c   :  { %v5902_v53 = vpop.eup %5901 }
 0xf2d   :  { %v3314_v5 = vmul.f32 %v5902_v53, %v3293_v51  ;;  %v5904_v39 = vpop.eup %5903  ;;  %v5748_v51 = vpack.c.bf16 %v3678_v56, %v3677_v19  ;;  %v3679_v53 = vld [vmem:[#allocation13 + $0x70] sm:$0xff] }
 0xf2e   :  { %v3319_v22 = vsub.f32 1.0, %v5904_v39  ;;  %v3321_v32 = vmul.f32 %v5904_v39, %v7054_v62  ;;  %v5730_v62 = vpack.c.bf16 %v3666_v55, %v3665_v50 }
 0xf2f   :  { %v3317_v9 = vadd.f32 %v3315_v6, %v3314_v5  ;;  %v3680_v5 = vld [vmem:[#allocation13 + $0x78] sm:$0xff] }
 0xf30   :  { %v5751_v6 = vpack.c.bf16 %v3680_v5, %v3679_v53 }
 0xf31   :  { %5905 = vtanh.f32 %v3317_v9 }
 0xf3b   :  { %v5906_v27 = vpop.eup %5905 }
 0xf3c   :  { %v3320_v38 = vmul.f32 %v5906_v27, %v3319_v22  ;;  %v3636_v27 = vld [vmem:[#allocation2 + $0x2a] sm:$0x3f] }
 0xf3e   :  { %v3322_v36 = vadd.f32 %v3321_v32, %v3320_v38 }
 0xf40   :  { %3323 = vst [vmem:[#allocation3] sm:$0x3] %v3322_v36 }
 0xf47   :  { %v7097_v52 = vld [vmem:[#allocation3] sm:$0x3] }
 0xf48   :  { %3390 = vmatmul.mubr.f32.vlgmr.msra.gmra.mrb[32].mxu0 %v7097_v52  ;;  %4689 = vmatmul.mubr.f32.vlgmr.msra.gmra.mrb[36].mxu1 %v7097_v52 }
 0xf49   :  { %5676 = vmatpush1.bf16.msra.mxu0 %v6696_v15  ;;  %5707 = vmatpush3.bf16.msra.mxu1 %v6774_v46 }
 0xf4a   :  { %5678 = vmatprep.subr.bf16.mxu0 %v6700_v28  ;;  %5708 = vmatprep.subr.bf16.mxu1 %v6078_v60 }
 0xf4b   :  { %3559 = vmatprep.mubr.f32.mxu0 %v6076_v0  ;;  %4723 = vmatprep.mubr.msk.f32.mxu1 %vm6079_vm1, %v6076_v0 }
 0xf4d   :  { %5680 = vmatpush1.bf16.msra.mxu0 %v6702_v34  ;;  %5710 = vmatpush3.bf16.msra.mxu1 %v6780_v61 }
 0xf4e   :  { %5682 = vmatprep.subr.bf16.mxu0 %v6706_v10  ;;  %5711 = vmatprep.subr.bf16.mxu1 %v6078_v60  ;;  %v3466_v10 = vld [vmem:[#allocation2 + $0x24] sm:$0x3f] }
 0xf51   :  { %5684 = vmatpush1.bf16.msra.mxu0 %v6708_v16  ;;  %5713 = vmatpush3.bf16.msra.mxu1 %v6787_v21 }
 0xf52   :  { %5686 = vmatprep.subr.bf16.mxu0 %v6711_v40  ;;  %5714 = vmatprep.subr.bf16.mxu1 %v6078_v60 }
 0xf55   :  { %5688 = vmatpush1.bf16.msra.mxu0 %v6714_v29  ;;  %5716 = vmatpush3.bf16.msra.mxu1 %v6794_v31 }
 0xf56   :  { %5690 = vmatprep.subr.bf16.mxu0 %v6717_v35  ;;  %5717 = vmatprep.subr.bf16.mxu1 %v6078_v60 }
 0xf59   :  { %5692 = vmatpush1.bf16.msra.mxu0 %v6720_v41  ;;  %5719 = vmatpush3.bf16.msra.mxu1 %v6800_v44  ;;  %v3475_v41 = vrot.slane %v3466_v10, 2  ;;  %v3485_v44 = vrot.slane %v3466_v10, 4 }
 0xf5a   :  { %5694 = vmatprep.subr.bf16.mxu0 %v6724_v47  ;;  %5720 = vmatprep.subr.bf16.mxu1 %v6078_v60 }
 0xf5d   :  { %5696 = vmatpush1.bf16.msra.mxu0 %v6727_v57  ;;  %5722 = vmatpush3.bf16.msra.mxu1 %v6806_v30 }
 0xf5e   :  { %5698 = vmatprep.subr.bf16.mxu0 %v6730_v13  ;;  %5723 = vmatprep.subr.bf16.mxu1 %v6078_v60 }
 0xf61   :  { %5700 = vmatpush1.bf16.msra.mxu0 %v6733_v7  ;;  %5725 = vmatpush3.bf16.msra.mxu1 %v6812_v49 }
 0xf62   :  { %5702 = vmatprep.subr.bf16.mxu0 %v6736_v8  ;;  %5726 = vmatprep.subr.bf16.mxu1 %v6078_v60 }
 0xf65   :  { %5704 = vmatpush1.bf16.msra.mxu0 %v6739_v20  ;;  %5728 = vmatpush3.bf16.msra.mxu1 %v6818_v58 }
 0xf66   :  { %5729 = vmatprep.subr.bf16.mxu0 %v6078_v60 }
0x101b   :  { %v3391_v15 = vpop.f32.mrb[32].mxu0  ;;  %v3462_v28 = vpop.f32.mrb[36].mxu1 }
0x101c   :  { %v3392_v34 = vadd.f32 %v3391_v15, %v6866_v48  ;;  %v3393_v16 = vpop.f32.mrb[33].mxu0  ;;  %v4690_v40 = vpop.f32.mrb[37].mxu1  ;;  %v3463_v61 = vadd.f32 %v3462_v28, %v6878_v12  ;;  %v3645_v15 = vrot.slane %v3636_v27, 2 }
0x101d   :  { %v3394_v29 = vadd.f32 %v3393_v16, %v6874_v33 }
0x101e   :  { %v3467_v35 = vadd.f32 %v3466_v10, %v3392_v34 }
0x101f   :  { %v3477_v57 = vadd.f32 %v3475_v41, %v3394_v29 }
0x1020   :  { %v3808_v47 = vmul.f32 -1.442695, %v3467_v35 }
0x1021   :  { %v3809_v13 = vmul.f32 -1.442695, %v3477_v57 }
0x1022   :  { %5907 = vpow2.f32 %v3808_v47  ;;  %v3655_v47 = vrot.slane %v3636_v27, 4 }
0x1023   :  { %5909 = vpow2.f32 %v3809_v13 }
0x102c   :  { %v5908_v7 = vpop.eup %5907 }
0x102d   :  { %v3471_v8 = vadd.f32 1.0, %v5908_v7  ;;  %v5910_v20 = vpop.eup %5909 }
0x102e   :  { %v3481_v46 = vadd.f32 1.0, %v5910_v20 }
0x102f   :  { %5911 = vrcp.f32 %v3471_v8 }
0x1030   :  { %5913 = vrcp.f32 %v3481_v46 }
0x1039   :  { %v5912_v21 = vpop.eup %5911 }
0x103a   :  { %v3484_v31 = vmul.f32 %v5912_v21, %v3463_v61  ;;  %v5914_v49 = vpop.eup %5913 }
0x103b   :  { %v3489_v58 = vsub.f32 1.0, %v5914_v49  ;;  %v3491_v2 = vmul.f32 %v5914_v49, %v7097_v52 }
0x103c   :  { %v3487_v30 = vadd.f32 %v3485_v44, %v3484_v31 }
0x103e   :  { %5915 = vtanh.f32 %v3487_v30 }
0x1048   :  { %v5916_v3 = vpop.eup %5915 }
0x1049   :  { %v3490_v59 = vmul.f32 %v5916_v3, %v3489_v58 }
0x104b   :  { %v3492_v37 = vadd.f32 %v3491_v2, %v3490_v59 }
0x104d   :  { %3493 = vst [vmem:[#allocation3] sm:$0x3] %v3492_v37 }
0x1054   :  { %v7139_v45 = vld [vmem:[#allocation3] sm:$0x3] }
0x1055   :  { %3560 = vmatmul.mubr.f32.vlgmr.msra.gmra.mrb[34].mxu0 %v7139_v45  ;;  %4724 = vmatmul.mubr.f32.vlgmr.msra.gmra.mrb[38].mxu1 %v7139_v45 }
0x1056   :  { %4758 = vmatprep.mubr.msk.f32.mxu0 %vm6079_vm1, %v6076_v0  ;;  %5731 = vmatpush3.bf16.msra.mxu0 %v5730_v62  ;;  %v3672_v0 = vld [vmem:[#allocation13 + $0x38] sm:$0xff] }
0x1057   :  { %5732 = vmatprep.subr.bf16.mxu0 %v6078_v60  ;;  %v5739_v11 = vpack.c.bf16 %v3672_v0, %v3671_v1 }
0x105a   :  { %5734 = vmatpush3.bf16.msra.mxu0 %v5733_v54 }
0x105b   :  { %5735 = vmatprep.subr.bf16.mxu0 %v6078_v60 }
0x105e   :  { %5737 = vmatpush3.bf16.msra.mxu0 %v5736_v42 }
0x105f   :  { %5738 = vmatprep.subr.bf16.mxu0 %v6078_v60 }
0x1062   :  { %5740 = vmatpush3.bf16.msra.mxu0 %v5739_v11 }
0x1063   :  { %5741 = vmatprep.subr.bf16.mxu0 %v6078_v60 }
0x1066   :  { %5743 = vmatpush3.bf16.msra.mxu0 %v5742_v24 }
0x1067   :  { %5744 = vmatprep.subr.bf16.mxu0 %v6078_v60 }
0x106a   :  { %5746 = vmatpush3.bf16.msra.mxu0 %v5745_v14 }
0x106b   :  { %5747 = vmatprep.subr.bf16.mxu0 %v6078_v60 }
0x106e   :  { %5749 = vmatpush3.bf16.msra.mxu0 %v5748_v51 }
0x106f   :  { %5750 = vmatprep.subr.bf16.mxu0 %v6078_v60 }
0x1072   :  { %5752 = vmatpush3.bf16.msra.mxu0 %v5751_v6 }
0x1128   :  { %v3561_v9 = vpop.f32.mrb[34].mxu0  ;;  %v3632_v39 = vpop.f32.mrb[38].mxu1 }
0x1129   :  { %v3562_v22 = vadd.f32 %v3561_v9, %v6866_v48  ;;  %v3563_v38 = vpop.f32.mrb[35].mxu0  ;;  %v4725_v32 = vpop.f32.mrb[39].mxu1  ;;  %v3633_v35 = vadd.f32 %v3632_v39, %v6878_v12  ;;  %v3812_v12 = vld [vmem:[%s7181_s10] ss:$0 sm:$0xff] }
0x112a   :  { %v3564_v36 = vadd.f32 %v3563_v38, %v6874_v33 }
0x112b   :  { %v3637_v52 = vadd.f32 %v3636_v27, %v3562_v22 }
0x112c   :  { %v3647_v34 = vadd.f32 %v3645_v15, %v3564_v36 }
0x112d   :  { %v3810_v28 = vmul.f32 -1.442695, %v3637_v52 }
0x112e   :  { %v3811_v10 = vmul.f32 -1.442695, %v3647_v34 }
0x112f   :  { %5917 = vpow2.f32 %v3810_v28 }
0x1130   :  { %5919 = vpow2.f32 %v3811_v10 }
0x1139   :  { %v5918_v16 = vpop.eup %5917 }
0x113a   :  { %v3641_v40 = vadd.f32 1.0, %v5918_v16  ;;  %v5920_v60 = vpop.eup %5919 }
0x113b   :  { %v3651_v29 = vadd.f32 1.0, %v5920_v60 }
0x113c   :  { %5921 = vrcp.f32 %v3641_v40 }
0x113d   :  { %5923 = vrcp.f32 %v3651_v29 }
0x1146   :  { %v5922_v48 = vpop.eup %5921 }
0x1147   :  { %v3654_v41 = vmul.f32 %v5922_v48, %v3633_v35  ;;  %v5924_v33 = vpop.eup %5923 }
0x1148   :  { %v3659_v13 = vsub.f32 1.0, %v5924_v33  ;;  %v3661_v20 = vmul.f32 %v5924_v33, %v7139_v45 }
0x1149   :  { %v3657_v57 = vadd.f32 %v3655_v47, %v3654_v41 }
0x114b   :  { %5925 = vtanh.f32 %v3657_v57 }
0x1155   :  { %v5926_v7 = vpop.eup %5925 }
0x1156   :  { %v3660_v8 = vmul.f32 %v5926_v7, %v3659_v13 }
0x1158   :  { %v3662_v46 = vadd.f32 %v3661_v20, %v3660_v8 }
0x115a   :  { %3663 = vst [vmem:[#allocation3] sm:$0x3] %v3662_v46 }
0x1161   :  { %v3664_v61 = vld [vmem:[#allocation3] sm:$0x3] }
0x1162   :  { %4759 = vmatmul.mubr.f32.vlgmr.msra.gmra.mrb[36].mxu0 %v3664_v61 }
0x1235   :  { %v3754_v21 = vpop.f32.mrb[36].mxu0 }
0x1236   :  { %v3755_v31 = vadd.f32 %v3812_v12, %v3754_v21  ;;  %v4760_v44 = vpop.f32.mrb[37].mxu0 }
0x1238   :  { %3758 = vst [vmem:[#allocation14] sm:$0x3] %v3755_v31 }
0x1239   :  { %6048 = shalt.err (!%p6045_p2)
}
0x123a   :  { %s6049_s23 = scalar_lea.hbm %s7182_s11, 32 }
0x123b   :  { %p6050_p3 = scmp.ne.s32.totalorder %s7182_s11, %s6049_s23  ;;  %p6053_p4 = scmp.lt.u32.totalorder %s6049_s23, %s7182_s11 }
0x123d   :  { %p6055_p5 = pnand %p6053_p4, %p6050_p3 }
0x123f   :  { %6058 = shalt.err (!%p6055_p5)
}
0x1240   :  { %3768 = dma.vmem_to_hbm [thread:$0]  %s3766_s30, 32, %s7182_s11, [#allocation7]  }
0x1241   :  { %6065 = dma.done.wait [#allocation7], 32  }
0x1242   :  { %6066 = vsyncadd [#allocation7], 4294967264 }
0x1243   :  { %3772 = vsyncpa [#allocation6], 1 }
0x1244   :  { %3773 = vsyncpa [#allocation9], 1 }
0x1245   :  { %3774 = vsyncpa [#allocation12], 1 }
0x1246   :  { %3775 = vsyncpa [#allocation7], 1 }

</bundles_post_ra>
